<compile_context>
chip_gen: v5e
topology: v5e:2x2
jax: 0.10.0
libtpu: 0.0.40
codegen_flags: <defaults>
</compile_context>

<pallas_src>
import numpy as np

import jax
import jax.numpy as jnp
from jax.experimental import pallas as pl
from jax.experimental.pallas import tpu as pltpu


_N_SKIPS = 5        # reduced e5, e4, e3, e2, e1
_N_STAGE_OPS = 6    # per decoder stage: Rst, G, bu, Sst, K2, b2
_N_HEAD_OPS = 3     # A, M, bh


# ----------------------------- fused Pallas kernel -----------------------------

def _fused_decoder_kernel(*refs):
    """Whole decoder + head for ONE image (grid=(N,)).

    Input refs (in order):
      refs[0:5]    reduced skips e5..e1, lane-dense (1, H, W*F)
      refs[5:29]   4 stages x (Rst (3,H,h), G (3,wF,WF), bu (1,WF),
                               Sst (3,H,H), K2 (2,3,WF,WF), b2 (1,WF))
      refs[29:32]  head: A (Hout,Hd), M (Wd*F,Wout), bh (1,1)
      refs[-1]     output (1, Hout, Wout)
    """
    n_stages = 4
    e_refs = refs[0:_N_SKIPS]
    stage_refs = refs[_N_SKIPS:_N_SKIPS + n_stages * _N_STAGE_OPS]
    a_ref, m_ref, bh_ref = refs[_N_SKIPS + n_stages * _N_STAGE_OPS:
                                _N_SKIPS + n_stages * _N_STAGE_OPS + _N_HEAD_OPS]
    o_ref = refs[-1]
    f32 = jnp.float32

    d = e_refs[0][0]                                   # (1, F): reduce(e5), lane-dense
    for si in range(n_stages):
        r_ref, g_ref, bu_ref, s_ref, k2_ref, b2_ref = (
            stage_refs[si * _N_STAGE_OPS:(si + 1) * _N_STAGE_OPS])
        skip = e_refs[si + 1][0]                       # (H, W*F) reduced skip

        # --- up_conv: nearest 2x upsample + 3x3 conv + BN + ReLU ---------------
        #     u = relu( sum_dy (R_dy @ d) @ G_dy + bu )
        acc = None
        for dy in range(3):
            if d.shape[0] == 1:                        # stage 5: 1x1 input, K=1 dot
                t = r_ref[dy] * d                      #   == broadcast multiply
            else:
                t = jnp.dot(r_ref[dy], d, preferred_element_type=f32)   # (H, w*F)
            p = jnp.dot(t, g_ref[dy], preferred_element_type=f32)       # (H, W*F)
            acc = p if acc is None else acc + p
        u = jnp.maximum(acc + bu_ref[...], 0.0)        # (H, W*F)

        # --- conv_block on concat([skip, u]): 3x3 conv + BN + ReLU -------------
        #     concat folded into the banded pair K2[0] (skip) / K2[1] (up)
        acc2 = None
        for dy in range(3):
            t = (jnp.dot(skip, k2_ref[0, dy], preferred_element_type=f32)
                 + jnp.dot(u, k2_ref[1, dy], preferred_element_type=f32))
            p = jnp.dot(s_ref[dy], t, preferred_element_type=f32)
            acc2 = p if acc2 is None else acc2 + p
        d = jnp.maximum(acc2 + b2_ref[...], 0.0)       # (H, W*F) -> next stage input

    # --- head: 1x1 conv folded into the column-resize matrix, then row resize ---
    t = jnp.dot(d, m_ref[...], preferred_element_type=f32)              # (Hd, Wout)
    o_ref[0] = jnp.dot(a_ref[...], t, preferred_element_type=f32) + bh_ref[...]


# ----------------------------- host-side operand construction -----------------------------

def _bilinear_matrix(out_size, in_size):
    """PyTorch F.interpolate(mode='bilinear', align_corners=False) 1-D weights."""
    m = np.zeros((out_size, in_size), np.float32)
    if in_size == 1:
        m[:, 0] = 1.0
        return m
    scale = in_size / out_size
    for d in range(out_size):
        src = max((d + 0.5) * scale - 0.5, 0.0)
        i0 = min(int(np.floor(src)), in_size - 1)
        i1 = min(i0 + 1, in_size - 1)
        lam = src - i0
        m[d, i0] += 1.0 - lam
        m[d, i1] += lam
    return m


def _row_dup(H, h):
    """(H, h) nearest row-duplication: (R @ X)[r] = X[r // 2]."""
    m = np.zeros((H, h), np.float32)
    m[np.arange(H), np.arange(H) // 2] = 1.0
    return m


def _shift_rows(m, dy):
    """out[r] = m[r + dy - 1] if in range else 0 (zero padding row shift)."""
    out = np.zeros_like(m)
    H = m.shape[0]
    for r in range(H):
        rs = r + dy - 1
        if 0 <= rs < H:
            out[r] = m[rs]
    return out


def _col_dup(w, F):
    """(w*F, 2w*F) nearest column duplication in the lane-dense (W*F) layout."""
    W = 2 * w
    m = np.zeros((w * F, W * F), np.float32)
    eye = np.eye(F, dtype=np.float32)
    for wo in range(W):
        wi = wo // 2
        m[wi * F:(wi + 1) * F, wo * F:(wo + 1) * F] = eye
    return m


def _banded_conv(wk, W, c_in, c_out):
    """Banded matrices (3, W*c_in, W*c_out) folding pad + horizontal taps + channels.

    wk: (3, 3, c_in, c_out) HWIO.  For tap dy:
      (x_row @ K[dy])[wo*c_out + f] = sum_{dx, c} x_row[(wo+dx-1)*c_in + c] * wk[dy,dx,c,f]
    with out-of-range columns contributing zero (padding=1).
    """
    K = np.zeros((3, W * c_in, W * c_out), np.float32)
    for dy in range(3):
        for wo in range(W):
            for dx in range(3):
                wc = wo + dx - 1
                if 0 <= wc < W:
                    K[dy, wc * c_in:(wc + 1) * c_in,
                      wo * c_out:(wo + 1) * c_out] = wk[dy, dx]
    return K


def _fold_bn(p):
    """Fold eval-mode BN scale into the conv weight, return (folded_w, shift)."""
    w = np.asarray(p["w"], np.float32) * np.asarray(p["scale"], np.float32).reshape(1, 1, 1, -1)
    return w, np.asarray(p["shift"], np.float32).reshape(-1)


def _build_decoder_operands(params, feat, skip_hw, out_size):
    """Precompute all folded matrices the fused kernel consumes (numpy, host side)."""
    F = feat
    names = [("Up5", "Up_conv5"), ("Up4", "Up_conv4"),
             ("Up3", "Up_conv3"), ("Up2", "Up_conv2")]
    ops = []
    for si, (up_name, cb_name) in enumerate(names):
        h, H = skip_hw[si], skip_hw[si + 1]
        assert H == 2 * h, (h, H)
        W = H
        wu, bu = _fold_bn(params[up_name])     # (3,3,F,F), (F,)
        w2, b2 = _fold_bn(params[cb_name])     # (3,3,2F,F), (F,)

        R = _row_dup(H, h)
        Rst = np.stack([_shift_rows(R, dy) for dy in range(3)])             # (3, H, h)
        Cm = _col_dup(h, F)                                                 # (hF, WF)
        KU = _banded_conv(wu, W, F, F)                                      # (3, WF, WF)
        G = np.stack([Cm @ KU[dy] for dy in range(3)])                      # (3, hF, WF)
        Sst = np.stack([_shift_rows(np.eye(H, dtype=np.float32), dy)
                        for dy in range(3)])                                # (3, H, H)
        K2 = np.stack([_banded_conv(w2[:, :, :F, :], W, F, F),              # skip part
                       _banded_conv(w2[:, :, F:, :], W, F, F)])             # up part
        ops += [Rst, G, np.tile(bu, W).reshape(1, W * F),
                Sst, K2, np.tile(b2, W).reshape(1, W * F)]

    # Head: Conv2d(F -> 1, 1x1) folded into the bilinear column-resize (K = Wd*F).
    Hd, Wd = skip_hw[-1], skip_hw[-1]
    Hout, Wout = out_size
    A = _bilinear_matrix(Hout, Hd)                                          # (Hout, Hd)
    Bw = _bilinear_matrix(Wout, Wd)                                         # (Wout, Wd)
    cw = np.asarray(params["Conv"]["w"], np.float32).reshape(F)
    M = (Bw.T[:, None, :] * cw[None, :, None]).reshape(Wd * F, Wout).astype(np.float32)
    bh = np.asarray(params["Conv"]["b"], np.float32).reshape(1, 1)
    ops += [A, M, bh]
    return [jnp.asarray(o) for o in ops]


def _const_index_map(ndim):
    return lambda n: (0,) * ndim


# ----------------------------- forward -----------------------------

def _reduce_lane_dense(e, feat):
    # Network.reduce: torch.max(x.view(b, feat, c//feat, h, w), dim=2)[0]
    # (channel index c = f * g + j), then laid out lane-dense as (N, H, W*feat).
    # TODO(synk): assumes the encoder channel order matches the (feat, g) split of
    # the PyTorch view; a (g, feat) encoder ordering would need axis -2 instead.
    N, H, W, C = e.shape
    g = C // feat
    r = e.reshape(N, H, W, feat, g).max(axis=-1)
    return r.reshape(N, H, W * feat)


def network_forward(params, encoder, x_nchw, feat, phase="test"):
    # TODO(synk): BatchNorm is folded in eval mode (running stats); training-mode
    # batch statistics (module.train()) are not reproduced.
    del phase
    N, _, Hin, Win = x_nchw.shape
    x = jnp.transpose(x_nchw, (0, 2, 3, 1))            # NCHW -> NHWC

    e1, e2, e3, e4, e5 = encoder(x)

    # Group-max reduce + lane-dense layout: tiny XLA ops that fuse with the encoder
    # epilogue; everything downstream is ONE pallas_call.
    skips = [_reduce_lane_dense(e, feat) for e in (e5, e4, e3, e2, e1)]
    skip_hw = [s.shape[1] for s in skips]

    operands = _build_decoder_operands(params, feat, skip_hw, (Hin, Win))

    skip_specs = [pl.BlockSpec((1,) + s.shape[1:], lambda n: (n, 0, 0)) for s in skips]
    weight_specs = [pl.BlockSpec(o.shape, _const_index_map(o.ndim)) for o in operands]

    pred = pl.pallas_call(
        _fused_decoder_kernel,
        out_shape=jax.ShapeDtypeStruct((N, Hin, Win), jnp.float32),
        grid=(N,),
        in_specs=skip_specs + weight_specs,
        out_specs=pl.BlockSpec((1, Hin, Win), lambda n: (n, 0, 0)),
        compiler_params=pltpu.CompilerParams(dimension_semantics=("parallel",)),
    )(*skips, *operands)

    pred = pred[:, None, :, :]                          # back to NCHW (N, 1, H, W)
    return {"sal": [pred], "final": pred}


# ----------------------------- pure-JAX reference (correctness check) -----------------------------

def _reference_forward(params, encoder, x_nchw, feat):
    hp = jax.lax.Precision.HIGHEST
    x = jnp.transpose(x_nchw, (0, 2, 3, 1))
    feats = encoder(x)

    def reduce(e):
        N, H, W, C = e.shape
        return e.reshape(N, H, W, feat, C // feat).max(axis=-1)

    def conv_bn_relu(z, p):
        y = jax.lax.conv_general_dilated(z, p["w"], (1, 1), "SAME",
                                         dimension_numbers=("NHWC", "HWIO", "NHWC"),
                                         precision=hp)
        return jnp.maximum(y * p["scale"][0] + p["shift"][0], 0.0)

    def up2(z):
        return jnp.repeat(jnp.repeat(z, 2, axis=1), 2, axis=2)

    e1, e2, e3, e4, e5 = [reduce(e) for e in feats]
    d = conv_bn_relu(up2(e5), params["Up5"])
    d = conv_bn_relu(jnp.concatenate([e4, d], axis=-1), params["Up_conv5"])
    d = conv_bn_relu(up2(d), params["Up4"])
    d = conv_bn_relu(jnp.concatenate([e3, d], axis=-1), params["Up_conv4"])
    d = conv_bn_relu(up2(d), params["Up3"])
    d = conv_bn_relu(jnp.concatenate([e2, d], axis=-1), params["Up_conv3"])
    d = conv_bn_relu(up2(d), params["Up2"])
    d = conv_bn_relu(jnp.concatenate([e1, d], axis=-1), params["Up_conv2"])
    s = jnp.einsum("nhwc,c->nhw", d, params["Conv"]["w"], precision=hp) + params["Conv"]["b"][0]
    Hin, Win = x_nchw.shape[2:]
    A = jnp.asarray(_bilinear_matrix(Hin, d.shape[1]))
    B = jnp.asarray(_bilinear_matrix(Win, d.shape[2]))
    pred = jnp.einsum("Hh,nhw,Ww->nHW", A, s, B, precision=hp)
    return pred[:, None]


# ----------------------------- synthetic encoder & params -----------------------------

def _avgpool(x, k):
    N, H, W, C = x.shape
    return x.reshape(N, H // k, k, W // k, k, C).mean(axis=(2, 4))


def make_encoder(key, feat):
    """Synthetic deterministic encoder (the PyTorch module receives an external one)."""
    chans = [2 * feat, 2 * feat, 4 * feat, 4 * feat, 8 * feat]
    keys = jax.random.split(key, len(chans))
    projs = [0.5 * jax.random.normal(k, (3, c), jnp.float32)
             for k, c in zip(keys, chans)]

    def encoder(x_nhwc):
        feats = []
        for lvl, proj in enumerate(projs):
            xp = _avgpool(x_nhwc, 2 ** (lvl + 1))
            feats.append(jnp.einsum("nhwc,cd->nhwd", xp, proj))
        return feats  # e1 .. e5, NHWC, channel counts are multiples of feat

    return encoder


def _init_conv_bn(key, cin, cout):
    k1, k2, k3, k4, k5, k6 = jax.random.split(key, 6)
    w = jax.random.normal(k1, (3, 3, cin, cout), jnp.float32) / np.sqrt(9.0 * cin)
    b = 0.05 * jax.random.normal(k2, (cout,), jnp.float32)
    gamma = 1.0 + 0.1 * jax.random.normal(k3, (cout,), jnp.float32)
    beta = 0.1 * jax.random.normal(k4, (cout,), jnp.float32)
    mean = 0.1 * jax.random.normal(k5, (cout,), jnp.float32)
    var = 1.0 + 0.1 * jax.random.uniform(k6, (cout,), jnp.float32)
    eps = 1e-5
    scale = gamma / jnp.sqrt(var + eps)
    shift = beta - scale * mean + scale * b
    return {"w": w, "scale": scale.reshape(1, cout), "shift": shift.reshape(1, cout)}


def init_network_params(key, feat):
    names = ["Up5", "Up_conv5", "Up4", "Up_conv4",
             "Up3", "Up_conv3", "Up2", "Up_conv2"]
    cins = [feat, 2 * feat, feat, 2 * feat, feat, 2 * feat, feat, 2 * feat]
    keys = jax.random.split(key, len(names) + 1)
    params = {n: _init_conv_bn(k, cin, feat)
              for n, cin, k in zip(names, cins, keys[:-1])}
    kw, kb = jax.random.split(keys[-1])
    params["Conv"] = {
        "w": jax.random.normal(kw, (feat,), jnp.float32) / np.sqrt(feat),
        "b": 0.05 * jax.random.normal(kb, (1,), jnp.float32),
    }
    return params


# ----------------------------- main -----------------------------

if __name__ == "__main__":
    key = jax.random.PRNGKey(0)
    kx, kenc, kparams = jax.random.split(key, 3)

    N, C_in, H, W = 2, 3, 32, 32   # 32x32 so all 5 encoder levels (stride 2..32) exist
    feat = 8                       # Network(config, encoder, feat=[8])

    x = jax.random.normal(kx, (N, C_in, H, W), jnp.float32)
    encoder = make_encoder(kenc, feat)
    params = init_network_params(kparams, feat)

    out = network_forward(params, encoder, x, feat, phase="test")
    pred = jax.block_until_ready(out["final"])

    assert pred.shape == (N, 1, H, W), pred.shape
    assert out["sal"][0].shape == (N, 1, H, W)
    assert bool(jnp.all(jnp.isfinite(pred)))

    ref = jax.block_until_ready(_reference_forward(params, encoder, x, feat))
    max_err = float(jnp.max(jnp.abs(pred - ref)))
    assert max_err < 2e-2, f"kernel vs reference mismatch: {max_err}"

    print("KERNEL_OK")
</pallas_src>

<mosaic_0001>
module attributes {stable_mosaic.version = 11 : i64} {
  func.func @_fused_decoder_kernel(%arg0: i32, %arg1: memref<1x1x8xf32, #tpu.memory_space<vmem>>, %arg2: memref<1x2x16xf32, #tpu.memory_space<vmem>>, %arg3: memref<1x4x32xf32, #tpu.memory_space<vmem>>, %arg4: memref<1x8x64xf32, #tpu.memory_space<vmem>>, %arg5: memref<1x16x128xf32, #tpu.memory_space<vmem>>, %arg6: memref<3x2x1xf32, #tpu.memory_space<vmem>>, %arg7: memref<3x8x16xf32, #tpu.memory_space<vmem>>, %arg8: memref<1x16xf32, #tpu.memory_space<vmem>>, %arg9: memref<3x2x2xf32, #tpu.memory_space<vmem>>, %arg10: memref<2x3x16x16xf32, #tpu.memory_space<vmem>>, %arg11: memref<1x16xf32, #tpu.memory_space<vmem>>, %arg12: memref<3x4x2xf32, #tpu.memory_space<vmem>>, %arg13: memref<3x16x32xf32, #tpu.memory_space<vmem>>, %arg14: memref<1x32xf32, #tpu.memory_space<vmem>>, %arg15: memref<3x4x4xf32, #tpu.memory_space<vmem>>, %arg16: memref<2x3x32x32xf32, #tpu.memory_space<vmem>>, %arg17: memref<1x32xf32, #tpu.memory_space<vmem>>, %arg18: memref<3x8x4xf32, #tpu.memory_space<vmem>>, %arg19: memref<3x32x64xf32, #tpu.memory_space<vmem>>, %arg20: memref<1x64xf32, #tpu.memory_space<vmem>>, %arg21: memref<3x8x8xf32, #tpu.memory_space<vmem>>, %arg22: memref<2x3x64x64xf32, #tpu.memory_space<vmem>>, %arg23: memref<1x64xf32, #tpu.memory_space<vmem>>, %arg24: memref<3x16x8xf32, #tpu.memory_space<vmem>>, %arg25: memref<3x64x128xf32, #tpu.memory_space<vmem>>, %arg26: memref<1x128xf32, #tpu.memory_space<vmem>>, %arg27: memref<3x16x16xf32, #tpu.memory_space<vmem>>, %arg28: memref<2x3x128x128xf32, #tpu.memory_space<vmem>>, %arg29: memref<1x128xf32, #tpu.memory_space<vmem>>, %arg30: memref<32x16xf32, #tpu.memory_space<vmem>>, %arg31: memref<128x32xf32, #tpu.memory_space<vmem>>, %arg32: memref<1x1xf32, #tpu.memory_space<vmem>>, %arg33: memref<1x32x32xf32, #tpu.memory_space<vmem>>) attributes {dimension_semantics = [#tpu.dimension_semantics<parallel>], iteration_bounds = array<i64: 2>, scalar_prefetch = 0 : i64, scratch_operands = 0 : i64, tpu.core_type = #tpu.core_type<tc>, window_params = [{transform_indices = @transform_0, window_bounds = array<i64: 1, 1, 8>}, {transform_indices = @transform_1, window_bounds = array<i64: 1, 2, 16>}, {transform_indices = @transform_2, window_bounds = array<i64: 1, 4, 32>}, {transform_indices = @transform_3, window_bounds = array<i64: 1, 8, 64>}, {transform_indices = @transform_4, window_bounds = array<i64: 1, 16, 128>}, {pipeline_mode = #tpu.pipeline_mode<synchronous>, transform_indices = @transform_5, window_bounds = array<i64: 3, 2, 1>}, {pipeline_mode = #tpu.pipeline_mode<synchronous>, transform_indices = @transform_6, window_bounds = array<i64: 3, 8, 16>}, {pipeline_mode = #tpu.pipeline_mode<synchronous>, transform_indices = @transform_7, window_bounds = array<i64: 1, 16>}, {pipeline_mode = #tpu.pipeline_mode<synchronous>, transform_indices = @transform_8, window_bounds = array<i64: 3, 2, 2>}, {pipeline_mode = #tpu.pipeline_mode<synchronous>, transform_indices = @transform_9, window_bounds = array<i64: 2, 3, 16, 16>}, {pipeline_mode = #tpu.pipeline_mode<synchronous>, transform_indices = @transform_10, window_bounds = array<i64: 1, 16>}, {pipeline_mode = #tpu.pipeline_mode<synchronous>, transform_indices = @transform_11, window_bounds = array<i64: 3, 4, 2>}, {pipeline_mode = #tpu.pipeline_mode<synchronous>, transform_indices = @transform_12, window_bounds = array<i64: 3, 16, 32>}, {pipeline_mode = #tpu.pipeline_mode<synchronous>, transform_indices = @transform_13, window_bounds = array<i64: 1, 32>}, {pipeline_mode = #tpu.pipeline_mode<synchronous>, transform_indices = @transform_14, window_bounds = array<i64: 3, 4, 4>}, {pipeline_mode = #tpu.pipeline_mode<synchronous>, transform_indices = @transform_15, window_bounds = array<i64: 2, 3, 32, 32>}, {pipeline_mode = #tpu.pipeline_mode<synchronous>, transform_indices = @transform_16, window_bounds = array<i64: 1, 32>}, {pipeline_mode = #tpu.pipeline_mode<synchronous>, transform_indices = @transform_17, window_bounds = array<i64: 3, 8, 4>}, {pipeline_mode = #tpu.pipeline_mode<synchronous>, transform_indices = @transform_18, window_bounds = array<i64: 3, 32, 64>}, {pipeline_mode = #tpu.pipeline_mode<synchronous>, transform_indices = @transform_19, window_bounds = array<i64: 1, 64>}, {pipeline_mode = #tpu.pipeline_mode<synchronous>, transform_indices = @transform_20, window_bounds = array<i64: 3, 8, 8>}, {pipeline_mode = #tpu.pipeline_mode<synchronous>, transform_indices = @transform_21, window_bounds = array<i64: 2, 3, 64, 64>}, {pipeline_mode = #tpu.pipeline_mode<synchronous>, transform_indices = @transform_22, window_bounds = array<i64: 1, 64>}, {pipeline_mode = #tpu.pipeline_mode<synchronous>, transform_indices = @transform_23, window_bounds = array<i64: 3, 16, 8>}, {pipeline_mode = #tpu.pipeline_mode<synchronous>, transform_indices = @transform_24, window_bounds = array<i64: 3, 64, 128>}, {pipeline_mode = #tpu.pipeline_mode<synchronous>, transform_indices = @transform_25, window_bounds = array<i64: 1, 128>}, {pipeline_mode = #tpu.pipeline_mode<synchronous>, transform_indices = @transform_26, window_bounds = array<i64: 3, 16, 16>}, {pipeline_mode = #tpu.pipeline_mode<synchronous>, transform_indices = @transform_27, window_bounds = array<i64: 2, 3, 128, 128>}, {pipeline_mode = #tpu.pipeline_mode<synchronous>, transform_indices = @transform_28, window_bounds = array<i64: 1, 128>}, {pipeline_mode = #tpu.pipeline_mode<synchronous>, transform_indices = @transform_29, window_bounds = array<i64: 32, 16>}, {pipeline_mode = #tpu.pipeline_mode<synchronous>, transform_indices = @transform_30, window_bounds = array<i64: 128, 32>}, {pipeline_mode = #tpu.pipeline_mode<synchronous>, transform_indices = @transform_31, window_bounds = array<i64: 1, 1>}, {transform_indices = @transform_32, window_bounds = array<i64: 1, 32, 32>}]} {
    %c0 = arith.constant 0 : index
    %c0_0 = arith.constant 0 : index
    %c0_1 = arith.constant 0 : index
    %0 = vector.load %arg1[%c0, %c0_0, %c0_1] : memref<1x1x8xf32, #tpu.memory_space<vmem>>, vector<1x1x8xf32>
    %1 = vector.shape_cast %0 : vector<1x1x8xf32> to vector<1x8xf32>
    %c0_2 = arith.constant 0 : index
    %c0_3 = arith.constant 0 : index
    %c0_4 = arith.constant 0 : index
    %2 = vector.load %arg2[%c0_2, %c0_3, %c0_4] : memref<1x2x16xf32, #tpu.memory_space<vmem>>, vector<1x2x16xf32>
    %3 = vector.shape_cast %2 : vector<1x2x16xf32> to vector<2x16xf32>
    %c0_5 = arith.constant 0 : index
    %c0_6 = arith.constant 0 : index
    %c0_7 = arith.constant 0 : index
    %4 = vector.load %arg6[%c0_5, %c0_6, %c0_7] : memref<3x2x1xf32, #tpu.memory_space<vmem>>, vector<1x2x1xf32>
    %5 = vector.shape_cast %4 : vector<1x2x1xf32> to vector<2x1xf32>
    %6 = vector.broadcast %5 : vector<2x1xf32> to vector<2x8xf32>
    %7 = vector.broadcast %1 : vector<1x8xf32> to vector<2x8xf32>
    %8 = arith.mulf %6, %7 : vector<2x8xf32>
    %c0_8 = arith.constant 0 : index
    %c0_9 = arith.constant 0 : index
    %c0_10 = arith.constant 0 : index
    %9 = vector.load %arg7[%c0_8, %c0_9, %c0_10] : memref<3x8x16xf32, #tpu.memory_space<vmem>>, vector<1x8x16xf32>
    %10 = vector.shape_cast %9 : vector<1x8x16xf32> to vector<8x16xf32>
    %cst = arith.constant dense<0.000000e+00> : vector<2x16xf32>
    %11 = tpu.matmul %8, %10, %cst {dimension_numbers = #tpu.dot_dimension_numbers<[1], [0], [0], [1], [0, 0, 1, 1], [], []>} : vector<2x8xf32>, vector<8x16xf32>, vector<2x16xf32> -> vector<2x16xf32>
    %c1 = arith.constant 1 : index
    %c0_11 = arith.constant 0 : index
    %c0_12 = arith.constant 0 : index
    %12 = vector.load %arg6[%c1, %c0_11, %c0_12] : memref<3x2x1xf32, #tpu.memory_space<vmem>>, vector<1x2x1xf32>
    %13 = vector.shape_cast %12 : vector<1x2x1xf32> to vector<2x1xf32>
    %14 = vector.broadcast %13 : vector<2x1xf32> to vector<2x8xf32>
    %15 = vector.broadcast %1 : vector<1x8xf32> to vector<2x8xf32>
    %16 = arith.mulf %14, %15 : vector<2x8xf32>
    %c1_13 = arith.constant 1 : index
    %c0_14 = arith.constant 0 : index
    %c0_15 = arith.constant 0 : index
    %17 = vector.load %arg7[%c1_13, %c0_14, %c0_15] : memref<3x8x16xf32, #tpu.memory_space<vmem>>, vector<1x8x16xf32>
    %18 = vector.shape_cast %17 : vector<1x8x16xf32> to vector<8x16xf32>
    %cst_16 = arith.constant dense<0.000000e+00> : vector<2x16xf32>
    %19 = tpu.matmul %16, %18, %cst_16 {dimension_numbers = #tpu.dot_dimension_numbers<[1], [0], [0], [1], [0, 0, 1, 1], [], []>} : vector<2x8xf32>, vector<8x16xf32>, vector<2x16xf32> -> vector<2x16xf32>
    %20 = arith.addf %11, %19 : vector<2x16xf32>
    %c2 = arith.constant 2 : index
    %c0_17 = arith.constant 0 : index
    %c0_18 = arith.constant 0 : index
    %21 = vector.load %arg6[%c2, %c0_17, %c0_18] : memref<3x2x1xf32, #tpu.memory_space<vmem>>, vector<1x2x1xf32>
    %22 = vector.shape_cast %21 : vector<1x2x1xf32> to vector<2x1xf32>
    %23 = vector.broadcast %22 : vector<2x1xf32> to vector<2x8xf32>
    %24 = vector.broadcast %1 : vector<1x8xf32> to vector<2x8xf32>
    %25 = arith.mulf %23, %24 : vector<2x8xf32>
    %c2_19 = arith.constant 2 : index
    %c0_20 = arith.constant 0 : index
    %c0_21 = arith.constant 0 : index
    %26 = vector.load %arg7[%c2_19, %c0_20, %c0_21] : memref<3x8x16xf32, #tpu.memory_space<vmem>>, vector<1x8x16xf32>
    %27 = vector.shape_cast %26 : vector<1x8x16xf32> to vector<8x16xf32>
    %cst_22 = arith.constant dense<0.000000e+00> : vector<2x16xf32>
    %28 = tpu.matmul %25, %27, %cst_22 {dimension_numbers = #tpu.dot_dimension_numbers<[1], [0], [0], [1], [0, 0, 1, 1], [], []>} : vector<2x8xf32>, vector<8x16xf32>, vector<2x16xf32> -> vector<2x16xf32>
    %29 = arith.addf %20, %28 : vector<2x16xf32>
    %c0_23 = arith.constant 0 : index
    %c0_24 = arith.constant 0 : index
    %30 = vector.load %arg8[%c0_23, %c0_24] : memref<1x16xf32, #tpu.memory_space<vmem>>, vector<1x16xf32>
    %31 = vector.broadcast %30 : vector<1x16xf32> to vector<2x16xf32>
    %32 = arith.addf %29, %31 : vector<2x16xf32>
    %cst_25 = arith.constant 0.000000e+00 : f32
    %33 = vector.broadcast %cst_25 : f32 to vector<2x16xf32>
    %34 = arith.maximumf %32, %33 : vector<2x16xf32>
    %c0_26 = arith.constant 0 : index
    %c0_27 = arith.constant 0 : index
    %c0_28 = arith.constant 0 : index
    %c0_29 = arith.constant 0 : index
    %35 = vector.load %arg10[%c0_26, %c0_27, %c0_28, %c0_29] : memref<2x3x16x16xf32, #tpu.memory_space<vmem>>, vector<1x1x16x16xf32>
    %36 = vector.shape_cast %35 : vector<1x1x16x16xf32> to vector<16x16xf32>
    %cst_30 = arith.constant dense<0.000000e+00> : vector<2x16xf32>
    %37 = tpu.matmul %3, %36, %cst_30 {dimension_numbers = #tpu.dot_dimension_numbers<[1], [0], [0], [1], [0, 0, 1, 1], [], []>} : vector<2x16xf32>, vector<16x16xf32>, vector<2x16xf32> -> vector<2x16xf32>
    %c1_31 = arith.constant 1 : index
    %c0_32 = arith.constant 0 : index
    %c0_33 = arith.constant 0 : index
    %c0_34 = arith.constant 0 : index
    %38 = vector.load %arg10[%c1_31, %c0_32, %c0_33, %c0_34] : memref<2x3x16x16xf32, #tpu.memory_space<vmem>>, vector<1x1x16x16xf32>
    %39 = vector.shape_cast %38 : vector<1x1x16x16xf32> to vector<16x16xf32>
    %cst_35 = arith.constant dense<0.000000e+00> : vector<2x16xf32>
    %40 = tpu.matmul %34, %39, %cst_35 {dimension_numbers = #tpu.dot_dimension_numbers<[1], [0], [0], [1], [0, 0, 1, 1], [], []>} : vector<2x16xf32>, vector<16x16xf32>, vector<2x16xf32> -> vector<2x16xf32>
    %41 = arith.addf %37, %40 : vector<2x16xf32>
    %c0_36 = arith.constant 0 : index
    %c0_37 = arith.constant 0 : index
    %c0_38 = arith.constant 0 : index
    %42 = vector.load %arg9[%c0_36, %c0_37, %c0_38] : memref<3x2x2xf32, #tpu.memory_space<vmem>>, vector<1x2x2xf32>
    %43 = vector.shape_cast %42 : vector<1x2x2xf32> to vector<2x2xf32>
    %cst_39 = arith.constant dense<0.000000e+00> : vector<2x16xf32>
    %44 = tpu.matmul %43, %41, %cst_39 {dimension_numbers = #tpu.dot_dimension_numbers<[1], [0], [0], [1], [0, 0, 1, 1], [], []>} : vector<2x2xf32>, vector<2x16xf32>, vector<2x16xf32> -> vector<2x16xf32>
    %c0_40 = arith.constant 0 : index
    %c1_41 = arith.constant 1 : index
    %c0_42 = arith.constant 0 : index
    %c0_43 = arith.constant 0 : index
    %45 = vector.load %arg10[%c0_40, %c1_41, %c0_42, %c0_43] : memref<2x3x16x16xf32, #tpu.memory_space<vmem>>, vector<1x1x16x16xf32>
    %46 = vector.shape_cast %45 : vector<1x1x16x16xf32> to vector<16x16xf32>
    %cst_44 = arith.constant dense<0.000000e+00> : vector<2x16xf32>
    %47 = tpu.matmul %3, %46, %cst_44 {dimension_numbers = #tpu.dot_dimension_numbers<[1], [0], [0], [1], [0, 0, 1, 1], [], []>} : vector<2x16xf32>, vector<16x16xf32>, vector<2x16xf32> -> vector<2x16xf32>
    %c1_45 = arith.constant 1 : index
    %c1_46 = arith.constant 1 : index
    %c0_47 = arith.constant 0 : index
    %c0_48 = arith.constant 0 : index
    %48 = vector.load %arg10[%c1_45, %c1_46, %c0_47, %c0_48] : memref<2x3x16x16xf32, #tpu.memory_space<vmem>>, vector<1x1x16x16xf32>
    %49 = vector.shape_cast %48 : vector<1x1x16x16xf32> to vector<16x16xf32>
    %cst_49 = arith.constant dense<0.000000e+00> : vector<2x16xf32>
    %50 = tpu.matmul %34, %49, %cst_49 {dimension_numbers = #tpu.dot_dimension_numbers<[1], [0], [0], [1], [0, 0, 1, 1], [], []>} : vector<2x16xf32>, vector<16x16xf32>, vector<2x16xf32> -> vector<2x16xf32>
    %51 = arith.addf %47, %50 : vector<2x16xf32>
    %c1_50 = arith.constant 1 : index
    %c0_51 = arith.constant 0 : index
    %c0_52 = arith.constant 0 : index
    %52 = vector.load %arg9[%c1_50, %c0_51, %c0_52] : memref<3x2x2xf32, #tpu.memory_space<vmem>>, vector<1x2x2xf32>
    %53 = vector.shape_cast %52 : vector<1x2x2xf32> to vector<2x2xf32>
    %cst_53 = arith.constant dense<0.000000e+00> : vector<2x16xf32>
    %54 = tpu.matmul %53, %51, %cst_53 {dimension_numbers = #tpu.dot_dimension_numbers<[1], [0], [0], [1], [0, 0, 1, 1], [], []>} : vector<2x2xf32>, vector<2x16xf32>, vector<2x16xf32> -> vector<2x16xf32>
    %55 = arith.addf %44, %54 : vector<2x16xf32>
    %c0_54 = arith.constant 0 : index
    %c2_55 = arith.constant 2 : index
    %c0_56 = arith.constant 0 : index
    %c0_57 = arith.constant 0 : index
    %56 = vector.load %arg10[%c0_54, %c2_55, %c0_56, %c0_57] : memref<2x3x16x16xf32, #tpu.memory_space<vmem>>, vector<1x1x16x16xf32>
    %57 = vector.shape_cast %56 : vector<1x1x16x16xf32> to vector<16x16xf32>
    %cst_58 = arith.constant dense<0.000000e+00> : vector<2x16xf32>
    %58 = tpu.matmul %3, %57, %cst_58 {dimension_numbers = #tpu.dot_dimension_numbers<[1], [0], [0], [1], [0, 0, 1, 1], [], []>} : vector<2x16xf32>, vector<16x16xf32>, vector<2x16xf32> -> vector<2x16xf32>
    %c1_59 = arith.constant 1 : index
    %c2_60 = arith.constant 2 : index
    %c0_61 = arith.constant 0 : index
    %c0_62 = arith.constant 0 : index
    %59 = vector.load %arg10[%c1_59, %c2_60, %c0_61, %c0_62] : memref<2x3x16x16xf32, #tpu.memory_space<vmem>>, vector<1x1x16x16xf32>
    %60 = vector.shape_cast %59 : vector<1x1x16x16xf32> to vector<16x16xf32>
    %cst_63 = arith.constant dense<0.000000e+00> : vector<2x16xf32>
    %61 = tpu.matmul %34, %60, %cst_63 {dimension_numbers = #tpu.dot_dimension_numbers<[1], [0], [0], [1], [0, 0, 1, 1], [], []>} : vector<2x16xf32>, vector<16x16xf32>, vector<2x16xf32> -> vector<2x16xf32>
    %62 = arith.addf %58, %61 : vector<2x16xf32>
    %c2_64 = arith.constant 2 : index
    %c0_65 = arith.constant 0 : index
    %c0_66 = arith.constant 0 : index
    %63 = vector.load %arg9[%c2_64, %c0_65, %c0_66] : memref<3x2x2xf32, #tpu.memory_space<vmem>>, vector<1x2x2xf32>
    %64 = vector.shape_cast %63 : vector<1x2x2xf32> to vector<2x2xf32>
    %cst_67 = arith.constant dense<0.000000e+00> : vector<2x16xf32>
    %65 = tpu.matmul %64, %62, %cst_67 {dimension_numbers = #tpu.dot_dimension_numbers<[1], [0], [0], [1], [0, 0, 1, 1], [], []>} : vector<2x2xf32>, vector<2x16xf32>, vector<2x16xf32> -> vector<2x16xf32>
    %66 = arith.addf %55, %65 : vector<2x16xf32>
    %c0_68 = arith.constant 0 : index
    %c0_69 = arith.constant 0 : index
    %67 = vector.load %arg11[%c0_68, %c0_69] : memref<1x16xf32, #tpu.memory_space<vmem>>, vector<1x16xf32>
    %68 = vector.broadcast %67 : vector<1x16xf32> to vector<2x16xf32>
    %69 = arith.addf %66, %68 : vector<2x16xf32>
    %cst_70 = arith.constant 0.000000e+00 : f32
    %70 = vector.broadcast %cst_70 : f32 to vector<2x16xf32>
    %71 = arith.maximumf %69, %70 : vector<2x16xf32>
    %c0_71 = arith.constant 0 : index
    %c0_72 = arith.constant 0 : index
    %c0_73 = arith.constant 0 : index
    %72 = vector.load %arg3[%c0_71, %c0_72, %c0_73] : memref<1x4x32xf32, #tpu.memory_space<vmem>>, vector<1x4x32xf32>
    %73 = vector.shape_cast %72 : vector<1x4x32xf32> to vector<4x32xf32>
    %c0_74 = arith.constant 0 : index
    %c0_75 = arith.constant 0 : index
    %c0_76 = arith.constant 0 : index
    %74 = vector.load %arg12[%c0_74, %c0_75, %c0_76] : memref<3x4x2xf32, #tpu.memory_space<vmem>>, vector<1x4x2xf32>
    %75 = vector.shape_cast %74 : vector<1x4x2xf32> to vector<4x2xf32>
    %cst_77 = arith.constant dense<0.000000e+00> : vector<4x16xf32>
    %76 = tpu.matmul %75, %71, %cst_77 {dimension_numbers = #tpu.dot_dimension_numbers<[1], [0], [0], [1], [0, 0, 1, 1], [], []>} : vector<4x2xf32>, vector<2x16xf32>, vector<4x16xf32> -> vector<4x16xf32>
    %c0_78 = arith.constant 0 : index
    %c0_79 = arith.constant 0 : index
    %c0_80 = arith.constant 0 : index
    %77 = vector.load %arg13[%c0_78, %c0_79, %c0_80] : memref<3x16x32xf32, #tpu.memory_space<vmem>>, vector<1x16x32xf32>
    %78 = vector.shape_cast %77 : vector<1x16x32xf32> to vector<16x32xf32>
    %cst_81 = arith.constant dense<0.000000e+00> : vector<4x32xf32>
    %79 = tpu.matmul %76, %78, %cst_81 {dimension_numbers = #tpu.dot_dimension_numbers<[1], [0], [0], [1], [0, 0, 1, 1], [], []>} : vector<4x16xf32>, vector<16x32xf32>, vector<4x32xf32> -> vector<4x32xf32>
    %c1_82 = arith.constant 1 : index
    %c0_83 = arith.constant 0 : index
    %c0_84 = arith.constant 0 : index
    %80 = vector.load %arg12[%c1_82, %c0_83, %c0_84] : memref<3x4x2xf32, #tpu.memory_space<vmem>>, vector<1x4x2xf32>
    %81 = vector.shape_cast %80 : vector<1x4x2xf32> to vector<4x2xf32>
    %cst_85 = arith.constant dense<0.000000e+00> : vector<4x16xf32>
    %82 = tpu.matmul %81, %71, %cst_85 {dimension_numbers = #tpu.dot_dimension_numbers<[1], [0], [0], [1], [0, 0, 1, 1], [], []>} : vector<4x2xf32>, vector<2x16xf32>, vector<4x16xf32> -> vector<4x16xf32>
    %c1_86 = arith.constant 1 : index
    %c0_87 = arith.constant 0 : index
    %c0_88 = arith.constant 0 : index
    %83 = vector.load %arg13[%c1_86, %c0_87, %c0_88] : memref<3x16x32xf32, #tpu.memory_space<vmem>>, vector<1x16x32xf32>
    %84 = vector.shape_cast %83 : vector<1x16x32xf32> to vector<16x32xf32>
    %cst_89 = arith.constant dense<0.000000e+00> : vector<4x32xf32>
    %85 = tpu.matmul %82, %84, %cst_89 {dimension_numbers = #tpu.dot_dimension_numbers<[1], [0], [0], [1], [0, 0, 1, 1], [], []>} : vector<4x16xf32>, vector<16x32xf32>, vector<4x32xf32> -> vector<4x32xf32>
    %86 = arith.addf %79, %85 : vector<4x32xf32>
    %c2_90 = arith.constant 2 : index
    %c0_91 = arith.constant 0 : index
    %c0_92 = arith.constant 0 : index
    %87 = vector.load %arg12[%c2_90, %c0_91, %c0_92] : memref<3x4x2xf32, #tpu.memory_space<vmem>>, vector<1x4x2xf32>
    %88 = vector.shape_cast %87 : vector<1x4x2xf32> to vector<4x2xf32>
    %cst_93 = arith.constant dense<0.000000e+00> : vector<4x16xf32>
    %89 = tpu.matmul %88, %71, %cst_93 {dimension_numbers = #tpu.dot_dimension_numbers<[1], [0], [0], [1], [0, 0, 1, 1], [], []>} : vector<4x2xf32>, vector<2x16xf32>, vector<4x16xf32> -> vector<4x16xf32>
    %c2_94 = arith.constant 2 : index
    %c0_95 = arith.constant 0 : index
    %c0_96 = arith.constant 0 : index
    %90 = vector.load %arg13[%c2_94, %c0_95, %c0_96] : memref<3x16x32xf32, #tpu.memory_space<vmem>>, vector<1x16x32xf32>
    %91 = vector.shape_cast %90 : vector<1x16x32xf32> to vector<16x32xf32>
    %cst_97 = arith.constant dense<0.000000e+00> : vector<4x32xf32>
    %92 = tpu.matmul %89, %91, %cst_97 {dimension_numbers = #tpu.dot_dimension_numbers<[1], [0], [0], [1], [0, 0, 1, 1], [], []>} : vector<4x16xf32>, vector<16x32xf32>, vector<4x32xf32> -> vector<4x32xf32>
    %93 = arith.addf %86, %92 : vector<4x32xf32>
    %c0_98 = arith.constant 0 : index
    %c0_99 = arith.constant 0 : index
    %94 = vector.load %arg14[%c0_98, %c0_99] : memref<1x32xf32, #tpu.memory_space<vmem>>, vector<1x32xf32>
    %95 = vector.broadcast %94 : vector<1x32xf32> to vector<4x32xf32>
    %96 = arith.addf %93, %95 : vector<4x32xf32>
    %cst_100 = arith.constant 0.000000e+00 : f32
    %97 = vector.broadcast %cst_100 : f32 to vector<4x32xf32>
    %98 = arith.maximumf %96, %97 : vector<4x32xf32>
    %c0_101 = arith.constant 0 : index
    %c0_102 = arith.constant 0 : index
    %c0_103 = arith.constant 0 : index
    %c0_104 = arith.constant 0 : index
    %99 = vector.load %arg16[%c0_101, %c0_102, %c0_103, %c0_104] : memref<2x3x32x32xf32, #tpu.memory_space<vmem>>, vector<1x1x32x32xf32>
    %100 = vector.shape_cast %99 : vector<1x1x32x32xf32> to vector<32x32xf32>
    %cst_105 = arith.constant dense<0.000000e+00> : vector<4x32xf32>
    %101 = tpu.matmul %73, %100, %cst_105 {dimension_numbers = #tpu.dot_dimension_numbers<[1], [0], [0], [1], [0, 0, 1, 1], [], []>} : vector<4x32xf32>, vector<32x32xf32>, vector<4x32xf32> -> vector<4x32xf32>
    %c1_106 = arith.constant 1 : index
    %c0_107 = arith.constant 0 : index
    %c0_108 = arith.constant 0 : index
    %c0_109 = arith.constant 0 : index
    %102 = vector.load %arg16[%c1_106, %c0_107, %c0_108, %c0_109] : memref<2x3x32x32xf32, #tpu.memory_space<vmem>>, vector<1x1x32x32xf32>
    %103 = vector.shape_cast %102 : vector<1x1x32x32xf32> to vector<32x32xf32>
    %cst_110 = arith.constant dense<0.000000e+00> : vector<4x32xf32>
    %104 = tpu.matmul %98, %103, %cst_110 {dimension_numbers = #tpu.dot_dimension_numbers<[1], [0], [0], [1], [0, 0, 1, 1], [], []>} : vector<4x32xf32>, vector<32x32xf32>, vector<4x32xf32> -> vector<4x32xf32>
    %105 = arith.addf %101, %104 : vector<4x32xf32>
    %c0_111 = arith.constant 0 : index
    %c0_112 = arith.constant 0 : index
    %c0_113 = arith.constant 0 : index
    %106 = vector.load %arg15[%c0_111, %c0_112, %c0_113] : memref<3x4x4xf32, #tpu.memory_space<vmem>>, vector<1x4x4xf32>
    %107 = vector.shape_cast %106 : vector<1x4x4xf32> to vector<4x4xf32>
    %cst_114 = arith.constant dense<0.000000e+00> : vector<4x32xf32>
    %108 = tpu.matmul %107, %105, %cst_114 {dimension_numbers = #tpu.dot_dimension_numbers<[1], [0], [0], [1], [0, 0, 1, 1], [], []>} : vector<4x4xf32>, vector<4x32xf32>, vector<4x32xf32> -> vector<4x32xf32>
    %c0_115 = arith.constant 0 : index
    %c1_116 = arith.constant 1 : index
    %c0_117 = arith.constant 0 : index
    %c0_118 = arith.constant 0 : index
    %109 = vector.load %arg16[%c0_115, %c1_116, %c0_117, %c0_118] : memref<2x3x32x32xf32, #tpu.memory_space<vmem>>, vector<1x1x32x32xf32>
    %110 = vector.shape_cast %109 : vector<1x1x32x32xf32> to vector<32x32xf32>
    %cst_119 = arith.constant dense<0.000000e+00> : vector<4x32xf32>
    %111 = tpu.matmul %73, %110, %cst_119 {dimension_numbers = #tpu.dot_dimension_numbers<[1], [0], [0], [1], [0, 0, 1, 1], [], []>} : vector<4x32xf32>, vector<32x32xf32>, vector<4x32xf32> -> vector<4x32xf32>
    %c1_120 = arith.constant 1 : index
    %c1_121 = arith.constant 1 : index
    %c0_122 = arith.constant 0 : index
    %c0_123 = arith.constant 0 : index
    %112 = vector.load %arg16[%c1_120, %c1_121, %c0_122, %c0_123] : memref<2x3x32x32xf32, #tpu.memory_space<vmem>>, vector<1x1x32x32xf32>
    %113 = vector.shape_cast %112 : vector<1x1x32x32xf32> to vector<32x32xf32>
    %cst_124 = arith.constant dense<0.000000e+00> : vector<4x32xf32>
    %114 = tpu.matmul %98, %113, %cst_124 {dimension_numbers = #tpu.dot_dimension_numbers<[1], [0], [0], [1], [0, 0, 1, 1], [], []>} : vector<4x32xf32>, vector<32x32xf32>, vector<4x32xf32> -> vector<4x32xf32>
    %115 = arith.addf %111, %114 : vector<4x32xf32>
    %c1_125 = arith.constant 1 : index
    %c0_126 = arith.constant 0 : index
    %c0_127 = arith.constant 0 : index
    %116 = vector.load %arg15[%c1_125, %c0_126, %c0_127] : memref<3x4x4xf32, #tpu.memory_space<vmem>>, vector<1x4x4xf32>
    %117 = vector.shape_cast %116 : vector<1x4x4xf32> to vector<4x4xf32>
    %cst_128 = arith.constant dense<0.000000e+00> : vector<4x32xf32>
    %118 = tpu.matmul %117, %115, %cst_128 {dimension_numbers = #tpu.dot_dimension_numbers<[1], [0], [0], [1], [0, 0, 1, 1], [], []>} : vector<4x4xf32>, vector<4x32xf32>, vector<4x32xf32> -> vector<4x32xf32>
    %119 = arith.addf %108, %118 : vector<4x32xf32>
    %c0_129 = arith.constant 0 : index
    %c2_130 = arith.constant 2 : index
    %c0_131 = arith.constant 0 : index
    %c0_132 = arith.constant 0 : index
    %120 = vector.load %arg16[%c0_129, %c2_130, %c0_131, %c0_132] : memref<2x3x32x32xf32, #tpu.memory_space<vmem>>, vector<1x1x32x32xf32>
    %121 = vector.shape_cast %120 : vector<1x1x32x32xf32> to vector<32x32xf32>
    %cst_133 = arith.constant dense<0.000000e+00> : vector<4x32xf32>
    %122 = tpu.matmul %73, %121, %cst_133 {dimension_numbers = #tpu.dot_dimension_numbers<[1], [0], [0], [1], [0, 0, 1, 1], [], []>} : vector<4x32xf32>, vector<32x32xf32>, vector<4x32xf32> -> vector<4x32xf32>
    %c1_134 = arith.constant 1 : index
    %c2_135 = arith.constant 2 : index
    %c0_136 = arith.constant 0 : index
    %c0_137 = arith.constant 0 : index
    %123 = vector.load %arg16[%c1_134, %c2_135, %c0_136, %c0_137] : memref<2x3x32x32xf32, #tpu.memory_space<vmem>>, vector<1x1x32x32xf32>
    %124 = vector.shape_cast %123 : vector<1x1x32x32xf32> to vector<32x32xf32>
    %cst_138 = arith.constant dense<0.000000e+00> : vector<4x32xf32>
    %125 = tpu.matmul %98, %124, %cst_138 {dimension_numbers = #tpu.dot_dimension_numbers<[1], [0], [0], [1], [0, 0, 1, 1], [], []>} : vector<4x32xf32>, vector<32x32xf32>, vector<4x32xf32> -> vector<4x32xf32>
    %126 = arith.addf %122, %125 : vector<4x32xf32>
    %c2_139 = arith.constant 2 : index
    %c0_140 = arith.constant 0 : index
    %c0_141 = arith.constant 0 : index
    %127 = vector.load %arg15[%c2_139, %c0_140, %c0_141] : memref<3x4x4xf32, #tpu.memory_space<vmem>>, vector<1x4x4xf32>
    %128 = vector.shape_cast %127 : vector<1x4x4xf32> to vector<4x4xf32>
    %cst_142 = arith.constant dense<0.000000e+00> : vector<4x32xf32>
    %129 = tpu.matmul %128, %126, %cst_142 {dimension_numbers = #tpu.dot_dimension_numbers<[1], [0], [0], [1], [0, 0, 1, 1], [], []>} : vector<4x4xf32>, vector<4x32xf32>, vector<4x32xf32> -> vector<4x32xf32>
    %130 = arith.addf %119, %129 : vector<4x32xf32>
    %c0_143 = arith.constant 0 : index
    %c0_144 = arith.constant 0 : index
    %131 = vector.load %arg17[%c0_143, %c0_144] : memref<1x32xf32, #tpu.memory_space<vmem>>, vector<1x32xf32>
    %132 = vector.broadcast %131 : vector<1x32xf32> to vector<4x32xf32>
    %133 = arith.addf %130, %132 : vector<4x32xf32>
    %cst_145 = arith.constant 0.000000e+00 : f32
    %134 = vector.broadcast %cst_145 : f32 to vector<4x32xf32>
    %135 = arith.maximumf %133, %134 : vector<4x32xf32>
    %c0_146 = arith.constant 0 : index
    %c0_147 = arith.constant 0 : index
    %c0_148 = arith.constant 0 : index
    %136 = vector.load %arg4[%c0_146, %c0_147, %c0_148] : memref<1x8x64xf32, #tpu.memory_space<vmem>>, vector<1x8x64xf32>
    %137 = vector.shape_cast %136 : vector<1x8x64xf32> to vector<8x64xf32>
    %c0_149 = arith.constant 0 : index
    %c0_150 = arith.constant 0 : index
    %c0_151 = arith.constant 0 : index
    %138 = vector.load %arg18[%c0_149, %c0_150, %c0_151] : memref<3x8x4xf32, #tpu.memory_space<vmem>>, vector<1x8x4xf32>
    %139 = vector.shape_cast %138 : vector<1x8x4xf32> to vector<8x4xf32>
    %cst_152 = arith.constant dense<0.000000e+00> : vector<8x32xf32>
    %140 = tpu.matmul %139, %135, %cst_152 {dimension_numbers = #tpu.dot_dimension_numbers<[1], [0], [0], [1], [0, 0, 1, 1], [], []>} : vector<8x4xf32>, vector<4x32xf32>, vector<8x32xf32> -> vector<8x32xf32>
    %c0_153 = arith.constant 0 : index
    %c0_154 = arith.constant 0 : index
    %c0_155 = arith.constant 0 : index
    %141 = vector.load %arg19[%c0_153, %c0_154, %c0_155] : memref<3x32x64xf32, #tpu.memory_space<vmem>>, vector<1x32x64xf32>
    %142 = vector.shape_cast %141 : vector<1x32x64xf32> to vector<32x64xf32>
    %cst_156 = arith.constant dense<0.000000e+00> : vector<8x64xf32>
    %143 = tpu.matmul %140, %142, %cst_156 {dimension_numbers = #tpu.dot_dimension_numbers<[1], [0], [0], [1], [0, 0, 1, 1], [], []>} : vector<8x32xf32>, vector<32x64xf32>, vector<8x64xf32> -> vector<8x64xf32>
    %c1_157 = arith.constant 1 : index
    %c0_158 = arith.constant 0 : index
    %c0_159 = arith.constant 0 : index
    %144 = vector.load %arg18[%c1_157, %c0_158, %c0_159] : memref<3x8x4xf32, #tpu.memory_space<vmem>>, vector<1x8x4xf32>
    %145 = vector.shape_cast %144 : vector<1x8x4xf32> to vector<8x4xf32>
    %cst_160 = arith.constant dense<0.000000e+00> : vector<8x32xf32>
    %146 = tpu.matmul %145, %135, %cst_160 {dimension_numbers = #tpu.dot_dimension_numbers<[1], [0], [0], [1], [0, 0, 1, 1], [], []>} : vector<8x4xf32>, vector<4x32xf32>, vector<8x32xf32> -> vector<8x32xf32>
    %c1_161 = arith.constant 1 : index
    %c0_162 = arith.constant 0 : index
    %c0_163 = arith.constant 0 : index
    %147 = vector.load %arg19[%c1_161, %c0_162, %c0_163] : memref<3x32x64xf32, #tpu.memory_space<vmem>>, vector<1x32x64xf32>
    %148 = vector.shape_cast %147 : vector<1x32x64xf32> to vector<32x64xf32>
    %cst_164 = arith.constant dense<0.000000e+00> : vector<8x64xf32>
    %149 = tpu.matmul %146, %148, %cst_164 {dimension_numbers = #tpu.dot_dimension_numbers<[1], [0], [0], [1], [0, 0, 1, 1], [], []>} : vector<8x32xf32>, vector<32x64xf32>, vector<8x64xf32> -> vector<8x64xf32>
    %150 = arith.addf %143, %149 : vector<8x64xf32>
    %c2_165 = arith.constant 2 : index
    %c0_166 = arith.constant 0 : index
    %c0_167 = arith.constant 0 : index
    %151 = vector.load %arg18[%c2_165, %c0_166, %c0_167] : memref<3x8x4xf32, #tpu.memory_space<vmem>>, vector<1x8x4xf32>
    %152 = vector.shape_cast %151 : vector<1x8x4xf32> to vector<8x4xf32>
    %cst_168 = arith.constant dense<0.000000e+00> : vector<8x32xf32>
    %153 = tpu.matmul %152, %135, %cst_168 {dimension_numbers = #tpu.dot_dimension_numbers<[1], [0], [0], [1], [0, 0, 1, 1], [], []>} : vector<8x4xf32>, vector<4x32xf32>, vector<8x32xf32> -> vector<8x32xf32>
    %c2_169 = arith.constant 2 : index
    %c0_170 = arith.constant 0 : index
    %c0_171 = arith.constant 0 : index
    %154 = vector.load %arg19[%c2_169, %c0_170, %c0_171] : memref<3x32x64xf32, #tpu.memory_space<vmem>>, vector<1x32x64xf32>
    %155 = vector.shape_cast %154 : vector<1x32x64xf32> to vector<32x64xf32>
    %cst_172 = arith.constant dense<0.000000e+00> : vector<8x64xf32>
    %156 = tpu.matmul %153, %155, %cst_172 {dimension_numbers = #tpu.dot_dimension_numbers<[1], [0], [0], [1], [0, 0, 1, 1], [], []>} : vector<8x32xf32>, vector<32x64xf32>, vector<8x64xf32> -> vector<8x64xf32>
    %157 = arith.addf %150, %156 : vector<8x64xf32>
    %c0_173 = arith.constant 0 : index
    %c0_174 = arith.constant 0 : index
    %158 = vector.load %arg20[%c0_173, %c0_174] : memref<1x64xf32, #tpu.memory_space<vmem>>, vector<1x64xf32>
    %159 = vector.broadcast %158 : vector<1x64xf32> to vector<8x64xf32>
    %160 = arith.addf %157, %159 : vector<8x64xf32>
    %cst_175 = arith.constant 0.000000e+00 : f32
    %161 = vector.broadcast %cst_175 : f32 to vector<8x64xf32>
    %162 = arith.maximumf %160, %161 : vector<8x64xf32>
    %c0_176 = arith.constant 0 : index
    %c0_177 = arith.constant 0 : index
    %c0_178 = arith.constant 0 : index
    %c0_179 = arith.constant 0 : index
    %163 = vector.load %arg22[%c0_176, %c0_177, %c0_178, %c0_179] : memref<2x3x64x64xf32, #tpu.memory_space<vmem>>, vector<1x1x64x64xf32>
    %164 = vector.shape_cast %163 : vector<1x1x64x64xf32> to vector<64x64xf32>
    %cst_180 = arith.constant dense<0.000000e+00> : vector<8x64xf32>
    %165 = tpu.matmul %137, %164, %cst_180 {dimension_numbers = #tpu.dot_dimension_numbers<[1], [0], [0], [1], [0, 0, 1, 1], [], []>} : vector<8x64xf32>, vector<64x64xf32>, vector<8x64xf32> -> vector<8x64xf32>
    %c1_181 = arith.constant 1 : index
    %c0_182 = arith.constant 0 : index
    %c0_183 = arith.constant 0 : index
    %c0_184 = arith.constant 0 : index
    %166 = vector.load %arg22[%c1_181, %c0_182, %c0_183, %c0_184] : memref<2x3x64x64xf32, #tpu.memory_space<vmem>>, vector<1x1x64x64xf32>
    %167 = vector.shape_cast %166 : vector<1x1x64x64xf32> to vector<64x64xf32>
    %cst_185 = arith.constant dense<0.000000e+00> : vector<8x64xf32>
    %168 = tpu.matmul %162, %167, %cst_185 {dimension_numbers = #tpu.dot_dimension_numbers<[1], [0], [0], [1], [0, 0, 1, 1], [], []>} : vector<8x64xf32>, vector<64x64xf32>, vector<8x64xf32> -> vector<8x64xf32>
    %169 = arith.addf %165, %168 : vector<8x64xf32>
    %c0_186 = arith.constant 0 : index
    %c0_187 = arith.constant 0 : index
    %c0_188 = arith.constant 0 : index
    %170 = vector.load %arg21[%c0_186, %c0_187, %c0_188] : memref<3x8x8xf32, #tpu.memory_space<vmem>>, vector<1x8x8xf32>
    %171 = vector.shape_cast %170 : vector<1x8x8xf32> to vector<8x8xf32>
    %cst_189 = arith.constant dense<0.000000e+00> : vector<8x64xf32>
    %172 = tpu.matmul %171, %169, %cst_189 {dimension_numbers = #tpu.dot_dimension_numbers<[1], [0], [0], [1], [0, 0, 1, 1], [], []>} : vector<8x8xf32>, vector<8x64xf32>, vector<8x64xf32> -> vector<8x64xf32>
    %c0_190 = arith.constant 0 : index
    %c1_191 = arith.constant 1 : index
    %c0_192 = arith.constant 0 : index
    %c0_193 = arith.constant 0 : index
    %173 = vector.load %arg22[%c0_190, %c1_191, %c0_192, %c0_193] : memref<2x3x64x64xf32, #tpu.memory_space<vmem>>, vector<1x1x64x64xf32>
    %174 = vector.shape_cast %173 : vector<1x1x64x64xf32> to vector<64x64xf32>
    %cst_194 = arith.constant dense<0.000000e+00> : vector<8x64xf32>
    %175 = tpu.matmul %137, %174, %cst_194 {dimension_numbers = #tpu.dot_dimension_numbers<[1], [0], [0], [1], [0, 0, 1, 1], [], []>} : vector<8x64xf32>, vector<64x64xf32>, vector<8x64xf32> -> vector<8x64xf32>
    %c1_195 = arith.constant 1 : index
    %c1_196 = arith.constant 1 : index
    %c0_197 = arith.constant 0 : index
    %c0_198 = arith.constant 0 : index
    %176 = vector.load %arg22[%c1_195, %c1_196, %c0_197, %c0_198] : memref<2x3x64x64xf32, #tpu.memory_space<vmem>>, vector<1x1x64x64xf32>
    %177 = vector.shape_cast %176 : vector<1x1x64x64xf32> to vector<64x64xf32>
    %cst_199 = arith.constant dense<0.000000e+00> : vector<8x64xf32>
    %178 = tpu.matmul %162, %177, %cst_199 {dimension_numbers = #tpu.dot_dimension_numbers<[1], [0], [0], [1], [0, 0, 1, 1], [], []>} : vector<8x64xf32>, vector<64x64xf32>, vector<8x64xf32> -> vector<8x64xf32>
    %179 = arith.addf %175, %178 : vector<8x64xf32>
    %c1_200 = arith.constant 1 : index
    %c0_201 = arith.constant 0 : index
    %c0_202 = arith.constant 0 : index
    %180 = vector.load %arg21[%c1_200, %c0_201, %c0_202] : memref<3x8x8xf32, #tpu.memory_space<vmem>>, vector<1x8x8xf32>
    %181 = vector.shape_cast %180 : vector<1x8x8xf32> to vector<8x8xf32>
    %cst_203 = arith.constant dense<0.000000e+00> : vector<8x64xf32>
    %182 = tpu.matmul %181, %179, %cst_203 {dimension_numbers = #tpu.dot_dimension_numbers<[1], [0], [0], [1], [0, 0, 1, 1], [], []>} : vector<8x8xf32>, vector<8x64xf32>, vector<8x64xf32> -> vector<8x64xf32>
    %183 = arith.addf %172, %182 : vector<8x64xf32>
    %c0_204 = arith.constant 0 : index
    %c2_205 = arith.constant 2 : index
    %c0_206 = arith.constant 0 : index
    %c0_207 = arith.constant 0 : index
    %184 = vector.load %arg22[%c0_204, %c2_205, %c0_206, %c0_207] : memref<2x3x64x64xf32, #tpu.memory_space<vmem>>, vector<1x1x64x64xf32>
    %185 = vector.shape_cast %184 : vector<1x1x64x64xf32> to vector<64x64xf32>
    %cst_208 = arith.constant dense<0.000000e+00> : vector<8x64xf32>
    %186 = tpu.matmul %137, %185, %cst_208 {dimension_numbers = #tpu.dot_dimension_numbers<[1], [0], [0], [1], [0, 0, 1, 1], [], []>} : vector<8x64xf32>, vector<64x64xf32>, vector<8x64xf32> -> vector<8x64xf32>
    %c1_209 = arith.constant 1 : index
    %c2_210 = arith.constant 2 : index
    %c0_211 = arith.constant 0 : index
    %c0_212 = arith.constant 0 : index
    %187 = vector.load %arg22[%c1_209, %c2_210, %c0_211, %c0_212] : memref<2x3x64x64xf32, #tpu.memory_space<vmem>>, vector<1x1x64x64xf32>
    %188 = vector.shape_cast %187 : vector<1x1x64x64xf32> to vector<64x64xf32>
    %cst_213 = arith.constant dense<0.000000e+00> : vector<8x64xf32>
    %189 = tpu.matmul %162, %188, %cst_213 {dimension_numbers = #tpu.dot_dimension_numbers<[1], [0], [0], [1], [0, 0, 1, 1], [], []>} : vector<8x64xf32>, vector<64x64xf32>, vector<8x64xf32> -> vector<8x64xf32>
    %190 = arith.addf %186, %189 : vector<8x64xf32>
    %c2_214 = arith.constant 2 : index
    %c0_215 = arith.constant 0 : index
    %c0_216 = arith.constant 0 : index
    %191 = vector.load %arg21[%c2_214, %c0_215, %c0_216] : memref<3x8x8xf32, #tpu.memory_space<vmem>>, vector<1x8x8xf32>
    %192 = vector.shape_cast %191 : vector<1x8x8xf32> to vector<8x8xf32>
    %cst_217 = arith.constant dense<0.000000e+00> : vector<8x64xf32>
    %193 = tpu.matmul %192, %190, %cst_217 {dimension_numbers = #tpu.dot_dimension_numbers<[1], [0], [0], [1], [0, 0, 1, 1], [], []>} : vector<8x8xf32>, vector<8x64xf32>, vector<8x64xf32> -> vector<8x64xf32>
    %194 = arith.addf %183, %193 : vector<8x64xf32>
    %c0_218 = arith.constant 0 : index
    %c0_219 = arith.constant 0 : index
    %195 = vector.load %arg23[%c0_218, %c0_219] : memref<1x64xf32, #tpu.memory_space<vmem>>, vector<1x64xf32>
    %196 = vector.broadcast %195 : vector<1x64xf32> to vector<8x64xf32>
    %197 = arith.addf %194, %196 : vector<8x64xf32>
    %cst_220 = arith.constant 0.000000e+00 : f32
    %198 = vector.broadcast %cst_220 : f32 to vector<8x64xf32>
    %199 = arith.maximumf %197, %198 : vector<8x64xf32>
    %c0_221 = arith.constant 0 : index
    %c0_222 = arith.constant 0 : index
    %c0_223 = arith.constant 0 : index
    %200 = vector.load %arg5[%c0_221, %c0_222, %c0_223] : memref<1x16x128xf32, #tpu.memory_space<vmem>>, vector<1x16x128xf32>
    %201 = vector.shape_cast %200 : vector<1x16x128xf32> to vector<16x128xf32>
    %c0_224 = arith.constant 0 : index
    %c0_225 = arith.constant 0 : index
    %c0_226 = arith.constant 0 : index
    %202 = vector.load %arg24[%c0_224, %c0_225, %c0_226] : memref<3x16x8xf32, #tpu.memory_space<vmem>>, vector<1x16x8xf32>
    %203 = vector.shape_cast %202 : vector<1x16x8xf32> to vector<16x8xf32>
    %cst_227 = arith.constant dense<0.000000e+00> : vector<16x64xf32>
    %204 = tpu.matmul %203, %199, %cst_227 {dimension_numbers = #tpu.dot_dimension_numbers<[1], [0], [0], [1], [0, 0, 1, 1], [], []>} : vector<16x8xf32>, vector<8x64xf32>, vector<16x64xf32> -> vector<16x64xf32>
    %c0_228 = arith.constant 0 : index
    %c0_229 = arith.constant 0 : index
    %c0_230 = arith.constant 0 : index
    %205 = vector.load %arg25[%c0_228, %c0_229, %c0_230] : memref<3x64x128xf32, #tpu.memory_space<vmem>>, vector<1x64x128xf32>
    %206 = vector.shape_cast %205 : vector<1x64x128xf32> to vector<64x128xf32>
    %cst_231 = arith.constant dense<0.000000e+00> : vector<16x128xf32>
    %207 = tpu.matmul %204, %206, %cst_231 {dimension_numbers = #tpu.dot_dimension_numbers<[1], [0], [0], [1], [0, 0, 1, 1], [], []>} : vector<16x64xf32>, vector<64x128xf32>, vector<16x128xf32> -> vector<16x128xf32>
    %c1_232 = arith.constant 1 : index
    %c0_233 = arith.constant 0 : index
    %c0_234 = arith.constant 0 : index
    %208 = vector.load %arg24[%c1_232, %c0_233, %c0_234] : memref<3x16x8xf32, #tpu.memory_space<vmem>>, vector<1x16x8xf32>
    %209 = vector.shape_cast %208 : vector<1x16x8xf32> to vector<16x8xf32>
    %cst_235 = arith.constant dense<0.000000e+00> : vector<16x64xf32>
    %210 = tpu.matmul %209, %199, %cst_235 {dimension_numbers = #tpu.dot_dimension_numbers<[1], [0], [0], [1], [0, 0, 1, 1], [], []>} : vector<16x8xf32>, vector<8x64xf32>, vector<16x64xf32> -> vector<16x64xf32>
    %c1_236 = arith.constant 1 : index
    %c0_237 = arith.constant 0 : index
    %c0_238 = arith.constant 0 : index
    %211 = vector.load %arg25[%c1_236, %c0_237, %c0_238] : memref<3x64x128xf32, #tpu.memory_space<vmem>>, vector<1x64x128xf32>
    %212 = vector.shape_cast %211 : vector<1x64x128xf32> to vector<64x128xf32>
    %cst_239 = arith.constant dense<0.000000e+00> : vector<16x128xf32>
    %213 = tpu.matmul %210, %212, %cst_239 {dimension_numbers = #tpu.dot_dimension_numbers<[1], [0], [0], [1], [0, 0, 1, 1], [], []>} : vector<16x64xf32>, vector<64x128xf32>, vector<16x128xf32> -> vector<16x128xf32>
    %214 = arith.addf %207, %213 : vector<16x128xf32>
    %c2_240 = arith.constant 2 : index
    %c0_241 = arith.constant 0 : index
    %c0_242 = arith.constant 0 : index
    %215 = vector.load %arg24[%c2_240, %c0_241, %c0_242] : memref<3x16x8xf32, #tpu.memory_space<vmem>>, vector<1x16x8xf32>
    %216 = vector.shape_cast %215 : vector<1x16x8xf32> to vector<16x8xf32>
    %cst_243 = arith.constant dense<0.000000e+00> : vector<16x64xf32>
    %217 = tpu.matmul %216, %199, %cst_243 {dimension_numbers = #tpu.dot_dimension_numbers<[1], [0], [0], [1], [0, 0, 1, 1], [], []>} : vector<16x8xf32>, vector<8x64xf32>, vector<16x64xf32> -> vector<16x64xf32>
    %c2_244 = arith.constant 2 : index
    %c0_245 = arith.constant 0 : index
    %c0_246 = arith.constant 0 : index
    %218 = vector.load %arg25[%c2_244, %c0_245, %c0_246] : memref<3x64x128xf32, #tpu.memory_space<vmem>>, vector<1x64x128xf32>
    %219 = vector.shape_cast %218 : vector<1x64x128xf32> to vector<64x128xf32>
    %cst_247 = arith.constant dense<0.000000e+00> : vector<16x128xf32>
    %220 = tpu.matmul %217, %219, %cst_247 {dimension_numbers = #tpu.dot_dimension_numbers<[1], [0], [0], [1], [0, 0, 1, 1], [], []>} : vector<16x64xf32>, vector<64x128xf32>, vector<16x128xf32> -> vector<16x128xf32>
    %221 = arith.addf %214, %220 : vector<16x128xf32>
    %c0_248 = arith.constant 0 : index
    %c0_249 = arith.constant 0 : index
    %222 = vector.load %arg26[%c0_248, %c0_249] : memref<1x128xf32, #tpu.memory_space<vmem>>, vector<1x128xf32>
    %223 = vector.broadcast %222 : vector<1x128xf32> to vector<16x128xf32>
    %224 = arith.addf %221, %223 : vector<16x128xf32>
    %cst_250 = arith.constant 0.000000e+00 : f32
    %225 = vector.broadcast %cst_250 : f32 to vector<16x128xf32>
    %226 = arith.maximumf %224, %225 : vector<16x128xf32>
    %c0_251 = arith.constant 0 : index
    %c0_252 = arith.constant 0 : index
    %c0_253 = arith.constant 0 : index
    %c0_254 = arith.constant 0 : index
    %227 = vector.load %arg28[%c0_251, %c0_252, %c0_253, %c0_254] : memref<2x3x128x128xf32, #tpu.memory_space<vmem>>, vector<1x1x128x128xf32>
    %228 = vector.shape_cast %227 : vector<1x1x128x128xf32> to vector<128x128xf32>
    %cst_255 = arith.constant dense<0.000000e+00> : vector<16x128xf32>
    %229 = tpu.matmul %201, %228, %cst_255 {dimension_numbers = #tpu.dot_dimension_numbers<[1], [0], [0], [1], [0, 0, 1, 1], [], []>} : vector<16x128xf32>, vector<128x128xf32>, vector<16x128xf32> -> vector<16x128xf32>
    %c1_256 = arith.constant 1 : index
    %c0_257 = arith.constant 0 : index
    %c0_258 = arith.constant 0 : index
    %c0_259 = arith.constant 0 : index
    %230 = vector.load %arg28[%c1_256, %c0_257, %c0_258, %c0_259] : memref<2x3x128x128xf32, #tpu.memory_space<vmem>>, vector<1x1x128x128xf32>
    %231 = vector.shape_cast %230 : vector<1x1x128x128xf32> to vector<128x128xf32>
    %cst_260 = arith.constant dense<0.000000e+00> : vector<16x128xf32>
    %232 = tpu.matmul %226, %231, %cst_260 {dimension_numbers = #tpu.dot_dimension_numbers<[1], [0], [0], [1], [0, 0, 1, 1], [], []>} : vector<16x128xf32>, vector<128x128xf32>, vector<16x128xf32> -> vector<16x128xf32>
    %233 = arith.addf %229, %232 : vector<16x128xf32>
    %c0_261 = arith.constant 0 : index
    %c0_262 = arith.constant 0 : index
    %c0_263 = arith.constant 0 : index
    %234 = vector.load %arg27[%c0_261, %c0_262, %c0_263] : memref<3x16x16xf32, #tpu.memory_space<vmem>>, vector<1x16x16xf32>
    %235 = vector.shape_cast %234 : vector<1x16x16xf32> to vector<16x16xf32>
    %cst_264 = arith.constant dense<0.000000e+00> : vector<16x128xf32>
    %236 = tpu.matmul %235, %233, %cst_264 {dimension_numbers = #tpu.dot_dimension_numbers<[1], [0], [0], [1], [0, 0, 1, 1], [], []>} : vector<16x16xf32>, vector<16x128xf32>, vector<16x128xf32> -> vector<16x128xf32>
    %c0_265 = arith.constant 0 : index
    %c1_266 = arith.constant 1 : index
    %c0_267 = arith.constant 0 : index
    %c0_268 = arith.constant 0 : index
    %237 = vector.load %arg28[%c0_265, %c1_266, %c0_267, %c0_268] : memref<2x3x128x128xf32, #tpu.memory_space<vmem>>, vector<1x1x128x128xf32>
    %238 = vector.shape_cast %237 : vector<1x1x128x128xf32> to vector<128x128xf32>
    %cst_269 = arith.constant dense<0.000000e+00> : vector<16x128xf32>
    %239 = tpu.matmul %201, %238, %cst_269 {dimension_numbers = #tpu.dot_dimension_numbers<[1], [0], [0], [1], [0, 0, 1, 1], [], []>} : vector<16x128xf32>, vector<128x128xf32>, vector<16x128xf32> -> vector<16x128xf32>
    %c1_270 = arith.constant 1 : index
    %c1_271 = arith.constant 1 : index
    %c0_272 = arith.constant 0 : index
    %c0_273 = arith.constant 0 : index
    %240 = vector.load %arg28[%c1_270, %c1_271, %c0_272, %c0_273] : memref<2x3x128x128xf32, #tpu.memory_space<vmem>>, vector<1x1x128x128xf32>
    %241 = vector.shape_cast %240 : vector<1x1x128x128xf32> to vector<128x128xf32>
    %cst_274 = arith.constant dense<0.000000e+00> : vector<16x128xf32>
    %242 = tpu.matmul %226, %241, %cst_274 {dimension_numbers = #tpu.dot_dimension_numbers<[1], [0], [0], [1], [0, 0, 1, 1], [], []>} : vector<16x128xf32>, vector<128x128xf32>, vector<16x128xf32> -> vector<16x128xf32>
    %243 = arith.addf %239, %242 : vector<16x128xf32>
    %c1_275 = arith.constant 1 : index
    %c0_276 = arith.constant 0 : index
    %c0_277 = arith.constant 0 : index
    %244 = vector.load %arg27[%c1_275, %c0_276, %c0_277] : memref<3x16x16xf32, #tpu.memory_space<vmem>>, vector<1x16x16xf32>
    %245 = vector.shape_cast %244 : vector<1x16x16xf32> to vector<16x16xf32>
    %cst_278 = arith.constant dense<0.000000e+00> : vector<16x128xf32>
    %246 = tpu.matmul %245, %243, %cst_278 {dimension_numbers = #tpu.dot_dimension_numbers<[1], [0], [0], [1], [0, 0, 1, 1], [], []>} : vector<16x16xf32>, vector<16x128xf32>, vector<16x128xf32> -> vector<16x128xf32>
    %247 = arith.addf %236, %246 : vector<16x128xf32>
    %c0_279 = arith.constant 0 : index
    %c2_280 = arith.constant 2 : index
    %c0_281 = arith.constant 0 : index
    %c0_282 = arith.constant 0 : index
    %248 = vector.load %arg28[%c0_279, %c2_280, %c0_281, %c0_282] : memref<2x3x128x128xf32, #tpu.memory_space<vmem>>, vector<1x1x128x128xf32>
    %249 = vector.shape_cast %248 : vector<1x1x128x128xf32> to vector<128x128xf32>
    %cst_283 = arith.constant dense<0.000000e+00> : vector<16x128xf32>
    %250 = tpu.matmul %201, %249, %cst_283 {dimension_numbers = #tpu.dot_dimension_numbers<[1], [0], [0], [1], [0, 0, 1, 1], [], []>} : vector<16x128xf32>, vector<128x128xf32>, vector<16x128xf32> -> vector<16x128xf32>
    %c1_284 = arith.constant 1 : index
    %c2_285 = arith.constant 2 : index
    %c0_286 = arith.constant 0 : index
    %c0_287 = arith.constant 0 : index
    %251 = vector.load %arg28[%c1_284, %c2_285, %c0_286, %c0_287] : memref<2x3x128x128xf32, #tpu.memory_space<vmem>>, vector<1x1x128x128xf32>
    %252 = vector.shape_cast %251 : vector<1x1x128x128xf32> to vector<128x128xf32>
    %cst_288 = arith.constant dense<0.000000e+00> : vector<16x128xf32>
    %253 = tpu.matmul %226, %252, %cst_288 {dimension_numbers = #tpu.dot_dimension_numbers<[1], [0], [0], [1], [0, 0, 1, 1], [], []>} : vector<16x128xf32>, vector<128x128xf32>, vector<16x128xf32> -> vector<16x128xf32>
    %254 = arith.addf %250, %253 : vector<16x128xf32>
    %c2_289 = arith.constant 2 : index
    %c0_290 = arith.constant 0 : index
    %c0_291 = arith.constant 0 : index
    %255 = vector.load %arg27[%c2_289, %c0_290, %c0_291] : memref<3x16x16xf32, #tpu.memory_space<vmem>>, vector<1x16x16xf32>
    %256 = vector.shape_cast %255 : vector<1x16x16xf32> to vector<16x16xf32>
    %cst_292 = arith.constant dense<0.000000e+00> : vector<16x128xf32>
    %257 = tpu.matmul %256, %254, %cst_292 {dimension_numbers = #tpu.dot_dimension_numbers<[1], [0], [0], [1], [0, 0, 1, 1], [], []>} : vector<16x16xf32>, vector<16x128xf32>, vector<16x128xf32> -> vector<16x128xf32>
    %258 = arith.addf %247, %257 : vector<16x128xf32>
    %c0_293 = arith.constant 0 : index
    %c0_294 = arith.constant 0 : index
    %259 = vector.load %arg29[%c0_293, %c0_294] : memref<1x128xf32, #tpu.memory_space<vmem>>, vector<1x128xf32>
    %260 = vector.broadcast %259 : vector<1x128xf32> to vector<16x128xf32>
    %261 = arith.addf %258, %260 : vector<16x128xf32>
    %cst_295 = arith.constant 0.000000e+00 : f32
    %262 = vector.broadcast %cst_295 : f32 to vector<16x128xf32>
    %263 = arith.maximumf %261, %262 : vector<16x128xf32>
    %c0_296 = arith.constant 0 : index
    %c0_297 = arith.constant 0 : index
    %264 = vector.load %arg31[%c0_296, %c0_297] : memref<128x32xf32, #tpu.memory_space<vmem>>, vector<128x32xf32>
    %cst_298 = arith.constant dense<0.000000e+00> : vector<16x32xf32>
    %265 = tpu.matmul %263, %264, %cst_298 {dimension_numbers = #tpu.dot_dimension_numbers<[1], [0], [0], [1], [0, 0, 1, 1], [], []>} : vector<16x128xf32>, vector<128x32xf32>, vector<16x32xf32> -> vector<16x32xf32>
    %c0_299 = arith.constant 0 : index
    %c0_300 = arith.constant 0 : index
    %266 = vector.load %arg30[%c0_299, %c0_300] : memref<32x16xf32, #tpu.memory_space<vmem>>, vector<32x16xf32>
    %cst_301 = arith.constant dense<0.000000e+00> : vector<32x32xf32>
    %267 = tpu.matmul %266, %265, %cst_301 {dimension_numbers = #tpu.dot_dimension_numbers<[1], [0], [0], [1], [0, 0, 1, 1], [], []>} : vector<32x16xf32>, vector<16x32xf32>, vector<32x32xf32> -> vector<32x32xf32>
    %c0_302 = arith.constant 0 : index
    %c0_303 = arith.constant 0 : index
    %268 = vector.load %arg32[%c0_302, %c0_303] : memref<1x1xf32, #tpu.memory_space<vmem>>, vector<1x1xf32>
    %269 = vector.broadcast %268 : vector<1x1xf32> to vector<32x32xf32>
    %270 = arith.addf %267, %269 : vector<32x32xf32>
    %c0_304 = arith.constant 0 : index
    %c0_305 = arith.constant 0 : index
    %c0_306 = arith.constant 0 : index
    %271 = vector.load %arg33[%c0_304, %c0_305, %c0_306] : memref<1x32x32xf32, #tpu.memory_space<vmem>>, vector<1x32x32xf32>
    %272 = vector.shape_cast %271 : vector<1x32x32xf32> to vector<32x32xf32>
    %273 = vector.shape_cast %270 : vector<32x32xf32> to vector<1x32x32xf32>
    tpu.vector_store %arg33[%c0_304, %c0_305, %c0_306], %273 {strides = array<i32>} : memref<1x32x32xf32, #tpu.memory_space<vmem>>, vector<1x32x32xf32>,
    return
  }
  func.func @transform_0(%arg0: i32) -> (i32, i32, i32) {
    %c0_i32 = arith.constant 0 : i32
    %c0_i32_0 = arith.constant 0 : i32
    %c0_i32_1 = arith.constant 0 : i32
    return %arg0, %c0_i32, %c0_i32_0 : i32, i32, i32
  }
  func.func @transform_1(%arg0: i32) -> (i32, i32, i32) {
    %c0_i32 = arith.constant 0 : i32
    %c0_i32_0 = arith.constant 0 : i32
    %c0_i32_1 = arith.constant 0 : i32
    return %arg0, %c0_i32, %c0_i32_0 : i32, i32, i32
  }
  func.func @transform_2(%arg0: i32) -> (i32, i32, i32) {
    %c0_i32 = arith.constant 0 : i32
    %c0_i32_0 = arith.constant 0 : i32
    %c0_i32_1 = arith.constant 0 : i32
    return %arg0, %c0_i32, %c0_i32_0 : i32, i32, i32
  }
  func.func @transform_3(%arg0: i32) -> (i32, i32, i32) {
    %c0_i32 = arith.constant 0 : i32
    %c0_i32_0 = arith.constant 0 : i32
    %c0_i32_1 = arith.constant 0 : i32
    return %arg0, %c0_i32, %c0_i32_0 : i32, i32, i32
  }
  func.func @transform_4(%arg0: i32) -> (i32, i32, i32) {
    %c0_i32 = arith.constant 0 : i32
    %c0_i32_0 = arith.constant 0 : i32
    %c0_i32_1 = arith.constant 0 : i32
    return %arg0, %c0_i32, %c0_i32_0 : i32, i32, i32
  }
  func.func @transform_5(%arg0: i32) -> (i32, i32, i32) {
    %c0_i32 = arith.constant 0 : i32
    %c0_i32_0 = arith.constant 0 : i32
    %c0_i32_1 = arith.constant 0 : i32
    %c0_i32_2 = arith.constant 0 : i32
    return %c0_i32, %c0_i32_0, %c0_i32_1 : i32, i32, i32
  }
  func.func @transform_6(%arg0: i32) -> (i32, i32, i32) {
    %c0_i32 = arith.constant 0 : i32
    %c0_i32_0 = arith.constant 0 : i32
    %c0_i32_1 = arith.constant 0 : i32
    %c0_i32_2 = arith.constant 0 : i32
    return %c0_i32, %c0_i32_0, %c0_i32_1 : i32, i32, i32
  }
  func.func @transform_7(%arg0: i32) -> (i32, i32) {
    %c0_i32 = arith.constant 0 : i32
    %c0_i32_0 = arith.constant 0 : i32
    %c0_i32_1 = arith.constant 0 : i32
    return %c0_i32, %c0_i32_0 : i32, i32
  }
  func.func @transform_8(%arg0: i32) -> (i32, i32, i32) {
    %c0_i32 = arith.constant 0 : i32
    %c0_i32_0 = arith.constant 0 : i32
    %c0_i32_1 = arith.constant 0 : i32
    %c0_i32_2 = arith.constant 0 : i32
    return %c0_i32, %c0_i32_0, %c0_i32_1 : i32, i32, i32
  }
  func.func @transform_9(%arg0: i32) -> (i32, i32, i32, i32) {
    %c0_i32 = arith.constant 0 : i32
    %c0_i32_0 = arith.constant 0 : i32
    %c0_i32_1 = arith.constant 0 : i32
    %c0_i32_2 = arith.constant 0 : i32
    %c0_i32_3 = arith.constant 0 : i32
    return %c0_i32, %c0_i32_0, %c0_i32_1, %c0_i32_2 : i32, i32, i32, i32
  }
  func.func @transform_10(%arg0: i32) -> (i32, i32) {
    %c0_i32 = arith.constant 0 : i32
    %c0_i32_0 = arith.constant 0 : i32
    %c0_i32_1 = arith.constant 0 : i32
    return %c0_i32, %c0_i32_0 : i32, i32
  }
  func.func @transform_11(%arg0: i32) -> (i32, i32, i32) {
    %c0_i32 = arith.constant 0 : i32
    %c0_i32_0 = arith.constant 0 : i32
    %c0_i32_1 = arith.constant 0 : i32
    %c0_i32_2 = arith.constant 0 : i32
    return %c0_i32, %c0_i32_0, %c0_i32_1 : i32, i32, i32
  }
  func.func @transform_12(%arg0: i32) -> (i32, i32, i32) {
    %c0_i32 = arith.constant 0 : i32
    %c0_i32_0 = arith.constant 0 : i32
    %c0_i32_1 = arith.constant 0 : i32
    %c0_i32_2 = arith.constant 0 : i32
    return %c0_i32, %c0_i32_0, %c0_i32_1 : i32, i32, i32
  }
  func.func @transform_13(%arg0: i32) -> (i32, i32) {
    %c0_i32 = arith.constant 0 : i32
    %c0_i32_0 = arith.constant 0 : i32
    %c0_i32_1 = arith.constant 0 : i32
    return %c0_i32, %c0_i32_0 : i32, i32
  }
  func.func @transform_14(%arg0: i32) -> (i32, i32, i32) {
    %c0_i32 = arith.constant 0 : i32
    %c0_i32_0 = arith.constant 0 : i32
    %c0_i32_1 = arith.constant 0 : i32
    %c0_i32_2 = arith.constant 0 : i32
    return %c0_i32, %c0_i32_0, %c0_i32_1 : i32, i32, i32
  }
  func.func @transform_15(%arg0: i32) -> (i32, i32, i32, i32) {
    %c0_i32 = arith.constant 0 : i32
    %c0_i32_0 = arith.constant 0 : i32
    %c0_i32_1 = arith.constant 0 : i32
    %c0_i32_2 = arith.constant 0 : i32
    %c0_i32_3 = arith.constant 0 : i32
    return %c0_i32, %c0_i32_0, %c0_i32_1, %c0_i32_2 : i32, i32, i32, i32
  }
  func.func @transform_16(%arg0: i32) -> (i32, i32) {
    %c0_i32 = arith.constant 0 : i32
    %c0_i32_0 = arith.constant 0 : i32
    %c0_i32_1 = arith.constant 0 : i32
    return %c0_i32, %c0_i32_0 : i32, i32
  }
  func.func @transform_17(%arg0: i32) -> (i32, i32, i32) {
    %c0_i32 = arith.constant 0 : i32
    %c0_i32_0 = arith.constant 0 : i32
    %c0_i32_1 = arith.constant 0 : i32
    %c0_i32_2 = arith.constant 0 : i32
    return %c0_i32, %c0_i32_0, %c0_i32_1 : i32, i32, i32
  }
  func.func @transform_18(%arg0: i32) -> (i32, i32, i32) {
    %c0_i32 = arith.constant 0 : i32
    %c0_i32_0 = arith.constant 0 : i32
    %c0_i32_1 = arith.constant 0 : i32
    %c0_i32_2 = arith.constant 0 : i32
    return %c0_i32, %c0_i32_0, %c0_i32_1 : i32, i32, i32
  }
  func.func @transform_19(%arg0: i32) -> (i32, i32) {
    %c0_i32 = arith.constant 0 : i32
    %c0_i32_0 = arith.constant 0 : i32
    %c0_i32_1 = arith.constant 0 : i32
    return %c0_i32, %c0_i32_0 : i32, i32
  }
  func.func @transform_20(%arg0: i32) -> (i32, i32, i32) {
    %c0_i32 = arith.constant 0 : i32
    %c0_i32_0 = arith.constant 0 : i32
    %c0_i32_1 = arith.constant 0 : i32
    %c0_i32_2 = arith.constant 0 : i32
    return %c0_i32, %c0_i32_0, %c0_i32_1 : i32, i32, i32
  }
  func.func @transform_21(%arg0: i32) -> (i32, i32, i32, i32) {
    %c0_i32 = arith.constant 0 : i32
    %c0_i32_0 = arith.constant 0 : i32
    %c0_i32_1 = arith.constant 0 : i32
    %c0_i32_2 = arith.constant 0 : i32
    %c0_i32_3 = arith.constant 0 : i32
    return %c0_i32, %c0_i32_0, %c0_i32_1, %c0_i32_2 : i32, i32, i32, i32
  }
  func.func @transform_22(%arg0: i32) -> (i32, i32) {
    %c0_i32 = arith.constant 0 : i32
    %c0_i32_0 = arith.constant 0 : i32
    %c0_i32_1 = arith.constant 0 : i32
    return %c0_i32, %c0_i32_0 : i32, i32
  }
  func.func @transform_23(%arg0: i32) -> (i32, i32, i32) {
    %c0_i32 = arith.constant 0 : i32
    %c0_i32_0 = arith.constant 0 : i32
    %c0_i32_1 = arith.constant 0 : i32
    %c0_i32_2 = arith.constant 0 : i32
    return %c0_i32, %c0_i32_0, %c0_i32_1 : i32, i32, i32
  }
  func.func @transform_24(%arg0: i32) -> (i32, i32, i32) {
    %c0_i32 = arith.constant 0 : i32
    %c0_i32_0 = arith.constant 0 : i32
    %c0_i32_1 = arith.constant 0 : i32
    %c0_i32_2 = arith.constant 0 : i32
    return %c0_i32, %c0_i32_0, %c0_i32_1 : i32, i32, i32
  }
  func.func @transform_25(%arg0: i32) -> (i32, i32) {
    %c0_i32 = arith.constant 0 : i32
    %c0_i32_0 = arith.constant 0 : i32
    %c0_i32_1 = arith.constant 0 : i32
    return %c0_i32, %c0_i32_0 : i32, i32
  }
  func.func @transform_26(%arg0: i32) -> (i32, i32, i32) {
    %c0_i32 = arith.constant 0 : i32
    %c0_i32_0 = arith.constant 0 : i32
    %c0_i32_1 = arith.constant 0 : i32
    %c0_i32_2 = arith.constant 0 : i32
    return %c0_i32, %c0_i32_0, %c0_i32_1 : i32, i32, i32
  }
  func.func @transform_27(%arg0: i32) -> (i32, i32, i32, i32) {
    %c0_i32 = arith.constant 0 : i32
    %c0_i32_0 = arith.constant 0 : i32
    %c0_i32_1 = arith.constant 0 : i32
    %c0_i32_2 = arith.constant 0 : i32
    %c0_i32_3 = arith.constant 0 : i32
    return %c0_i32, %c0_i32_0, %c0_i32_1, %c0_i32_2 : i32, i32, i32, i32
  }
  func.func @transform_28(%arg0: i32) -> (i32, i32) {
    %c0_i32 = arith.constant 0 : i32
    %c0_i32_0 = arith.constant 0 : i32
    %c0_i32_1 = arith.constant 0 : i32
    return %c0_i32, %c0_i32_0 : i32, i32
  }
  func.func @transform_29(%arg0: i32) -> (i32, i32) {
    %c0_i32 = arith.constant 0 : i32
    %c0_i32_0 = arith.constant 0 : i32
    %c0_i32_1 = arith.constant 0 : i32
    return %c0_i32, %c0_i32_0 : i32, i32
  }
  func.func @transform_30(%arg0: i32) -> (i32, i32) {
    %c0_i32 = arith.constant 0 : i32
    %c0_i32_0 = arith.constant 0 : i32
    %c0_i32_1 = arith.constant 0 : i32
    return %c0_i32, %c0_i32_0 : i32, i32
  }
  func.func @transform_31(%arg0: i32) -> (i32, i32) {
    %c0_i32 = arith.constant 0 : i32
    %c0_i32_0 = arith.constant 0 : i32
    %c0_i32_1 = arith.constant 0 : i32
    return %c0_i32, %c0_i32_0 : i32, i32
  }
  func.func @transform_32(%arg0: i32) -> (i32, i32, i32) {
    %c0_i32 = arith.constant 0 : i32
    %c0_i32_0 = arith.constant 0 : i32
    %c0_i32_1 = arith.constant 0 : i32
    return %arg0, %c0_i32, %c0_i32_0 : i32, i32, i32
  }
}

</mosaic_0001>

<bundles_post_ra>
// kernel: tpu_custom_call.1
= control target key start
LH: loop header
LB: loop body
LE: loop exit
PB: predicated region body
PF: predicated region fallthrough
CT: control target
= control target key end

     0   :  { %s4248_s6 = smov 1   ;;  %s4249_s10 = smov 2   ;;  %s4975_s0 = inlined_call_operand.smem [shape: u32[33], index: -1, kind: input, shape index: {}] }
   0x1   :  { %s4304_s5 = sld [smem:[%s4975_s0]]   ;;  %s4250_s14 = smov 3  }
   0x2   :  { %s4309_s9 = sld [smem:[%s4975_s0 + %s4248_s6]]   ;;  %s4251_s18 = smov 4  }
   0x3   :  { %s4314_s13 = sld [smem:[%s4975_s0 + %s4249_s10]]   ;;  %s4252_s22 = smov 5  }
   0x4   :  { %s4319_s17 = sld [smem:[%s4975_s0 + %s4250_s14]]   ;;  %s4253_s26 = smov 6  }
   0x5   :  { %s4324_s21 = sld [smem:[%s4975_s0 + %s4251_s18]]   ;;  %s4254_s30 = smov 7  }
   0x6   :  { %s4329_s25 = sld [smem:[%s4975_s0 + %s4252_s22]]   ;;  %s4255_s4 = smov 8  }
   0x7   :  { %5000 = sst [smem:[#allocation34_spill]] %s4304_s5  ;;  %s4256_s10 = smov 9  }
   0x8   :  { %5001 = sst [smem:[#allocation35_spill]] %s4309_s9  ;;  %s4257_s15 = smov 10  }
   0x9   :  { %5002 = sst [smem:[#allocation36_spill]] %s4314_s13  ;;  %s4258_s20 = smov 11  }
   0xa   :  { %s4334_s29 = sld [smem:[%s4975_s0 + %s4253_s26]]   ;;  %s4259_s26 = smov 12  }
   0xb   :  { %5003 = sst [smem:[#allocation37_spill]] %s4324_s21  ;;  %s4260_s1 = smov 13  }
   0xc   :  { %5004 = sst [smem:[#allocation38_spill]] %s4329_s25  ;;  %s4261_s7 = smov 14  }
   0xd   :  { %s4339_s3 = sld [smem:[%s4975_s0 + %s4254_s30]]   ;;  %s4263_s22 = smov 16  }
   0xe   :  { %s4344_s8 = sld [smem:[%s4975_s0 + %s4255_s4]]   ;;  %s4264_s28 = smov 17  }
   0xf   :  { %s4349_s14 = sld [smem:[%s4975_s0 + %s4256_s10]]   ;;  %s4279_s23 = smov 32  }
  0x10   :  { %5005 = sst [smem:[#allocation39_spill]] %s4334_s29 }
  0x11   :  { %s4354_s19 = sld [smem:[%s4975_s0 + %s4257_s15]]   ;;  %s4262_s15 = smov 15  }
  0x12   :  { %s4359_s24 = sld [smem:[%s4975_s0 + %s4258_s20]]  }
  0x13   :  { %5006 = sst [smem:[#allocation40_spill]] %s4339_s3 }
  0x14   :  { %5007 = sst [smem:[#allocation41_spill]] %s4344_s8 }
  0x15   :  { %5008 = sst [smem:[#allocation42_spill]] %s4349_s14 }
  0x16   :  { %s4364_s30 = sld [smem:[%s4975_s0 + %s4259_s26]]  }
  0x17   :  { %5009 = sst [smem:[#allocation43_spill]] %s4354_s19 }
  0x18   :  { %5010 = sst [smem:[#allocation44_spill]] %s4359_s24 }
  0x19   :  { %s4369_s6 = sld [smem:[%s4975_s0 + %s4260_s1]]  }
  0x1a   :  { %s4374_s12 = sld [smem:[%s4975_s0 + %s4261_s7]]   ;;  %s4265_s7 = smov 18  }
  0x1b   :  { %s4379_s20 = sld [smem:[%s4975_s0 + %s4262_s15]]   ;;  %s4266_s15 = smov 19  }
  0x1c   :  { %s4384_s27 = sld [smem:[%s4975_s0 + %s4263_s22]]   ;;  %s4267_s22 = smov 20  }
  0x1d   :  { %s4389_s4 = sld [smem:[%s4975_s0 + %s4264_s28]]   ;;  %s4268_s28 = smov 21  }
  0x1e   :  { %s4394_s21 = sld [smem:[%s4975_s0 + %s4265_s7]]   ;;  %s4269_s7 = smov 22  }
  0x1f   :  { %5011 = sst [smem:[#allocation45_spill]] %s4369_s6 }
  0x20   :  { %5012 = sst [smem:[#allocation46_spill]] %s4374_s12 }
  0x21   :  { %5013 = sst [smem:[#allocation47_spill]] %s4379_s20 }
  0x22   :  { %s4399_s12 = sld [smem:[%s4975_s0 + %s4266_s15]]   ;;  %s4270_s15 = smov 23  }
  0x23   :  { %5014 = sst [smem:[#allocation48_spill]] %s4389_s4 }
  0x24   :  { %s4404_s13 = sld [smem:[%s4975_s0 + %s4267_s22]]   ;;  %s4271_s22 = smov 24  }
  0x25   :  { %s4409_s4 = sld [smem:[%s4975_s0 + %s4268_s28]]   ;;  %s4272_s28 = smov 25  }
  0x26   :  { %s4414_s20 = sld [smem:[%s4975_s0 + %s4269_s7]]   ;;  %s4273_s7 = smov 26  }
  0x27   :  { %s4424_s24 = sld [smem:[%s4975_s0 + %s4271_s22]]   ;;  %s4275_s22 = smov 28  }
  0x28   :  { %5015 = sst [smem:[#allocation49_spill]] %s4399_s12 }
  0x29   :  { %s4419_s12 = sld [smem:[%s4975_s0 + %s4270_s15]]   ;;  %s4274_s15 = smov 27  }
  0x2a   :  { %5016 = sst [smem:[#allocation50_spill]] %s4404_s13 }
  0x2b   :  { %5017 = sst [smem:[#allocation51_spill]] %s4409_s4 }
  0x2c   :  { %5018 = sst [smem:[#allocation52_spill]] %s4414_s20 }
  0x2d   :  { %s4429_s8 = sld [smem:[%s4975_s0 + %s4272_s28]]   ;;  %s4276_s28 = smov 29  }
  0x2e   :  { %s4434_s20 = sld [smem:[%s4975_s0 + %s4273_s7]]   ;;  %s4277_s7 = smov 30  }
  0x2f   :  { %5019 = sst [smem:[#allocation53_spill]] %s4419_s12 }
  0x30   :  { %s4439_s12 = sld [smem:[%s4975_s0 + %s4274_s15]]   ;;  %s4278_s15 = smov 31  }
  0x31   :  { %s4444_s3 = sld [smem:[%s4975_s0 + %s4275_s22]]  }
  0x32   :  { %s4454_s29 = sld [smem:[%s4975_s0 + %s4277_s7]]  }
  0x33   :  { %5020 = sst [smem:[#allocation54_spill]] %s4429_s8 }
  0x34   :  { %5021 = sst [smem:[#allocation55_spill]] %s4434_s20 }
  0x35   :  { %s4449_s8 = sld [smem:[%s4975_s0 + %s4276_s28]]  }
  0x36   :  { %5022 = sst [smem:[#allocation56_spill]] %s4439_s12 }
  0x37   :  { %5023 = sst [smem:[#allocation57_spill]] %s4444_s3 }
  0x38   :  { %5025 = sst [smem:[#allocation59_spill]] %s4454_s29 }
  0x39   :  { %s3393_s5 = sld [smem:[%s4975_s0 + %s4278_s15]]  }
  0x3a   :  { %s4462_s3 = sld [smem:[%s4975_s0 + %s4279_s23]]  }
  0x3b   :  { %5024 = sst [smem:[#allocation58_spill]] %s4449_s8 }
  0x3f   :  { %v70_v0 = vstv %s3393_s5 }
  0x40   :  { %5026 = sst [smem:[#allocation60_spill]] %s4462_s3  ;;  %71 = vst [vmem:[#allocation2] sm:$0x1] %v70_v0 }
  0x41   :  { %72 = vsyncpa [#allocation4], 0 }
  0x42   :  { %74 = vsyncpa [#allocation4 + $0x1], 0 }
  0x43   :  { %75 = vsyncpa [#allocation7], 0 }
  0x44   :  { %77 = vsyncpa [#allocation7 + $0x1], 0 }
  0x45   :  { %78 = vsyncpa [#allocation10], 0 }
  0x46   :  { %79 = vsyncpa [#allocation13], 0 }
  0x47   :  { %80 = vsyncpa [#allocation16], 0 }
  0x48   :  { %81 = vsyncpa [#allocation19], 0 }
  0x49   :  { %82 = vsyncpa [#allocation22], 0 }
  0x4a   :  { %83 = vsyncpa [#allocation5], 0 }
  0x4b   :  { %85 = vsyncpa [#allocation5 + $0x1], 0  ;;  %s4464_s28 = smov 0   ;;  %s4466_s1 = smov 0  }
  0x4c   :  { %s4468_s2 = smov 0   ;;  %s4470_s0 = smov 0  }
  0x4d LB: > { %s5027_s9 = sld [smem:[#allocation35_spill]]  ;;  %s4488_s7 = sadd.s32 4294967295, %s4246_s0   ;;  %s4246_s0 = sphi %s4470_s0, %s5067_s0   ;;  %s4242_s2 = sphi %s4468_s2, %s5066_s2   ;;  %s4238_s1 = sphi %s4466_s1, %s5065_s1   ;;  %s4234_s28 = sphi %s4464_s28, %s5064_s28  }
  0x4e   : > { %s5028_s20 = sld [smem:[#allocation55_spill]]  ;;  %p3397_p0 = scmp.ge.s32.totalorder %s4246_s0, 1 }
  0x4f   : > { %s5029_s19 = sld [smem:[#allocation43_spill]]  ;;  %p138_p1 = scmp.eq.s32.totalorder %s4488_s7, 0 }
  0x50   : > { %s5030_s14 = sld [smem:[#allocation42_spill]]  ;;  %p819_p2 = scmp.lt.s32.totalorder %s4246_s0, 3 }
  0x51   : > { %s5031_s13 = sld [smem:[#allocation50_spill]]  ;;  %s4280_s11 = smov [#allocation8]  }
  0x52   : > { %s5032_s12 = sld [smem:[#allocation56_spill]]  ;;  %p4493_p3 = pnand %p3397_p0, %p819_p2 }
  0x53   : > { %s5033_s4 = sld [smem:[#allocation51_spill]]  ;;  %s4497_s15 = sshll.u32 %s4280_s11, 4  ;;  %s845_s15 = int_to_ptr.vmem [resolvable:$true] %s4497_s15 }
  0x54   : > { %s5034_s6 = sld [smem:[#allocation45_spill]]  ;;  %p3601_p4 = pneg %p4493_p3 }
  0x55   : > { %s857_s16 = sshll.u32 %s5029_s19, 4  ;;  %s4281_s22 = smov [#allocation9]   ;;  %s4510_s16 = int_to_ptr.hbm [resolvable:$true] %s857_s16 }
  0x56   : > { %s842_s5 = sshll.u32 %s5030_s14, 4  ;;  %p4506_p6 = pnand %p3601_p4, %p138_p1  ;;  %s4485_s5 = int_to_ptr.hbm [resolvable:$true] %s842_s5 }
  0x57   : > { %s4513_s26 = sshll.u32 %s4281_s22, 4  ;;  %s3762_s11 = sshra.s32 %s4485_s5, 4  ;;  %s3763_s11 = int_to_ptr.hbm [resolvable:$true] %s3762_s11  ;;  %s860_s26 = int_to_ptr.vmem [resolvable:$true] %s4513_s26 }
  0x58   : > { %s3764_s3 = scalar_lea.hbm %s3763_s11, 96  ;;  %p4518_p8 = pneg %p4506_p6 }
  0x59   : > { %p3765_p7 = scmp.ne.s32.totalorder %s3763_s11, %s3764_s3  ;;  %s3769_s29 = scalar_lea.hbm %s5030_s14, 96 }
  0x5a   : > { %s886_s23 = sshll.u32 %s5034_s6, 4  ;;  %p3770_p11 = scmp.lt.s32.totalorder %s3763_s11, %s5030_s14  ;;  %s4533_s23 = int_to_ptr.hbm [resolvable:$true] %s886_s23 }
  0x5b   : > { %p3767_p9 = pnand %p4518_p8, %p3765_p7  ;;  %p3771_p12 = scmp.lt.s32.totalorder %s3769_s29, %s3764_s3 }
  0x5d   : > { %p3768_p10 = pneg %p3767_p9  ;;  %p3772_p13 = por %p3771_p12, %p3770_p11 }
  0x5f   : > { %p3773_p0 = pnand %p3772_p13, %p3768_p10 }
  0x61   : > { %3776 = shalt.err (!%p3773_p0)
}
  0x62   : > { %s4987_s22 = smov 128   ;;  %s4283_s25 = smov 8  }
  0x63   : > { %3604 = dma.hbm_to_vmem [thread:$0]  (!%p4506_p6), %s4485_s5, 1536, %s845_s15, [#allocation7], %s4987_s22, %s4987_s22, %s4283_s25  }
  0x64   : > { %s3792_s29 = sshra.s32 %s4510_s16, 4  ;;  %s3799_s11 = scalar_lea.hbm %s5029_s19, 1  ;;  %s3793_s29 = int_to_ptr.hbm [resolvable:$true] %s3792_s29 }
  0x65   : > { %s3794_s3 = scalar_lea.hbm %s3793_s29, 1  ;;  %p3800_p9 = scmp.lt.s32.totalorder %s3793_s29, %s5029_s19 }
  0x66   : > { %p3795_p2 = scmp.ne.s32.totalorder %s3793_s29, %s3794_s3  ;;  %p3801_p10 = scmp.lt.s32.totalorder %s3799_s11, %s3794_s3 }
  0x68   : > { %p3797_p4 = pnand %p3795_p2, %p4518_p8  ;;  %p3802_p11 = por %p3801_p10, %p3800_p9 }
  0x6a   : > { %p3798_p7 = pneg %p3797_p4 }
  0x6c   : > { %p3803_p12 = pnand %p3802_p11, %p3798_p7 }
  0x6e   : > { %3806 = shalt.err (!%p3803_p12)
}
  0x6f   : > { %3607 = dma.hbm_to_vmem [thread:$0]  (!%p4506_p6), %s4510_s16, 16, %s860_s26, [#allocation10]  }
  0x70   : > { %s918_s5 = sshll.u32 %s4394_s21, 4  ;;  %s4284_s15 = smov [#allocation12]   ;;  %s4544_s5 = int_to_ptr.hbm [resolvable:$true] %s918_s5 }
  0x71   : > { %s888_s22 = sshll.u32 %s4284_s15, 4  ;;  %s3822_s29 = sshra.s32 %s4533_s23, 4  ;;  %s889_s22 = int_to_ptr.vmem [resolvable:$true] %s888_s22  ;;  %s3823_s29 = int_to_ptr.hbm [resolvable:$true] %s3822_s29 }
  0x72   : > { %s3824_s3 = scalar_lea.hbm %s3823_s29, 1  ;;  %s3829_s11 = scalar_lea.hbm %s5034_s6, 1 }
  0x73   : > { %p3825_p13 = scmp.ne.s32.totalorder %s3823_s29, %s3824_s3  ;;  %p3830_p4 = scmp.lt.s32.totalorder %s3823_s29, %s5034_s6 }
  0x74   : > { %p3831_p7 = scmp.lt.s32.totalorder %s3829_s11, %s3824_s3 }
  0x75   : > { %p3827_p0 = pnand %p3825_p13, %p4518_p8 }
  0x76   : > { %p3832_p9 = por %p3831_p7, %p3830_p4 }
  0x77   : > { %p3828_p2 = pneg %p3827_p0 }
  0x79   : > { %p3833_p10 = pnand %p3832_p9, %p3828_p2 }
  0x7b   : > { %3836 = shalt.err (!%p3833_p10)
}
  0x7c   : > { %3613 = dma.hbm_to_vmem [thread:$0]  (!%p4506_p6), %s4533_s23, 16, %s889_s22, [#allocation13]  }
  0x7d   : > { %s4285_s16 = smov [#allocation15]   ;;  %s949_s15 = sshll.u32 %s5033_s4, 4  ;;  %s4555_s15 = int_to_ptr.hbm [resolvable:$true] %s949_s15 }
  0x7e   : > { %s920_s26 = sshll.u32 %s4285_s16, 4  ;;  %s3852_s29 = sshra.s32 %s4544_s5, 4  ;;  %s921_s26 = int_to_ptr.vmem [resolvable:$true] %s920_s26  ;;  %s3853_s29 = int_to_ptr.hbm [resolvable:$true] %s3852_s29 }
  0x7f   : > { %s3854_s3 = scalar_lea.hbm %s3853_s29, 96  ;;  %s3859_s11 = scalar_lea.hbm %s4394_s21, 96 }
  0x80   : > { %p3855_p11 = scmp.ne.s32.totalorder %s3853_s29, %s3854_s3  ;;  %p3860_p0 = scmp.lt.s32.totalorder %s3853_s29, %s4394_s21 }
  0x81   : > { %p3861_p2 = scmp.lt.s32.totalorder %s3859_s11, %s3854_s3 }
  0x82   : > { %p3857_p12 = pnand %p3855_p11, %p4518_p8 }
  0x83   : > { %p3862_p4 = por %p3861_p2, %p3860_p0 }
  0x84   : > { %p3858_p13 = pneg %p3857_p12 }
  0x86   : > { %p3863_p7 = pnand %p3862_p4, %p3858_p13 }
  0x88   : > { %3866 = shalt.err (!%p3863_p7)
}
  0x89   : > { %s5038_s23 = smov 128   ;;  %s986_s22 = sshll.u32 %s5028_s20, 4  ;;  %s4569_s22 = int_to_ptr.hbm [resolvable:$true] %s986_s22 }
  0x8a   : > { %3619 = dma.hbm_to_vmem [thread:$0]  (!%p4506_p6), %s4544_s5, 1536, %s921_s26, [#allocation16], %s5038_s23, %s5038_s23, %s4283_s25  }
  0x8b   : > { %s4286_s16 = smov [#allocation18]   ;;  %s3882_s29 = sshra.s32 %s4555_s15, 4  ;;  %s3883_s29 = int_to_ptr.hbm [resolvable:$true] %s3882_s29 }
  0x8c   : > { %s951_s6 = sshll.u32 %s4286_s16, 4  ;;  %s3884_s3 = scalar_lea.hbm %s3883_s29, 384  ;;  %s952_s6 = int_to_ptr.vmem [resolvable:$true] %s951_s6 }
  0x8d   : > { %p3885_p9 = scmp.ne.s32.totalorder %s3883_s29, %s3884_s3  ;;  %s3889_s11 = scalar_lea.hbm %s5033_s4, 384 }
  0x8e   : > { %p3890_p12 = scmp.lt.s32.totalorder %s3883_s29, %s5033_s4  ;;  %p3891_p13 = scmp.lt.s32.totalorder %s3889_s11, %s3884_s3 }
  0x8f   : > { %p3887_p10 = pnand %p3885_p9, %p4518_p8 }
  0x90   : > { %p3892_p0 = por %p3891_p13, %p3890_p12 }
  0x91   : > { %p3888_p11 = pneg %p3887_p10 }
  0x93   : > { %p3893_p2 = pnand %p3892_p0, %p3888_p11 }
  0x95   : > { %3896 = shalt.err (!%p3893_p2)
}
  0x96   : > { %3625 = dma.hbm_to_vmem [thread:$0]  (!%p4506_p6), %s4555_s15, 6144, %s952_s6, [#allocation19], %s5038_s23, %s5038_s23, %s4283_s25  }
  0x97   : > { %s4287_s5 = smov [#allocation21]   ;;  %s871_s16 = sshll.u32 %s4364_s30, 4  ;;  %s4583_s16 = int_to_ptr.hbm [resolvable:$true] %s871_s16 }
  0x98   : > { %s988_s26 = sshll.u32 %s4287_s5, 4  ;;  %s3912_s29 = sshra.s32 %s4569_s22, 4  ;;  %s989_s26 = int_to_ptr.vmem [resolvable:$true] %s988_s26  ;;  %s3913_s29 = int_to_ptr.hbm [resolvable:$true] %s3912_s29 }
  0x99   : > { %s3914_s3 = scalar_lea.hbm %s3913_s29, 48  ;;  %s3919_s11 = scalar_lea.hbm %s5028_s20, 48 }
  0x9a   : > { %p3915_p4 = scmp.ne.s32.totalorder %s3913_s29, %s3914_s3  ;;  %p3920_p10 = scmp.lt.s32.totalorder %s3913_s29, %s5028_s20 }
  0x9b   : > { %p3921_p11 = scmp.lt.s32.totalorder %s3919_s11, %s3914_s3 }
  0x9c   : > { %p3917_p7 = pnand %p3915_p4, %p4518_p8 }
  0x9d   : > { %p3922_p12 = por %p3921_p11, %p3920_p10 }
  0x9e   : > { %p3918_p9 = pneg %p3917_p7 }
  0xa0   : > { %p3923_p13 = pnand %p3922_p12, %p3918_p9 }
  0xa2   : > { %3926 = shalt.err (!%p3923_p13)
}
  0xa3   : > { %3631 = dma.hbm_to_vmem [thread:$0]  (!%p4506_p6), %s4569_s22, 768, %s989_s26, [#allocation22], %s5038_s23, %s5038_s23, %s4283_s25  }
  0xa4   : > { %s904_s6 = sshll.u32 %s4384_s27, 4  ;;  %s4288_s15 = smov [#allocation11]   ;;  %s4597_s6 = int_to_ptr.hbm [resolvable:$true] %s904_s6 }
  0xa5   : > { %s873_s5 = sshll.u32 %s4288_s15, 4  ;;  %s3942_s29 = sshra.s32 %s4583_s16, 4  ;;  %s874_s5 = int_to_ptr.vmem [resolvable:$true] %s873_s5  ;;  %s3943_s29 = int_to_ptr.hbm [resolvable:$true] %s3942_s29 }
  0xa6   : > { %s3944_s3 = scalar_lea.hbm %s3943_s29, 48  ;;  %s3949_s11 = scalar_lea.hbm %s4364_s30, 48 }
  0xa7   : > { %p3945_p0 = scmp.ne.s32.totalorder %s3943_s29, %s3944_s3  ;;  %p3950_p7 = scmp.lt.s32.totalorder %s3943_s29, %s4364_s30 }
  0xa8   : > { %p3951_p9 = scmp.lt.s32.totalorder %s3949_s11, %s3944_s3 }
  0xa9   : > { %p3947_p2 = pnand %p3945_p0, %p4518_p8 }
  0xaa   : > { %p3952_p10 = por %p3951_p9, %p3950_p7 }
  0xab   : > { %p3948_p4 = pneg %p3947_p2 }
  0xad   : > { %p3953_p11 = pnand %p3952_p10, %p3948_p4 }
  0xaf   : > { %3956 = shalt.err (!%p3953_p11)
}
  0xb0   : > { %3610 = dma.hbm_to_vmem [thread:$0]  (!%p4506_p6), %s4583_s16, 768, %s874_s5, [#allocation10], %s5038_s23, %s5038_s23, %s4283_s25  }
  0xb1   : > { %s4289_s22 = smov [#allocation14]   ;;  %s935_s15 = sshll.u32 %s5031_s13, 4  ;;  %s4611_s15 = int_to_ptr.hbm [resolvable:$true] %s935_s15 }
  0xb2   : > { %s906_s26 = sshll.u32 %s4289_s22, 4  ;;  %s3972_s29 = sshra.s32 %s4597_s6, 4  ;;  %s907_s26 = int_to_ptr.vmem [resolvable:$true] %s906_s26  ;;  %s3973_s29 = int_to_ptr.hbm [resolvable:$true] %s3972_s29 }
  0xb3   : > { %s3974_s3 = scalar_lea.hbm %s3973_s29, 1  ;;  %s3979_s11 = scalar_lea.hbm %s4384_s27, 1 }
  0xb4   : > { %p3975_p12 = scmp.ne.s32.totalorder %s3973_s29, %s3974_s3  ;;  %p3980_p2 = scmp.lt.s32.totalorder %s3973_s29, %s4384_s27 }
  0xb5   : > { %p3981_p4 = scmp.lt.s32.totalorder %s3979_s11, %s3974_s3 }
  0xb6   : > { %p3977_p13 = pnand %p3975_p12, %p4518_p8 }
  0xb7   : > { %p3982_p7 = por %p3981_p4, %p3980_p2 }
  0xb8   : > { %p3978_p0 = pneg %p3977_p13 }
  0xba   : > { %p3983_p9 = pnand %p3982_p7, %p3978_p0 }
  0xbc   : > { %3986 = shalt.err (!%p3983_p9)
}
  0xbd   : > { %3616 = dma.hbm_to_vmem [thread:$0]  (!%p4506_p6), %s4597_s6, 16, %s907_s26, [#allocation13]  }
  0xbe   : > { %s969_s16 = sshll.u32 %s4424_s24, 4  ;;  %s4290_s5 = smov [#allocation17]   ;;  %s4622_s16 = int_to_ptr.hbm [resolvable:$true] %s969_s16 }
  0xbf   : > { %s937_s22 = sshll.u32 %s4290_s5, 4  ;;  %s4002_s29 = sshra.s32 %s4611_s15, 4  ;;  %s938_s22 = int_to_ptr.vmem [resolvable:$true] %s937_s22  ;;  %s4003_s29 = int_to_ptr.hbm [resolvable:$true] %s4002_s29 }
  0xc0   : > { %s4004_s3 = scalar_lea.hbm %s4003_s29, 24  ;;  %s4009_s11 = scalar_lea.hbm %s5031_s13, 24 }
  0xc1   : > { %p4005_p10 = scmp.ne.s32.totalorder %s4003_s29, %s4004_s3  ;;  %p4010_p13 = scmp.lt.s32.totalorder %s4003_s29, %s5031_s13 }
  0xc2   : > { %p4011_p0 = scmp.lt.s32.totalorder %s4009_s11, %s4004_s3 }
  0xc3   : > { %p4007_p11 = pnand %p4005_p10, %p4518_p8 }
  0xc4   : > { %p4012_p2 = por %p4011_p0, %p4010_p13 }
  0xc5   : > { %p4008_p12 = pneg %p4007_p11 }
  0xc7   : > { %p4013_p4 = pnand %p4012_p2, %p4008_p12 }
  0xc9   : > { %4016 = shalt.err (!%p4013_p4)
}
  0xca   : > { %3622 = dma.hbm_to_vmem [thread:$0]  (!%p4506_p6), %s4611_s15, 384, %s938_s22, [#allocation16], %s5038_s23, %s5038_s23, %s4283_s25  }
  0xcb   : > { %s4291_s6 = smov [#allocation20]   ;;  %s1000_s5 = sshll.u32 %s5032_s12, 4  ;;  %s4636_s5 = int_to_ptr.hbm [resolvable:$true] %s1000_s5 }
  0xcc   : > { %s971_s26 = sshll.u32 %s4291_s6, 4  ;;  %s4032_s29 = sshra.s32 %s4622_s16, 4  ;;  %s972_s26 = int_to_ptr.vmem [resolvable:$true] %s971_s26  ;;  %s4033_s29 = int_to_ptr.hbm [resolvable:$true] %s4032_s29 }
  0xcd   : > { %s4034_s3 = scalar_lea.hbm %s4033_s29, 192  ;;  %s4039_s11 = scalar_lea.hbm %s4424_s24, 192 }
  0xce   : > { %p4035_p7 = scmp.ne.s32.totalorder %s4033_s29, %s4034_s3  ;;  %p4040_p11 = scmp.lt.s32.totalorder %s4033_s29, %s4424_s24 }
  0xcf   : > { %p4041_p12 = scmp.lt.s32.totalorder %s4039_s11, %s4034_s3 }
  0xd0   : > { %p4037_p9 = pnand %p4035_p7, %p4518_p8 }
  0xd1   : > { %p4042_p13 = por %p4041_p12, %p4040_p11 }
  0xd2   : > { %p4038_p10 = pneg %p4037_p9 }
  0xd4   : > { %p4043_p0 = pnand %p4042_p13, %p4038_p10 }
  0xd6   : > { %4046 = shalt.err (!%p4043_p0)
}
  0xd7   : > { %3628 = dma.hbm_to_vmem [thread:$0]  (!%p4506_p6), %s4622_s16, 3072, %s972_s26, [#allocation19], %s5038_s23, %s5038_s23, %s4283_s25  }
  0xd8   : > { %s4292_s15 = smov [#allocation23]   ;;  %s4062_s6 = sshra.s32 %s4636_s5, 4  ;;  %s4063_s6 = int_to_ptr.hbm [resolvable:$true] %s4062_s6 }
  0xd9   : > { %s1002_s22 = sshll.u32 %s4292_s15, 4  ;;  %s4064_s29 = scalar_lea.hbm %s4063_s6, 768  ;;  %s1003_s22 = int_to_ptr.vmem [resolvable:$true] %s1002_s22 }
  0xda   : > { %p4065_p2 = scmp.ne.s32.totalorder %s4063_s6, %s4064_s29  ;;  %s4069_s3 = scalar_lea.hbm %s5032_s12, 768 }
  0xdb   : > { %p4070_p9 = scmp.lt.s32.totalorder %s4063_s6, %s5032_s12  ;;  %p4071_p10 = scmp.lt.s32.totalorder %s4069_s3, %s4064_s29 }
  0xdc   : > { %p4067_p4 = pnand %p4065_p2, %p4518_p8 }
  0xdd   : > { %p4072_p11 = por %p4071_p10, %p4070_p9 }
  0xde   : > { %p4068_p7 = pneg %p4067_p4 }
  0xe0   : > { %p4073_p12 = pnand %p4072_p11, %p4068_p7 }
  0xe2   : > { %4076 = shalt.err (!%p4073_p12)
}
  0xe3   : > { %3634 = dma.hbm_to_vmem [thread:$0]  (!%p4506_p6), %s4636_s5, 12288, %s1003_s22, [#allocation22], %s5038_s23, %s5038_s23, %s4283_s25  }
  0xe4   : > { %s3396_s8 = sadd.s32 4294967294, %s4246_s0   ;;  %s4662_s18 = sadd.s32 1, %s4246_s0  }
  0xe5   : > { %s124_s16 = sadd.s32 1, %s4242_s2  ;;  %s121_s26 = ssub.s32 %s4246_s0, %s4662_s18 }
  0xe6   : > { %p131_p8 = scmp.ne.s32.totalorder %s4242_s2, %s4238_s1  ;;  %p122_p13 = scmp.eq.s32.totalorder %s121_s26, 0 }
  0xe7   : > { %p132_p0 = scmp.eq.s32.totalorder %s4246_s0, 0  ;;  %p137_p2 = scmp.ne.s32.totalorder %s4238_s1, %s4234_s28 }
  0xe8   : > { %p806_p4 = scmp.eq.s32.totalorder %s4488_s7, 1  ;;  %p812_p10 = scmp.eq.s32.totalorder %s3396_s8, 1 }
  0xe9   : > { %s4674_s11 = scalar_select %p122_p13, %s4242_s2, %s124_s16  }
  0xea   : > { %p4676_p7 = por %p132_p0, %p131_p8  ;;  %p4682_p6 = por %p138_p1, %p137_p2 }
  0xeb   : > { %p4686_p9 = por %p806_p4, %p131_p8  ;;  %p3657_p11 = scmp.lt.s32.totalorder %s4246_s0, 2 }
  0xec   : > { %s4692_s5 = sand.u32 1, %s4242_s2   ;;  %p4694_p12 = por %p812_p10, %p137_p2 }
  0xed   : > { %s3410_s6 = sshll.u32 %s4692_s5, 1  ;;  %s3411_s29 = sshll.u32 %s4246_s0, 1 }
  0xee   : > { %s1042_s3 = scalar_lea.hbm %s5027_s9, %s3411_s29  ;;  %s1038_s26 = scalar_lea.vmem [#allocation3], %s3410_s6 }
  0xef   : > { %s1044_s16 = sshll.u32 %s1042_s3, 4  ;;  %s1046_s4 = sshll.u32 %s1038_s26, 4  ;;  %s1045_s16 = int_to_ptr.hbm [resolvable:$true] %s1044_s16  ;;  %s1047_s4 = int_to_ptr.vmem [resolvable:$true] %s1046_s4 }
  0xf0   : > { %p4703_p8 = pnand %p3657_p11, %p4676_p7  ;;  %s1060_s12 = sand.u32 1, %s4246_s0  }
  0xf1   : > { %s3412_s13 = sshll.u32 %s4692_s5, 3  ;;  %s1035_s14 = scalar_lea.sflag [#allocation4], %s4692_s5 }
  0xf2   : > { %s4092_s19 = sshra.s32 %s1045_s16, 4  ;;  %p4096_p0 = pneg %p4703_p8  ;;  %s4093_s19 = int_to_ptr.hbm [resolvable:$true] %s4092_s19 }
  0xf3   : > { %s4094_s29 = scalar_lea.hbm %s4093_s19, 2  ;;  %s4099_s15 = scalar_lea.hbm %s5027_s9, 4 }
  0xf4   : > { %p4095_p13 = scmp.ne.s32.totalorder %s4093_s19, %s4094_s29  ;;  %p4100_p7 = scmp.lt.s32.totalorder %s4093_s19, %s5027_s9 }
  0xf5   : > { %p4101_p10 = scmp.lt.s32.totalorder %s4099_s15, %s4094_s29 }
  0xf6   : > { %p4097_p2 = pnand %p4096_p0, %p4095_p13 }
  0xf7   : > { %p4102_p11 = por %p4101_p10, %p4100_p7 }
  0xf8   : > { %p4098_p4 = pneg %p4097_p2 }
  0xfa   : > { %p4103_p5 = pnand %p4102_p11, %p4098_p4 }
  0xfc   : > { %4106 = shalt.err (!%p4103_p5)
}
  0xfd   : > { %3638 = dma.hbm_to_vmem [thread:$0]  (!%p4703_p8), %s1045_s16, 32, %s1047_s4, %s1035_s14  }
  0xfe   : > { %s3413_s5 = sshll.u32 %s4246_s0, 3  ;;  %s1064_s6 = scalar_lea.vmem [#allocation6], %s3412_s13 }
  0xff   : > { %s1072_s3 = sshll.u32 %s1064_s6, 4  ;;  %s1068_s26 = scalar_lea.hbm %s4319_s17, %s3413_s5  ;;  %s1073_s3 = int_to_ptr.vmem [resolvable:$true] %s1072_s3 }
 0x100   : > { %s1070_s20 = sshll.u32 %s1068_s26, 4  ;;  %s1061_s19 = scalar_lea.sflag [#allocation7], %s1060_s12  ;;  %s1071_s20 = int_to_ptr.hbm [resolvable:$true] %s1070_s20 }
 0x101   : > { %s4122_s29 = sshra.s32 %s1071_s20, 4  ;;  %s4129_s9 = scalar_lea.hbm %s4319_s17, 16  ;;  %s4123_s29 = int_to_ptr.hbm [resolvable:$true] %s4122_s29 }
 0x102   : > { %s4124_s15 = scalar_lea.hbm %s4123_s29, 8  ;;  %p4130_p4 = scmp.lt.s32.totalorder %s4123_s29, %s4319_s17 }
 0x103   : > { %p4125_p5 = scmp.ne.s32.totalorder %s4123_s29, %s4124_s15  ;;  %p4131_p7 = scmp.lt.s32.totalorder %s4129_s9, %s4124_s15 }
 0x105   : > { %p4127_p13 = pnand %p4125_p5, %p4096_p0  ;;  %p4132_p10 = por %p4131_p7, %p4130_p4 }
 0x107   : > { %p4128_p2 = pneg %p4127_p13 }
 0x109   : > { %p4133_p11 = pnand %p4132_p10, %p4128_p2 }
 0x10b   : > { %4136 = shalt.err (!%p4133_p11)
}
 0x10c   : > { %3641 = dma.hbm_to_vmem [thread:$0]  (!%p4703_p8), %s1071_s20, 128, %s1073_s3, %s1061_s19  }
 0x10d   : > { %1089 = sbr.rel (%p4493_p3) target bundleno = 2802 (0xaf2), region = 148  ;;  %s4731_s13 = sand.u32 (!%p4493_p3), 1, %s4238_s1  }
 0x10e   : > { %s3415_s14 = sshll.u32 (!%p4493_p3), %s4731_s13, 1  ;;  %s1092_s12 = scalar_lea.sflag (!%p4493_p3), [#allocation4], %s4731_s13 }
 0x10f   : > { %s4735_s4 = scalar_lea.vmem (!%p4493_p3), [#allocation3], %s3415_s14 }
 0x112   : > { %4197 = dma.done.wait (%p4682_p6), %s1092_s12, 32  }
 0x113   : > { %4199 = vsyncadd (%p4682_p6), %s1092_s12, 4294967264  ;;  %s1101_s9 = sand.u32 1, %s4488_s7   ;;  %s3416_s20 = sshll.u32 %s4731_s13, 3 }
 0x114   : > { %s1102_s10 = scalar_lea.sflag [#allocation7], %s1101_s9  ;;  %s4743_s16 = scalar_lea.vmem [#allocation6], %s3416_s20 }
 0x115   : > { %4201 = dma.done.wait (%p4682_p6), %s1102_s10, 128  }
 0x116   : > { %4203 = vsyncadd (%p4682_p6), %s1102_s10, 4294967168 }
 0x117   : > { %4205 = dma.done.wait (%p138_p1), [#allocation7], 1536  }
 0x118   : > { %4207 = vsyncadd (%p138_p1), [#allocation7], 4294965760 }
 0x119   : > { %4209 = dma.done.wait (%p138_p1), [#allocation10], 784  }
 0x11a   : > { %4211 = vsyncadd (%p138_p1), [#allocation10], 4294966512 }
 0x11b   : > { %4213 = dma.done.wait (%p138_p1), [#allocation13], 32  }
 0x11c   : > { %4215 = vsyncadd (%p138_p1), [#allocation13], 4294967264 }
 0x11d   : > { %4217 = dma.done.wait (%p138_p1), [#allocation16], 1920  }
 0x11e   : > { %4219 = vsyncadd (%p138_p1), [#allocation16], 4294965376 }
 0x11f   : > { %4221 = dma.done.wait (%p138_p1), [#allocation19], 9216  }
 0x120   : > { %4223 = vsyncadd (%p138_p1), [#allocation19], 4294958080 }
 0x121   : > { %4225 = dma.done.wait (%p138_p1), [#allocation22], 13056  }
 0x122   : > { %4227 = vsyncadd (%p138_p1), [#allocation22], 4294954240  ;;  %s5044_s25 = sld [smem:[#allocation38_spill]]  ;;  %p1259_p3 = scmp.lt.s32.totalorder %s4488_s7, 1  ;;  %v4293_v1 = vmov 0   ;;  %vm1294_vm0 = vcmask 64512  }
 0x123   : > { %s5045_s8 = sld [smem:[#allocation34_spill]]  ;;  %3751 = vset.pattern.permute.xlu1 %v4293_v1  ;;  %3750 = vset.pattern.permute.xlu0 %v4293_v1  ;;  %v3752_v4 = vld [vmem:[#allocation2] ss:$0 sm:$0xff]  ;;  %v1385_v16 = vld [vmem:[#allocation8 + $0x38] sm:$0xff]  ;;  %v1384_v18 = vld [vmem:[#allocation8 + $0x30] sm:$0xff]  ;;  %vm1386_vm1 = vcmask 130048  }
 0x124   : > { %s5046_s5 = sld [smem:[#allocation39_spill]]  ;;  %v1382_v17 = vld [vmem:[#allocation8 + $0x8] sm:$0xff]  ;;  %v1381_v19 = vld [vmem:[#allocation8] sm:$0xff]  ;;  %v1436_v20 = vld [vmem:[#allocation8 + $0x18] sm:$0xff]  ;;  %vm1486_vm2 = vcmask 1041408   ;;  %vm1482_vm3 = vcmask 15360  }
 0x125   : > { %s4775_s6 = scalar_select %p1259_p3, %s4488_s7, 1  ;;  %v1272_v21 = vld [vmem:[%s4735_s4] sm:$0x3]  ;;  %v1435_v22 = vld [vmem:[#allocation8 + $0x10] sm:$0xff]  ;;  %v1438_v24 = vld [vmem:[#allocation8 + $0x40] sm:$0xff]  ;;  %vm1788_vm4 = vcmask 261120  }
 0x126   : > { %s5047_s26 = sld [smem:[#allocation40_spill]]  ;;  %v1439_v23 = vld [vmem:[#allocation8 + $0x48] sm:$0xff]  ;;  %v1537_v26 = vld [vmem:[#allocation8 + $0x20] sm:$0xff]  ;;  %v1541_v35 = vld [vmem:[#allocation8 + $0x58] sm:$0xff]  ;;  %vm1892_vm5 = vcmask 1043456   ;;  %vm1888_vm6 = vcmask 31744  }
 0x127   : > { %v1538_v25 = vld [vmem:[#allocation8 + $0x28] sm:$0xff]  ;;  %s5048_s19 = sld [smem:[#allocation41_spill]]  ;;  %v1540_v36 = vld [vmem:[#allocation8 + $0x50] sm:$0xff]  ;;  %v1674_v49 = vld [vmem:[#allocation11 + $0x18] sm:$0xff]  ;;  %s3429_s12 = sshll.u32 %s4775_s6, 2  ;;  %vm2212_vm7 = vcmask 523264  }
 0x128   : > { %v3436_v2 = vld [vmem:[%s5044_s25 + $0x4] sm:$0x3]  ;;  %v3432_v3 = vld [vmem:[%s5044_s25 + $0x2] sm:$0x3]  ;;  %v1273_v5 = vld [vmem:[%s5044_s25] sm:$0x3] }
 0x129   : > { %s1261_s3 = scalar_lea.vmem %s5045_s8, %s4775_s6  ;;  %1345 = vperm.xlu0 %3750, %v3436_v2   ;;  %1288 = vperm.xlu1 %3751, %v3432_v3   ;;  %s5049_s29 = sld [smem:[#allocation44_spill]]  ;;  %v1646_v50 = vld [vmem:[#allocation11 + $0x8] sm:$0xff]  ;;  %v3755_v54 = vld [vmem:[#allocation9] ss:$0 sm:$0xff]  ;;  %v1673_v62 = vld [vmem:[#allocation11 + $0x10] sm:$0xff] }
 0x12a   : > { %v3437_v6 = vld [vmem:[%s5046_s5 + $0x10] sm:$0xff]  ;;  %v3433_v7 = vld [vmem:[%s5046_s5 + $0x8] sm:$0xff]  ;;  %v1283_v8 = vld [vmem:[%s5046_s5] sm:$0xff]  ;;  %s5050_s15 = sld [smem:[#allocation47_spill]] }
 0x12b   : > { %1369 = vmatpush.msra.mxu2 %v3437_v6  ;;  %1313 = vmatpush.msra.mxu0 %v3433_v7  ;;  %v3753_v9 = vld [vmem:[%s1261_s3] ss:$0 sm:$0xff]  ;;  %v1645_v63 = vld [vmem:[#allocation11] sm:$0xff]  ;;  %s5051_s14 = sld [smem:[#allocation36_spill]] }
 0x12c   : > { %1336 = vmatpush.msra.mxu1 %v1283_v8  ;;  %v3754_v30 = vld [vmem:[%s5047_s26] ss:$0 sm:$0xff]  ;;  %v1747_v1 = vld [vmem:[#allocation11 + $0x20] sm:$0xff]  ;;  %s5052_s9 = sld [smem:[#allocation46_spill]]  ;;  %s3549_s26 = sshll.u32 %s4775_s6, 4 }
 0x12d   : > { %1427 = vmatpush.msrb.mxu0 %v1382_v17  ;;  %1474 = vmatpush.msrb.mxu2 %v1436_v20  ;;  %v1433_v40 = vld [vmem:[%s5048_s19] sm:$0x3]  ;;  %v3443_v44 = vld [vmem:[%s5048_s19 + $0x2] sm:$0x3]  ;;  %v3450_v48 = vld [vmem:[%s5048_s19 + $0x4] sm:$0x3] }
 0x12e   : > { %1404 = vmatpush.msrb.mxu1 %v1385_v16  ;;  %v1748_v0 = vld [vmem:[#allocation11 + $0x28] sm:$0xff]  ;;  %s5053_s20 = sld [smem:[#allocation48_spill]] }
 0x12f   : > { %1428 = vmatpush.msrb.mxu0 %v1381_v19  ;;  %1475 = vmatpush.msrb.mxu2 %v1435_v22  ;;  %v1618_v59 = vld [vmem:[%s5049_s29] sm:$0xf]  ;;  %v3455_v60 = vld [vmem:[%s5049_s29 + $0x4] sm:$0xf]  ;;  %v3460_v61 = vld [vmem:[%s5049_s29 + $0x8] sm:$0xf] }
 0x130   : > { %1405 = vmatpush.msrb.mxu1 %v1384_v18  ;;  %v1782_v6 = vld [vmem:[%s5050_s15 + $0x18] sm:$0xff]  ;;  %v3471_v16 = vld [vmem:[%s5050_s15 + $0x28] sm:$0xff]  ;;  %v3464_v17 = vld [vmem:[%s5050_s15 + $0x60] sm:$0xff]  ;;  %s5054_s10 = sld [smem:[#allocation49_spill]] }
 0x131   : > { %3067 = vperm.xlu1 %3751, %v3752_v4   ;;  %1276 = vperm.xlu0 %3750, %v1273_v5   ;;  %v3467_v5 = vld [vmem:[%s5050_s15 + $0x78] sm:$0xff]  ;;  %s1265_s4 = scalar_lea.vmem %s5051_s14, %s3429_s12  ;;  %v1779_v18 = vld [vmem:[%s5050_s15] sm:$0xff]  ;;  %s5056_s8 = sld [smem:[#allocation53_spill]] }
 0x132   : > { %v3477_v7 = vld [vmem:[%s5050_s15 + $0x98] sm:$0xff]  ;;  %v3474_v19 = vld [vmem:[%s5050_s15 + $0x80] sm:$0xff]  ;;  %s5057_s3 = sld [smem:[#allocation37_spill]] }
 0x133   : > { %v3473_v8 = vld [vmem:[%s5050_s15 + $0x38] sm:$0xff]  ;;  %v3470_v20 = vld [vmem:[%s5050_s15 + $0x20] sm:$0xff]  ;;  %s5058_s6 = sld [smem:[#allocation54_spill]] }
 0x134   : > { %v3492_v22 = vld [vmem:[%s5050_s15 + $0xb8] sm:$0xff]  ;;  %s5059_s12 = sld [smem:[#allocation59_spill]] }
 0x138   : > { %s4902_s14 = scalar_lea.vmem %s5057_s3, %s3549_s26  ;;  %s3428_s3 = sshll.u32 %s4731_s13, 5 }
 0x139   : > { %s1258_s26 = scalar_lea.vmem [#allocation24], %s3428_s3  ;;  %s3116_s3 = scalar_lea.sflag [#allocation5], %s4731_s13 }
 0x19b   : > { %v1346_v10 = vpop.permute.xlu0 %1345  ;;  %v1289_v11 = vpop.permute.xlu1 %1288 }
 0x19c   : > { %v1348_v12 = vmul.f32 %v3753_v9, %v1346_v10  ;;  %v1291_v13 = vmul.f32 %v3753_v9, %v1289_v11  ;;  %v1781_v10 = vld [vmem:[%s5050_s15 + $0x10] sm:$0xff] }
 0x19d   : > { %v3476_v11 = vld [vmem:[%s5050_s15 + $0x90] sm:$0xff] }
 0x19e   : > { %3438 = vmatmul.msk.f32.vlgmr.msra.gmra.mxu2 %vm1294_vm0, %v1348_v12  ;;  %3434 = vmatmul.msk.f32.vlgmr.msra.gmra.mxu0 %vm1294_vm0, %v1291_v13  ;;  %v3472_v12 = vld [vmem:[%s5050_s15 + $0x30] sm:$0xff]  ;;  %v3465_v13 = vld [vmem:[%s5050_s15 + $0x68] sm:$0xff] }
 0x19f   : > { %1576 = vmatpush.msra.mxu2 %v1538_v25  ;;  %v3487_v25 = vld [vmem:[%s5050_s15 + $0x50] sm:$0xff] }
 0x1a1   : > { %1577 = vmatpush.msra.mxu2 %v1537_v26  ;;  %v3490_v26 = vld [vmem:[%s5050_s15 + $0xa8] sm:$0xff] }
 0x1a3   : > { %v1277_v14 = vpop.permute.xlu0 %1276 }
 0x1a4   : > { %v1282_v15 = vmul.f32 %v3753_v9, %v1277_v14  ;;  %v3466_v9 = vld [vmem:[%s5050_s15 + $0x70] sm:$0xff]  ;;  %v1780_v14 = vld [vmem:[%s5050_s15 + $0x8] sm:$0xff] }
 0x1a6   : > { %3435 = vmatmul.msk.f32.vlgmr.msra.gmra.mxu1 %vm1294_vm0, %v1282_v15  ;;  %3440 = vmatmul.msk.f32.vlgmr.msrb.gmra.mxu0 %vm1386_vm1, %v1272_v21  ;;  %v3475_v15 = vld [vmem:[%s5050_s15 + $0x88] sm:$0xff] }
 0x1a7   : > { %1454 = vmatpush.msra.mxu1 %v1439_v23  ;;  %3442 = vmatmul.msk.f32.vlgmr.msrb.gmra.mxu2 %vm1386_vm1, %v1272_v21  ;;  %v3488_v23 = vld [vmem:[%s5050_s15 + $0x58] sm:$0xff] }
 0x1a8   : > { %1692 = vmatpush.msrb.mxu2 %v1674_v49  ;;  %v3495_v49 = vld [vmem:[%s5052_s9 + $0x8] sm:$0xf] }
 0x1a9   : > { %1455 = vmatpush.msra.mxu1 %v1438_v24  ;;  %v3491_v24 = vld [vmem:[%s5050_s15 + $0xb0] sm:$0xff] }
 0x1aa   : > { %1693 = vmatpush.msrb.mxu2 %v1673_v62  ;;  %v3500_v62 = vld [vmem:[%s5053_s20 + $0x8] sm:$0xff] }
 0x1af   : > { %3449 = vmatmul.msk.f32.vlgmr.msra.gmra.mxu2 %vm1386_vm1, %v1272_v21  ;;  %v1617_v21 = vld [vmem:[%s1265_s4] sm:$0xf]  ;;  %s5060_s4 = sld [smem:[#allocation57_spill]] }
 0x1b0   : > { %1804 = vmatpush.msra.mxu2 %v3467_v5  ;;  %v2163_v5 = vld [vmem:[#allocation15 + $0x50] sm:$0xff] }
 0x1b2   : > { %1805 = vmatpush.msra.mxu2 %v3466_v9  ;;  %v2277_v9 = vld [vmem:[#allocation18 + $0x138] sm:$0xff] }
 0x1b4   : > { %1806 = vmatpush.msra.mxu2 %v3465_v13  ;;  %v2201_v13 = vld [vmem:[#allocation18 + $0x30] sm:$0xff] }
 0x1b6   : > { %1807 = vmatpush.msra.mxu2 %v3464_v17  ;;  %v2210_v17 = vld [vmem:[#allocation18 + $0xf0] sm:$0xff] }
 0x21b   : > { %v1315_v27 = vpop.f32.mrf.mxu0 }
 0x221   : > { %v1371_v31 = vpop.f32.mrf.mxu2 }
 0x223   : > { %v1338_v28 = vpop.f32.mrf.mxu1  ;;  %v1430_v37 = vpop.f32.mrf.mxu0 }
 0x224   : > { %v1339_v29 = vadd.f32 %v1338_v28, %v1315_v27  ;;  %v3486_v27 = vld [vmem:[%s5050_s15 + $0x48] sm:$0xff]  ;;  %v3489_v28 = vld [vmem:[%s5050_s15 + $0xa0] sm:$0xff] }
 0x226   : > { %v1374_v32 = vadd.f32 %v1371_v31, %v1339_v29  ;;  %v3485_v29 = vld [vmem:[%s5050_s15 + $0x40] sm:$0xff] }
 0x228   : > { %v1379_v33 = vadd.f32 %v3754_v30, %v1374_v32 }
 0x22a   : > { %v1380_v34 = vmax.f32 %v1379_v33, 0.0  ;;  %v1477_v41 = vpop.f32.mrf.mxu2  ;;  %v3756_v33 = vld [vmem:[#allocation12] ss:$0 sm:$0xff] }
 0x22c   : > { %3439 = vmatmul.msk.f32.vlgmr.msrb.gmra.mxu1 %vm1386_vm1, %v1380_v34 }
 0x22d   : > { %1556 = vmatpush.msrb.mxu1 %v1541_v35 }
 0x22f   : > { %1557 = vmatpush.msrb.mxu1 %v1540_v36 }
 0x232   : > { %v1579_v45 = vpop.f32.mrf.mxu2 }
 0x234   : > { %3441 = vmatmul.msk.f32.vlgmr.msra.gmra.mxu1 %vm1386_vm1, %v1380_v34 }
 0x23c   : > { %3448 = vmatmul.msk.f32.vlgmr.msrb.gmra.mxu1 %vm1386_vm1, %v1380_v34 }
 0x2a9   : > { %v1407_v38 = vpop.f32.mrf.mxu1 }
 0x2aa   : > { %v1431_v39 = vadd.f32 %v1430_v37, %v1407_v38 }
 0x2ac   : > { %3446 = vmatpush.msk.msra.mxu0 %vm1486_vm2, %v1431_v39 }
 0x2ad   : > { %3447 = vmatmul.msk.f32.vlgmr.msra.gmra.mxu0 %vm1482_vm3, %v1433_v40 }
 0x2b1   : > { %v1457_v42 = vpop.f32.mrf.mxu1 }
 0x2b2   : > { %v1478_v43 = vadd.f32 %v1477_v41, %v1457_v42  ;;  %v3480_v41 = vld [vmem:[%s5052_s9 + $0x4] sm:$0xf] }
 0x2b4   : > { %3444 = vmatpush.msk.msra.mxu3 %vm1486_vm2, %v1478_v43 }
 0x2b5   : > { %3445 = vmatmul.msk.f32.vlgmr.msra.gmra.mxu3 %vm1482_vm3, %v3443_v44 }
 0x2b9   : > { %v1559_v46 = vpop.f32.mrf.mxu1 }
 0x2ba   : > { %v1580_v47 = vadd.f32 %v1579_v45, %v1559_v46  ;;  %v1835_v46 = vld [vmem:[%s5052_s9] sm:$0xf] }
 0x2bc   : > { %3451 = vmatpush.msk.msrb.mxu3 %vm1486_vm2, %v1580_v47 }
 0x2bd   : > { %3452 = vmatmul.msk.f32.vlgmr.msrb.gmra.mxu3 %vm1482_vm3, %v3450_v48 }
 0x2be   : > { %1715 = vmatpush.msra.mxu3 %v1646_v50  ;;  %v2058_v50 = vld [vmem:[#allocation15 + $0x18] sm:$0xff] }
 0x2c0   : > { %1716 = vmatpush.msra.mxu3 %v1645_v63  ;;  %v3505_v63 = vld [vmem:[%s5053_s20 + $0x10] sm:$0xff] }
 0x2c2   : > { %1827 = vmatpush.msrb.mxu3 %v1782_v6  ;;  %v2162_v6 = vld [vmem:[#allocation15 + $0x48] sm:$0xff] }
 0x2c4   : > { %1828 = vmatpush.msrb.mxu3 %v1781_v10  ;;  %v2276_v10 = vld [vmem:[#allocation18 + $0x130] sm:$0xff] }
 0x2c6   : > { %1829 = vmatpush.msrb.mxu3 %v1780_v14  ;;  %v2200_v14 = vld [vmem:[#allocation18 + $0x28] sm:$0xff] }
 0x2c8   : > { %1830 = vmatpush.msrb.mxu3 %v1779_v18  ;;  %v2199_v18 = vld [vmem:[#allocation18 + $0x20] sm:$0xff] }
 0x32a   : > { %v1533_v52 = vpop.f32.mrf.mxu0 }
 0x338   : > { %v1507_v51 = vpop.f32.mrf.mxu3 }
 0x339   : > { %v1534_v53 = vadd.f32 %v1533_v52, %v1507_v51  ;;  %v2057_v51 = vld [vmem:[#allocation15 + $0x10] sm:$0xff]  ;;  %v2056_v52 = vld [vmem:[#allocation15 + $0x8] sm:$0xff] }
 0x340   : > { %v1607_v55 = vpop.f32.mrf.mxu3 }
 0x341   : > { %v1610_v56 = vadd.f32 %v1607_v55, %v1534_v53 }
 0x343   : > { %v1615_v57 = vadd.f32 %v3755_v54, %v1610_v56  ;;  %v3757_v56 = vld [vmem:[#allocation14] ss:$0 sm:$0xff] }
 0x345   : > { %v1616_v58 = vmax.f32 %v1615_v57, 0.0 }
 0x347   : > { %3453 = vmatpush.msk.msrb.mxu0 %vm1486_vm2, %v1616_v58  ;;  %3456 = vmatpush.msk.msra.mxu1 %vm1486_vm2, %v1616_v58 }
 0x348   : > { %3454 = vmatmul.msk.f32.vlgmr.msrb.gmra.mxu0 %vm1482_vm3, %v1618_v59  ;;  %3457 = vmatmul.msk.f32.vlgmr.msra.gmra.mxu1 %vm1482_vm3, %v3455_v60 }
 0x349   : > { %3461 = vmatpush.msk.msra.mxu0 %vm1486_vm2, %v1616_v58  ;;  %1766 = vmatpush.msrb.mxu1 %v1748_v0  ;;  %v2088_v0 = vld [vmem:[#allocation15 + $0x38] sm:$0xff] }
 0x34b   : > { %1767 = vmatpush.msrb.mxu1 %v1747_v1  ;;  %1858 = vmatpush.msrb.mxu0 %v3477_v7  ;;  %v2055_v1 = vld [vmem:[#allocation15] sm:$0xff] }
 0x34c   : > { %v2085_v7 = vld [vmem:[#allocation15 + $0x20] sm:$0xff] }
 0x34d   : > { %1878 = vmatpush.msra.mxu1 %v3473_v8  ;;  %1859 = vmatpush.msrb.mxu0 %v3476_v11  ;;  %v2161_v8 = vld [vmem:[#allocation15 + $0x40] sm:$0xff]  ;;  %v2202_v11 = vld [vmem:[#allocation18 + $0x38] sm:$0xff] }
 0x34f   : > { %1879 = vmatpush.msra.mxu1 %v3472_v12  ;;  %1860 = vmatpush.msrb.mxu0 %v3475_v15  ;;  %v2275_v12 = vld [vmem:[#allocation18 + $0x128] sm:$0xff]  ;;  %v2211_v15 = vld [vmem:[#allocation18 + $0xf8] sm:$0xff] }
 0x350   : > { %3462 = vmatmul.msk.f32.vlgmr.msra.gmra.mxu0 %vm1482_vm3, %v3460_v61  ;;  %v2028_v61 = vld [vmem:[%s5053_s20] sm:$0xff] }
 0x351   : > { %1880 = vmatpush.msra.mxu1 %v3471_v16  ;;  %1861 = vmatpush.msrb.mxu0 %v3474_v19  ;;  %v2274_v16 = vld [vmem:[#allocation18 + $0x120] sm:$0xff]  ;;  %v2209_v19 = vld [vmem:[#allocation18 + $0xe8] sm:$0xff] }
 0x353   : > { %1881 = vmatpush.msra.mxu1 %v3470_v20  ;;  %1964 = vmatpush.msra.mxu0 %v3492_v22  ;;  %v2273_v20 = vld [vmem:[#allocation18 + $0x118] sm:$0xff]  ;;  %v2272_v22 = vld [vmem:[#allocation18 + $0x110] sm:$0xff] }
 0x355   : > { %1965 = vmatpush.msra.mxu0 %v3491_v24  ;;  %v2271_v24 = vld [vmem:[#allocation18 + $0x108] sm:$0xff] }
 0x357   : > { %1966 = vmatpush.msra.mxu0 %v3490_v26  ;;  %v2268_v26 = vld [vmem:[#allocation18 + $0x78] sm:$0xff] }
 0x359   : > { %1967 = vmatpush.msra.mxu0 %v3489_v28 }
 0x3c5   : > { %v1642_v2 = vpop.f32.mrf.mxu0  ;;  %v1669_v3 = vpop.f32.mrf.mxu1 }
 0x3c6   : > { %3458 = vmatmul.msk.f32.vlgmr.msrb.gmra.mxu2 %vm1386_vm1, %v1669_v3  ;;  %3459 = vmatmul.msk.f32.vlgmr.msra.gmra.mxu3 %vm1386_vm1, %v1642_v2  ;;  %v2087_v2 = vld [vmem:[#allocation15 + $0x30] sm:$0xff]  ;;  %v2164_v3 = vld [vmem:[#allocation15 + $0x58] sm:$0xff] }
 0x3cd   : > { %v1743_v4 = vpop.f32.mrf.mxu0 }
 0x3ce   : > { %3463 = vmatmul.msk.f32.vlgmr.msrb.gmra.mxu1 %vm1386_vm1, %v1743_v4  ;;  %3469 = vmatmul.msk.f32.vlgmr.msrb.gmra.mxu3 %vm1788_vm4, %v1617_v21  ;;  %v2086_v4 = vld [vmem:[#allocation15 + $0x28] sm:$0xff] }
 0x3cf   : > { %1984 = vmatpush.msrb.mxu1 %v3488_v23  ;;  %v2197_v23 = vld [vmem:[#allocation18 + $0x10] sm:$0xff] }
 0x3d1   : > { %1985 = vmatpush.msrb.mxu1 %v3487_v25  ;;  %v2270_v25 = vld [vmem:[#allocation18 + $0x100] sm:$0xff] }
 0x3d3   : > { %1986 = vmatpush.msrb.mxu1 %v3486_v27  ;;  %v2267_v27 = vld [vmem:[#allocation18 + $0x70] sm:$0xff] }
 0x3d5   : > { %1987 = vmatpush.msrb.mxu1 %v3485_v29  ;;  %v2266_v29 = vld [vmem:[#allocation18 + $0x68] sm:$0xff] }
 0x3d6   : > { %3479 = vmatmul.msk.f32.vlgmr.msra.gmra.mxu1 %vm1788_vm4, %v1617_v21 }
 0x3d7   : > { %2104 = vmatpush.msra.mxu1 %v2088_v0  ;;  %v2380_v0 = vld [vmem:[#allocation18 + $0x160] sm:$0xff] }
 0x3d9   : > { %2105 = vmatpush.msra.mxu1 %v2087_v2  ;;  %v2378_v2 = vld [vmem:[#allocation18 + $0x150] sm:$0xff] }
 0x3db   : > { %2106 = vmatpush.msra.mxu1 %v2086_v4  ;;  %v2376_v4 = vld [vmem:[#allocation18 + $0x140] sm:$0xff] }
 0x3dd   : > { %2107 = vmatpush.msra.mxu1 %v2085_v7 }
 0x3de   : > { %3494 = vmatmul.msk.f32.vlgmr.msrb.gmra.mxu1 %vm1788_vm4, %v1617_v21  ;;  %v2198_v21 = vld [vmem:[#allocation18 + $0x18] sm:$0xff] }
 0x3df   : > { %2224 = vmatpush.msrb.mxu1 %v2211_v15 }
 0x3e1   : > { %2225 = vmatpush.msrb.mxu1 %v2210_v17  ;;  %v2496_v17 = vld [vmem:[#allocation20 + $0x38] sm:$0xff] }
 0x3e3   : > { %2226 = vmatpush.msrb.mxu1 %v2209_v19  ;;  %v2494_v19 = vld [vmem:[#allocation20 + $0x28] sm:$0xff] }
 0x449   : > { %v1695_v30 = vpop.f32.mrf.mxu2  ;;  %v1718_v31 = vpop.f32.mrf.mxu3 }
 0x44a   : > { %v1719_v32 = vadd.f32 %v1718_v31, %v1695_v30 }
 0x44b   : > { %v1769_v34 = vpop.f32.mrf.mxu1 }
 0x44c   : > { %v1772_v35 = vadd.f32 %v1769_v34, %v1719_v32  ;;  %v2208_v32 = vld [vmem:[#allocation18 + $0xe0] sm:$0xff] }
 0x44d   : > { %2227 = vmatpush.msrb.mxu1 %v2208_v32  ;;  %v2265_v34 = vld [vmem:[#allocation18 + $0x60] sm:$0xff] }
 0x44e   : > { %v1777_v36 = vadd.f32 %v3756_v33, %v1772_v35  ;;  %v2196_v33 = vld [vmem:[#allocation18 + $0x8] sm:$0xff]  ;;  %v2207_v35 = vld [vmem:[#allocation18 + $0xd8] sm:$0xff] }
 0x44f   : > { %2228 = vmatpush.msrb.mxu1 %v2207_v35  ;;  %v2458_v32 = vld [vmem:[%s5056_s8] sm:$0xff] }
 0x450   : > { %v1778_v37 = vmax.f32 %v1777_v36, 0.0  ;;  %v2195_v36 = vld [vmem:[#allocation18] sm:$0xff]  ;;  %v2537_v35 = vld [vmem:[#allocation20 + $0x78] sm:$0xff] }
 0x451   : > { %v1832_v42 = vpop.f32.mrf.mxu3 }
 0x452   : > { %3468 = vmatmul.msk.f32.vlgmr.msra.gmra.mxu2 %vm1788_vm4, %v1778_v37  ;;  %3478 = vmatmul.msk.f32.vlgmr.msrb.gmra.mxu0 %vm1788_vm4, %v1778_v37 }
 0x453   : > { %v1883_v38 = vpop.f32.mrf.mxu1 }
 0x45a   : > { %3493 = vmatmul.msk.f32.vlgmr.msra.gmra.mxu0 %vm1788_vm4, %v1778_v37  ;;  %v2027_v37 = vld [vmem:[%s4743_s16] sm:$0xff]  ;;  %s5055_s16 = sld [smem:[#allocation52_spill]] }
 0x45b   : > { %v1989_v44 = vpop.f32.mrf.mxu1 }
 0x4cf   : > { %v1863_v39 = vpop.f32.mrf.mxu0 }
 0x4d0   : > { %v1884_v40 = vadd.f32 %v1883_v38, %v1863_v39  ;;  %v2264_v38 = vld [vmem:[#allocation18 + $0x58] sm:$0xff]  ;;  %v2206_v39 = vld [vmem:[#allocation18 + $0xd0] sm:$0xff] }
 0x4d1   : > { %2229 = vmatpush.msrb.mxu1 %v2206_v39  ;;  %v2535_v39 = vld [vmem:[#allocation20 + $0x68] sm:$0xff] }
 0x4d2   : > { %3481 = vmatpush.msk.msrb.mxu2 %vm1892_vm5, %v1884_v40  ;;  %v2263_v40 = vld [vmem:[#allocation18 + $0x50] sm:$0xff] }
 0x4d3   : > { %3482 = vmatmul.msk.f32.vlgmr.msrb.gmra.mxu2 %vm1888_vm6, %v3480_v41  ;;  %v2205_v41 = vld [vmem:[#allocation18 + $0xc8] sm:$0xff] }
 0x4d4   : > { %2230 = vmatpush.msrb.mxu1 %v2205_v41  ;;  %v2459_v41 = vld [vmem:[%s5056_s8 + $0x8] sm:$0xff] }
 0x4d5   : > { %v1809_v43 = vpop.f32.mrf.mxu2 }
 0x4d6   : > { %v1833_v45 = vadd.f32 %v1832_v42, %v1809_v43  ;;  %v2262_v42 = vld [vmem:[#allocation18 + $0x48] sm:$0xff]  ;;  %v2204_v43 = vld [vmem:[#allocation18 + $0xc0] sm:$0xff] }
 0x4d7   : > { %v1969_v47 = vpop.f32.mrf.mxu0  ;;  %2231 = vmatpush.msrb.mxu1 %v2204_v43  ;;  %v3529_v43 = vld [vmem:[%s5056_s8 + $0x28] sm:$0xff] }
 0x4d8   : > { %v1990_v48 = vadd.f32 %v1989_v44, %v1969_v47  ;;  %3483 = vmatpush.msk.msra.mxu3 %vm1892_vm5, %v1833_v45  ;;  %v2261_v44 = vld [vmem:[#allocation18 + $0x40] sm:$0xff]  ;;  %v2374_v45 = vld [vmem:[#allocation18 + $0xb8] sm:$0xff]  ;;  %v2372_v47 = vld [vmem:[#allocation18 + $0xa8] sm:$0xff] }
 0x4d9   : > { %3484 = vmatmul.msk.f32.vlgmr.msra.gmra.mxu3 %vm1888_vm6, %v1835_v46  ;;  %v2373_v46 = vld [vmem:[#allocation18 + $0xb0] sm:$0xff] }
 0x4da   : > { %3496 = vmatpush.msk.msra.mxu2 %vm1892_vm5, %v1990_v48  ;;  %v2371_v48 = vld [vmem:[#allocation18 + $0xa0] sm:$0xff] }
 0x4db   : > { %3497 = vmatmul.msk.f32.vlgmr.msra.gmra.mxu2 %vm1888_vm6, %v3495_v49  ;;  %v2370_v49 = vld [vmem:[#allocation18 + $0x98] sm:$0xff] }
 0x4dc   : > { %2127 = vmatpush.msrb.mxu2 %v2058_v50  ;;  %v2369_v50 = vld [vmem:[#allocation18 + $0x90] sm:$0xff] }
 0x4de   : > { %2128 = vmatpush.msrb.mxu2 %v2057_v51  ;;  %v2368_v51 = vld [vmem:[#allocation18 + $0x88] sm:$0xff] }
 0x4e0   : > { %2129 = vmatpush.msrb.mxu2 %v2056_v52  ;;  %v2367_v52 = vld [vmem:[#allocation18 + $0x80] sm:$0xff] }
 0x4e2   : > { %2130 = vmatpush.msrb.mxu2 %v2055_v1  ;;  %v2379_v1 = vld [vmem:[#allocation18 + $0x158] sm:$0xff] }
 0x4e4   : > { %2247 = vmatpush.msra.mxu2 %v2202_v11 }
 0x4e6   : > { %2248 = vmatpush.msra.mxu2 %v2201_v13 }
 0x4e8   : > { %2249 = vmatpush.msra.mxu2 %v2200_v14 }
 0x4ea   : > { %2250 = vmatpush.msra.mxu2 %v2199_v18  ;;  %v2495_v18 = vld [vmem:[#allocation20 + $0x30] sm:$0xff] }
 0x4ec   : > { %2251 = vmatpush.msra.mxu2 %v2198_v21 }
 0x4ee   : > { %2252 = vmatpush.msra.mxu2 %v2197_v23  ;;  %v2491_v23 = vld [vmem:[#allocation20 + $0x10] sm:$0xff] }
 0x4f0   : > { %2253 = vmatpush.msra.mxu2 %v2196_v33  ;;  %v3520_v33 = vld [vmem:[%s5056_s8 + $0x10] sm:$0xff] }
 0x4f2   : > { %2254 = vmatpush.msra.mxu2 %v2195_v36  ;;  %v2636_v36 = vld [vmem:[#allocation20 + $0xb8] sm:$0xff] }
 0x556   : > { %v1913_v53 = vpop.f32.mrf.mxu2 }
 0x55c   : > { %v1939_v54 = vpop.f32.mrf.mxu3 }
 0x55d   : > { %v1940_v55 = vadd.f32 %v1939_v54, %v1913_v53 }
 0x55e   : > { %v2017_v57 = vpop.f32.mrf.mxu2 }
 0x55f   : > { %v2020_v58 = vadd.f32 %v2017_v57, %v1940_v55 }
 0x561   : > { %v2025_v59 = vadd.f32 %v3757_v56, %v2020_v58  ;;  %v3758_v56 = vld [vmem:[%s5054_s10] ss:$0 sm:$0xff]  ;;  %s5061_s10 = sld [smem:[#allocation58_spill]] }
 0x563   : > { %v2026_v60 = vmax.f32 %v2025_v59, 0.0 }
 0x565   : > { %3498 = vmatpush.msk.msrb.mxu3 %vm1892_vm5, %v2026_v60  ;;  %3501 = vmatpush.msk.msrb.mxu0 %vm1892_vm5, %v2026_v60 }
 0x566   : > { %3499 = vmatmul.msk.f32.vlgmr.msrb.gmra.mxu3 %vm1888_vm6, %v2028_v61  ;;  %3502 = vmatmul.msk.f32.vlgmr.msrb.gmra.mxu0 %vm1888_vm6, %v3500_v62  ;;  %v2383_v61 = vld [vmem:[#allocation18 + $0x178] sm:$0xff]  ;;  %v2382_v62 = vld [vmem:[#allocation18 + $0x170] sm:$0xff] }
 0x567   : > { %3506 = vmatpush.msk.msra.mxu3 %vm1892_vm5, %v2026_v60  ;;  %2180 = vmatpush.msra.mxu0 %v2164_v3  ;;  %v2377_v3 = vld [vmem:[#allocation18 + $0x148] sm:$0xff] }
 0x569   : > { %2181 = vmatpush.msra.mxu0 %v2163_v5  ;;  %2286 = vmatpush.msrb.mxu3 %v2277_v9 }
 0x56b   : > { %2182 = vmatpush.msra.mxu0 %v2162_v6  ;;  %2287 = vmatpush.msrb.mxu3 %v2276_v10 }
 0x56d   : > { %2183 = vmatpush.msra.mxu0 %v2161_v8  ;;  %2288 = vmatpush.msrb.mxu3 %v2275_v12  ;;  %v2259_v8 = vld [vmem:[#allocation17] sm:$0xff]  ;;  %v2319_v12 = vld [vmem:[#allocation17 + $0x8] sm:$0xff] }
 0x56e   : > { %3507 = vmatmul.msk.f32.vlgmr.msra.gmra.mxu3 %vm1888_vm6, %v3505_v63  ;;  %v2381_v63 = vld [vmem:[#allocation18 + $0x168] sm:$0xff] }
 0x56f   : > { %2289 = vmatpush.msrb.mxu3 %v2274_v16  ;;  %2412 = vmatpush.msrb.mxu0 %v2374_v45  ;;  %v2425_v16 = vld [vmem:[#allocation17 + $0x10] sm:$0xff] }
 0x570   : > { %v2533_v45 = vld [vmem:[#allocation20 + $0x58] sm:$0xff] }
 0x571   : > { %2290 = vmatpush.msrb.mxu3 %v2273_v20  ;;  %2413 = vmatpush.msrb.mxu0 %v2373_v46  ;;  %v2493_v20 = vld [vmem:[#allocation20 + $0x20] sm:$0xff]  ;;  %v2532_v46 = vld [vmem:[#allocation20 + $0x50] sm:$0xff] }
 0x573   : > { %2291 = vmatpush.msrb.mxu3 %v2272_v22  ;;  %2414 = vmatpush.msrb.mxu0 %v2372_v47  ;;  %v2492_v22 = vld [vmem:[#allocation20 + $0x18] sm:$0xff]  ;;  %v2531_v47 = vld [vmem:[#allocation20 + $0x48] sm:$0xff] }
 0x575   : > { %2292 = vmatpush.msrb.mxu3 %v2271_v24  ;;  %2415 = vmatpush.msrb.mxu0 %v2371_v48  ;;  %v2530_v48 = vld [vmem:[#allocation20 + $0x40] sm:$0xff] }
 0x577   : > { %2293 = vmatpush.msrb.mxu3 %v2270_v25  ;;  %2416 = vmatpush.msrb.mxu0 %v2370_v49  ;;  %v2490_v25 = vld [vmem:[#allocation20 + $0x8] sm:$0xff]  ;;  %v2489_v49 = vld [vmem:[#allocation20] sm:$0xff] }
 0x579   : > { %2306 = vmatpush.msra.mxu3 %v2268_v26  ;;  %2417 = vmatpush.msrb.mxu0 %v2369_v50  ;;  %v2633_v50 = vld [vmem:[#allocation20 + $0xa0] sm:$0xff] }
 0x57b   : > { %2307 = vmatpush.msra.mxu3 %v2267_v27  ;;  %2418 = vmatpush.msrb.mxu0 %v2368_v51  ;;  %v3759_v27 = vld [vmem:[%s5055_s16] ss:$0 sm:$0xff]  ;;  %s5062_s16 = sld [smem:[#allocation60_spill]] }
 0x57c   : > { %v2632_v51 = vld [vmem:[#allocation20 + $0x98] sm:$0xff] }
 0x57d   : > { %2308 = vmatpush.msra.mxu3 %v2266_v29  ;;  %2419 = vmatpush.msrb.mxu0 %v2367_v52  ;;  %v2631_v52 = vld [vmem:[#allocation20 + $0x90] sm:$0xff] }
 0x57f   : > { %2309 = vmatpush.msra.mxu3 %v2265_v34  ;;  %v3528_v34 = vld [vmem:[%s5056_s8 + $0x20] sm:$0xff] }
 0x581   : > { %2310 = vmatpush.msra.mxu3 %v2264_v38  ;;  %v2635_v38 = vld [vmem:[#allocation20 + $0xb0] sm:$0xff] }
 0x583   : > { %2311 = vmatpush.msra.mxu3 %v2263_v40  ;;  %v2634_v40 = vld [vmem:[#allocation20 + $0xa8] sm:$0xff] }
 0x585   : > { %2312 = vmatpush.msra.mxu3 %v2262_v42  ;;  %v3521_v42 = vld [vmem:[%s5056_s8 + $0x18] sm:$0xff] }
 0x587   : > { %2313 = vmatpush.msra.mxu3 %v2261_v44  ;;  %v2534_v44 = vld [vmem:[#allocation20 + $0x60] sm:$0xff] }
 0x5e3   : > { %v2081_v28 = vpop.f32.mrf.mxu0 }
 0x5e4   : > { %3503 = vmatmul.msk.f32.vlgmr.msra.gmra.mxu1 %vm1788_vm4, %v2081_v28 }
 0x5e9   : > { %v2052_v30 = vpop.f32.mrf.mxu3 }
 0x5ea   : > { %3504 = vmatmul.msk.f32.vlgmr.msrb.gmra.mxu2 %vm1788_vm4, %v2052_v30 }
 0x5f1   : > { %v2157_v31 = vpop.f32.mrf.mxu3 }
 0x5f2   : > { %3508 = vmatmul.msk.f32.vlgmr.msra.gmra.mxu0 %vm1788_vm4, %v2157_v31  ;;  %3510 = vmatmul.msk.f32.vlgmr.msra.gmra.mxu2 %vm2212_vm7, %v2027_v37 }
 0x5fa   : > { %3516 = vmatmul.msk.f32.vlgmr.msrb.gmra.mxu0 %vm2212_vm7, %v2027_v37 }
 0x661   : > { %v2109_v53 = vpop.f32.mrf.mxu1 }
 0x66d   : > { %v2132_v54 = vpop.f32.mrf.mxu2 }
 0x66e   : > { %v2133_v55 = vadd.f32 %v2132_v54, %v2109_v53  ;;  %v2630_v53 = vld [vmem:[#allocation20 + $0x88] sm:$0xff]  ;;  %v2629_v54 = vld [vmem:[#allocation20 + $0x80] sm:$0xff] }
 0x66f   : > { %v2185_v57 = vpop.f32.mrf.mxu0 }
 0x670   : > { %v2188_v58 = vadd.f32 %v2185_v57, %v2133_v55  ;;  %v2790_v55 = vld [vmem:[#allocation23 + $0x278] sm:$0xff] }
 0x671   : > { %v2773_v57 = vld [vmem:[#allocation23 + $0xf8] sm:$0xff] }
 0x672   : > { %v2193_v59 = vadd.f32 %v3758_v56, %v2188_v58  ;;  %v2789_v56 = vld [vmem:[#allocation23 + $0x270] sm:$0xff]  ;;  %v2788_v58 = vld [vmem:[#allocation23 + $0x268] sm:$0xff] }
 0x674   : > { %v2194_v60 = vmax.f32 %v2193_v59, 0.0  ;;  %v2772_v59 = vld [vmem:[#allocation23 + $0xf0] sm:$0xff] }
 0x675   : > { %v2256_v5 = vpop.f32.mrf.mxu2 }
 0x676   : > { %3509 = vmatmul.msk.f32.vlgmr.msrb.gmra.mxu1 %vm2212_vm7, %v2194_v60  ;;  %3511 = vmatmul.msk.f32.vlgmr.msrb.gmra.mxu3 %vm2212_vm7, %v2194_v60 }
 0x677   : > { %2392 = vmatpush.msrb.mxu3 %v2383_v61  ;;  %v2421_v13 = vpop.f32.mrf.mxu0  ;;  %v2771_v61 = vld [vmem:[#allocation23 + $0xe8] sm:$0xff] }
 0x679   : > { %2393 = vmatpush.msrb.mxu3 %v2382_v62  ;;  %v2690_v62 = vld [vmem:[#allocation23 + $0x70] sm:$0xff] }
 0x67b   : > { %2394 = vmatpush.msrb.mxu3 %v2381_v63  ;;  %v2787_v63 = vld [vmem:[#allocation23 + $0x260] sm:$0xff] }
 0x67d   : > { %2395 = vmatpush.msrb.mxu3 %v2380_v0  ;;  %v2689_v0 = vld [vmem:[#allocation23 + $0x68] sm:$0xff] }
 0x67e   : > { %3512 = vmatmul.msk.f32.vlgmr.msra.gmra.mxu3 %vm2212_vm7, %v2027_v37  ;;  %v2536_v37 = vld [vmem:[#allocation20 + $0x70] sm:$0xff] }
 0x67f   : > { %2396 = vmatpush.msrb.mxu3 %v2379_v1  ;;  %v2770_v1 = vld [vmem:[#allocation23 + $0xe0] sm:$0xff] }
 0x681   : > { %2397 = vmatpush.msrb.mxu3 %v2378_v2  ;;  %v2708_v2 = vld [vmem:[#allocation23 + $0x1f8] sm:$0xff] }
 0x683   : > { %2398 = vmatpush.msrb.mxu3 %v2377_v3  ;;  %v2786_v3 = vld [vmem:[#allocation23 + $0x258] sm:$0xff] }
 0x685   : > { %2399 = vmatpush.msrb.mxu3 %v2376_v4  ;;  %v2688_v4 = vld [vmem:[#allocation23 + $0x60] sm:$0xff] }
 0x686   : > { %3515 = vmatmul.msk.f32.vlgmr.msrb.gmra.mxu3 %vm2212_vm7, %v2194_v60  ;;  %v2691_v60 = vld [vmem:[#allocation23 + $0x78] sm:$0xff] }
 0x687   : > { %2581 = vmatpush.msra.mxu3 %v2496_v17  ;;  %v2685_v17 = vld [vmem:[#allocation23 + $0x48] sm:$0xff] }
 0x689   : > { %2582 = vmatpush.msra.mxu3 %v2495_v18  ;;  %v2766_v18 = vld [vmem:[#allocation23 + $0xc0] sm:$0xff] }
 0x68b   : > { %2583 = vmatpush.msra.mxu3 %v2494_v19  ;;  %v2703_v19 = vld [vmem:[#allocation23 + $0x1d0] sm:$0xff] }
 0x68d   : > { %2584 = vmatpush.msra.mxu3 %v2493_v20  ;;  %v2782_v20 = vld [vmem:[#allocation23 + $0x238] sm:$0xff] }
 0x68f   : > { %2585 = vmatpush.msra.mxu3 %v2492_v22  ;;  %v2765_v22 = vld [vmem:[#allocation23 + $0xb8] sm:$0xff] }
 0x691   : > { %2586 = vmatpush.msra.mxu3 %v2491_v23  ;;  %v2702_v23 = vld [vmem:[#allocation23 + $0x1c8] sm:$0xff] }
 0x693   : > { %2587 = vmatpush.msra.mxu3 %v2490_v25  ;;  %v2764_v25 = vld [vmem:[#allocation23 + $0xb0] sm:$0xff] }
 0x695   : > { %2588 = vmatpush.msra.mxu3 %v2489_v49  ;;  %v2678_v49 = vld [vmem:[#allocation23 + $0x10] sm:$0xff] }
 0x697   : > { %2791 = vmatpush.msrb.mxu3 %v2790_v55  ;;  %v2930_v55 = vld [vmem:[#allocation23 + $0x2f0] sm:$0xff] }
 0x699   : > { %2792 = vmatpush.msrb.mxu3 %v2789_v56  ;;  %v2929_v56 = vld [vmem:[#allocation23 + $0x2e8] sm:$0xff] }
 0x69b   : > { %2793 = vmatpush.msrb.mxu3 %v2788_v58  ;;  %v2677_v58 = vld [vmem:[#allocation23 + $0x8] sm:$0xff] }
 0x69d   : > { %2794 = vmatpush.msrb.mxu3 %v2787_v63  ;;  %v2927_v63 = vld [vmem:[#allocation23 + $0x2d8] sm:$0xff] }
 0x69f   : > { %2795 = vmatpush.msrb.mxu3 %v2786_v3  ;;  %v2926_v3 = vld [vmem:[#allocation23 + $0x2d0] sm:$0xff] }
 0x6f3   : > { %v2233_v6 = vpop.f32.mrf.mxu1 }
 0x6f4   : > { %v2257_v7 = vadd.f32 %v2256_v5, %v2233_v6  ;;  %v2707_v5 = vld [vmem:[#allocation23 + $0x1f0] sm:$0xff]  ;;  %v2769_v6 = vld [vmem:[#allocation23 + $0xd8] sm:$0xff] }
 0x6f6   : > { %2361 = vmatpush.msrb.mxu2 %v2257_v7  ;;  %v2785_v7 = vld [vmem:[#allocation23 + $0x250] sm:$0xff] }
 0x6f7   : > { %3514 = vmatmul.msk.f32.vlgmr.msrb.gmra.mxu2 %vm1294_vm0, %v2259_v8  ;;  %v2687_v8 = vld [vmem:[#allocation23 + $0x58] sm:$0xff]  ;;  %2796 = vmatpush.msrb.mxu3 %v2785_v7  ;;  %v2911_v7 = vld [vmem:[#allocation23 + $0x160] sm:$0xff] }
 0x6f9   : > { %v2295_v9 = vpop.f32.mrf.mxu3 }
 0x701   : > { %v2315_v10 = vpop.f32.mrf.mxu3 }
 0x702   : > { %v2316_v11 = vadd.f32 %v2315_v10, %v2295_v9  ;;  %v2706_v9 = vld [vmem:[#allocation23 + $0x1e8] sm:$0xff]  ;;  %v2768_v10 = vld [vmem:[#allocation23 + $0xd0] sm:$0xff] }
 0x704   : > { %2338 = vmatpush.msra.mxu1 %v2316_v11  ;;  %v2705_v11 = vld [vmem:[#allocation23 + $0x1e0] sm:$0xff] }
 0x705   : > { %3513 = vmatmul.msk.f32.vlgmr.msra.gmra.mxu1 %vm1294_vm0, %v2319_v12  ;;  %v2784_v12 = vld [vmem:[#allocation23 + $0x248] sm:$0xff] }
 0x706   : > { %2797 = vmatpush.msrb.mxu3 %v2784_v12  ;;  %v2909_v12 = vld [vmem:[#allocation23 + $0x150] sm:$0xff] }
 0x709   : > { %v2401_v14 = vpop.f32.mrf.mxu3 }
 0x70a   : > { %v2422_v15 = vadd.f32 %v2421_v13, %v2401_v14  ;;  %v2686_v13 = vld [vmem:[#allocation23 + $0x50] sm:$0xff]  ;;  %v2767_v14 = vld [vmem:[#allocation23 + $0xc8] sm:$0xff] }
 0x70c   : > { %2444 = vmatpush.msrb.mxu1 %v2422_v15  ;;  %v2704_v15 = vld [vmem:[#allocation23 + $0x1d8] sm:$0xff] }
 0x70d   : > { %3517 = vmatmul.msk.f32.vlgmr.msrb.gmra.mxu1 %vm1294_vm0, %v2425_v16  ;;  %v2783_v16 = vld [vmem:[#allocation23 + $0x240] sm:$0xff] }
 0x70e   : > { %2798 = vmatpush.msrb.mxu3 %v2783_v16  ;;  %v2921_v16 = vld [vmem:[#allocation23 + $0x2a8] sm:$0xff] }
 0x710   : > { %2799 = vmatpush.msrb.mxu3 %v2782_v20  ;;  %v2919_v20 = vld [vmem:[#allocation23 + $0x298] sm:$0xff] }
 0x77a   : > { %v2363_v24 = vpop.f32.mrf.mxu2 }
 0x782   : > { %v2340_v21 = vpop.f32.mrf.mxu1 }
 0x783   : > { %v2364_v26 = vadd.f32 %v2363_v24, %v2340_v21  ;;  %v2684_v21 = vld [vmem:[#allocation23 + $0x40] sm:$0xff]  ;;  %v2781_v24 = vld [vmem:[#allocation23 + $0x230] sm:$0xff] }
 0x784   : > { %2800 = vmatpush.msrb.mxu3 %v2781_v24  ;;  %v2917_v24 = vld [vmem:[#allocation23 + $0x288] sm:$0xff] }
 0x78a   : > { %v2446_v28 = vpop.f32.mrf.mxu1 }
 0x78b   : > { %v2449_v29 = vadd.f32 %v2446_v28, %v2364_v26  ;;  %v2683_v28 = vld [vmem:[#allocation23 + $0x38] sm:$0xff] }
 0x78d   : > { %v2454_v30 = vadd.f32 %v3759_v27, %v2449_v29  ;;  %v2701_v29 = vld [vmem:[#allocation23 + $0x1c0] sm:$0xff] }
 0x78f   : > { %v2455_v31 = vmax.f32 %v2454_v30, 0.0  ;;  %v2780_v30 = vld [vmem:[#allocation23 + $0x228] sm:$0xff] }
 0x790   : > { %2801 = vmatpush.msrb.mxu3 %v2780_v30 }
 0x791   : > { %2481 = vmatpush.msra.mxu2 %v2455_v31  ;;  %2521 = vmatpush.msra.mxu1 %v2455_v31 }
 0x792   : > { %2620 = vmatpush.msra.mxu0 %v2455_v31  ;;  %3518 = vmatmul.msk.f32.vlgmr.msra.gmra.mxu2 %vm1294_vm0, %v2458_v32  ;;  %v2763_v31 = vld [vmem:[#allocation23 + $0xa8] sm:$0xff]  ;;  %v2682_v32 = vld [vmem:[#allocation23 + $0x30] sm:$0xff] }
 0x793   : > { %3522 = vmatmul.msk.f32.vlgmr.msra.gmra.mxu1 %vm1294_vm0, %v3520_v33  ;;  %3530 = vmatmul.msk.f32.vlgmr.msra.gmra.mxu0 %vm1294_vm0, %v3528_v34  ;;  %v2700_v33 = vld [vmem:[#allocation23 + $0x1b8] sm:$0xff]  ;;  %v2762_v34 = vld [vmem:[#allocation23 + $0xa0] sm:$0xff] }
 0x794   : > { %2552 = vmatpush.msrb.mxu2 %v2537_v35  ;;  %2651 = vmatpush.msrb.mxu1 %v2636_v36  ;;  %v2779_v35 = vld [vmem:[#allocation23 + $0x220] sm:$0xff]  ;;  %v2681_v36 = vld [vmem:[#allocation23 + $0x28] sm:$0xff] }
 0x795   : > { %2709 = vmatpush.msrb.mxu0 %v2708_v2  ;;  %2802 = vmatpush.msrb.mxu3 %v2779_v35  ;;  %v2695_v2 = vld [vmem:[#allocation23 + $0x190] sm:$0xff]  ;;  %v3760_v35 = vld [vmem:[%s5058_s6] ss:$0 sm:$0xff] }
 0x796   : > { %2553 = vmatpush.msrb.mxu2 %v2536_v37  ;;  %2652 = vmatpush.msrb.mxu1 %v2635_v38  ;;  %v2761_v38 = vld [vmem:[#allocation23 + $0x98] sm:$0xff] }
 0x797   : > { %2710 = vmatpush.msrb.mxu0 %v2707_v5  ;;  %v2694_v5 = vld [vmem:[#allocation23 + $0x188] sm:$0xff] }
 0x798   : > { %2554 = vmatpush.msrb.mxu2 %v2535_v39  ;;  %2653 = vmatpush.msrb.mxu1 %v2634_v40  ;;  %v2699_v39 = vld [vmem:[#allocation23 + $0x1b0] sm:$0xff]  ;;  %v2778_v40 = vld [vmem:[#allocation23 + $0x218] sm:$0xff] }
 0x799   : > { %2711 = vmatpush.msrb.mxu0 %v2706_v9  ;;  %2803 = vmatpush.msrb.mxu3 %v2778_v40  ;;  %v2924_v9 = vld [vmem:[#allocation23 + $0x2c0] sm:$0xff] }
 0x79a   : > { %3519 = vmatmul.msk.f32.gmra.mxu2 %vm1294_vm0, %v2459_v41  ;;  %2654 = vmatpush.msrb.mxu1 %v2633_v50  ;;  %v2680_v41 = vld [vmem:[#allocation23 + $0x20] sm:$0xff]  ;;  %v2776_v50 = vld [vmem:[#allocation23 + $0x208] sm:$0xff] }
 0x79b   : > { %3523 = vmatmul.msk.f32.gmra.mxu1 %vm1294_vm0, %v3521_v42  ;;  %3531 = vmatmul.msk.f32.gmra.mxu0 %vm1294_vm0, %v3529_v43 }
 0x79c   : > { %2555 = vmatpush.msrb.mxu2 %v2534_v44  ;;  %2655 = vmatpush.msrb.mxu1 %v2632_v51  ;;  %v2760_v44 = vld [vmem:[#allocation23 + $0x90] sm:$0xff]  ;;  %v2758_v51 = vld [vmem:[#allocation23 + $0x80] sm:$0xff] }
 0x79d   : > { %2712 = vmatpush.msrb.mxu0 %v2705_v11  ;;  %v2923_v11 = vld [vmem:[#allocation23 + $0x2b8] sm:$0xff] }
 0x79e   : > { %2556 = vmatpush.msrb.mxu2 %v2533_v45  ;;  %2656 = vmatpush.msrb.mxu1 %v2631_v52  ;;  %v2698_v45 = vld [vmem:[#allocation23 + $0x1a8] sm:$0xff] }
 0x79f   : > { %2713 = vmatpush.msrb.mxu0 %v2704_v15  ;;  %v2908_v15 = vld [vmem:[#allocation23 + $0x148] sm:$0xff] }
 0x7a0   : > { %2557 = vmatpush.msrb.mxu2 %v2532_v46  ;;  %2657 = vmatpush.msrb.mxu1 %v2630_v53  ;;  %v2777_v46 = vld [vmem:[#allocation23 + $0x210] sm:$0xff]  ;;  %v2775_v53 = vld [vmem:[#allocation23 + $0x200] sm:$0xff] }
 0x7a1   : > { %2714 = vmatpush.msrb.mxu0 %v2703_v19  ;;  %2804 = vmatpush.msrb.mxu3 %v2777_v46  ;;  %v2906_v19 = vld [vmem:[#allocation23 + $0x138] sm:$0xff] }
 0x7a2   : > { %2558 = vmatpush.msrb.mxu2 %v2531_v47  ;;  %2658 = vmatpush.msrb.mxu1 %v2629_v54  ;;  %v2679_v47 = vld [vmem:[#allocation23 + $0x18] sm:$0xff] }
 0x7a3   : > { %2715 = vmatpush.msrb.mxu0 %v2702_v23  ;;  %2805 = vmatpush.msrb.mxu3 %v2776_v50  ;;  %v2931_v54 = vld [vmem:[#allocation23 + $0x2f8] sm:$0xff]  ;;  %v2904_v23 = vld [vmem:[#allocation23 + $0x128] sm:$0xff] }
 0x7a4   : > { %2559 = vmatpush.msrb.mxu2 %v2530_v48  ;;  %2814 = vmatpush.msra.mxu1 %v2773_v57  ;;  %v2759_v48 = vld [vmem:[#allocation23 + $0x88] sm:$0xff]  ;;  %v2697_v57 = vld [vmem:[#allocation23 + $0x1a0] sm:$0xff] }
 0x7a5   : > { %2716 = vmatpush.msrb.mxu0 %v2701_v29  ;;  %2806 = vmatpush.msrb.mxu3 %v2775_v53  ;;  %v2900_v29 = vld [vmem:[#allocation23 + $0x108] sm:$0xff] }
 0x7a6   : > { %2732 = vmatpush.msra.mxu2 %v2691_v60  ;;  %2815 = vmatpush.msra.mxu1 %v2772_v59  ;;  %v2928_v59 = vld [vmem:[#allocation23 + $0x2e0] sm:$0xff]  ;;  %v2914_v60 = vld [vmem:[#allocation23 + $0x178] sm:$0xff] }
 0x7a7   : > { %2717 = vmatpush.msrb.mxu0 %v2700_v33 }
 0x7a8   : > { %2733 = vmatpush.msra.mxu2 %v2690_v62  ;;  %2816 = vmatpush.msra.mxu1 %v2771_v61  ;;  %v2696_v61 = vld [vmem:[#allocation23 + $0x198] sm:$0xff]  ;;  %v2676_v62 = vld [vmem:[#allocation23] sm:$0xff] }
 0x7a9   : > { %2718 = vmatpush.msrb.mxu0 %v2699_v39 }
 0x7aa   : > { %2734 = vmatpush.msra.mxu2 %v2689_v0  ;;  %2817 = vmatpush.msra.mxu1 %v2770_v1  ;;  %v2913_v0 = vld [vmem:[#allocation23 + $0x170] sm:$0xff] }
 0x7ab   : > { %2719 = vmatpush.msrb.mxu0 %v2698_v45  ;;  %v4905_v1 = vld [vmem:[%s4902_s14] sm:$0xff] }
 0x7ac   : > { %2735 = vmatpush.msra.mxu2 %v2688_v4  ;;  %2818 = vmatpush.msra.mxu1 %v2769_v6  ;;  %v2912_v4 = vld [vmem:[#allocation23 + $0x168] sm:$0xff] }
 0x7ad   : > { %2720 = vmatpush.msrb.mxu0 %v2697_v57  ;;  %v2925_v6 = vld [vmem:[#allocation23 + $0x2c8] sm:$0xff] }
 0x7ae   : > { %2736 = vmatpush.msra.mxu2 %v2687_v8  ;;  %2819 = vmatpush.msra.mxu1 %v2768_v10  ;;  %v2693_v8 = vld [vmem:[#allocation23 + $0x180] sm:$0xff]  ;;  %v2910_v10 = vld [vmem:[#allocation23 + $0x158] sm:$0xff] }
 0x7af   : > { %2721 = vmatpush.msrb.mxu0 %v2696_v61 }
 0x7b0   : > { %2737 = vmatpush.msra.mxu2 %v2686_v13  ;;  %2820 = vmatpush.msra.mxu1 %v2767_v14  ;;  %v2457_v13 = vld [vmem:[%s4902_s14 + $0x8] sm:$0xff]  ;;  %s3550_s14 = sshll.u32 %s4488_s7, 5 }
 0x7b1   : > { %2722 = vmatpush.msrb.mxu0 %v2695_v2  ;;  %v2922_v14 = vld [vmem:[#allocation23 + $0x2b0] sm:$0xff]  ;;  %s3127_s6 = scalar_lea.hbm %s5062_s16, %s3550_s14  ;;  %s4172_s14 = scalar_lea.hbm %s5062_s16, 64 }
 0x7b2   : > { %2738 = vmatpush.msra.mxu2 %v2685_v17  ;;  %2821 = vmatpush.msra.mxu1 %v2766_v18  ;;  %v2907_v17 = vld [vmem:[#allocation23 + $0x140] sm:$0xff]  ;;  %s3130_s5 = sshll.u32 %s3127_s6, 4  ;;  %s3131_s5 = int_to_ptr.hbm [resolvable:$true] %s3130_s5 }
 0x7b3   : > { %2723 = vmatpush.msrb.mxu0 %v2694_v5  ;;  %v2920_v18 = vld [vmem:[#allocation23 + $0x2a0] sm:$0xff]  ;;  %s4166_s8 = sshra.s32 %s3131_s5, 4  ;;  %s4167_s8 = int_to_ptr.hbm [resolvable:$true] %s4166_s8 }
 0x7b4   : > { %2739 = vmatpush.msra.mxu2 %v2684_v21  ;;  %2822 = vmatpush.msra.mxu1 %v2765_v22  ;;  %v2905_v21 = vld [vmem:[#allocation23 + $0x130] sm:$0xff]  ;;  %s4168_s7 = scalar_lea.hbm %s4167_s8, 32  ;;  %p4173_p0 = scmp.lt.s32.totalorder %s4167_s8, %s5062_s16 }
 0x7b5   : > { %2724 = vmatpush.msrb.mxu0 %v2693_v8  ;;  %v2918_v22 = vld [vmem:[#allocation23 + $0x290] sm:$0xff]  ;;  %p4169_p1 = scmp.ne.s32.totalorder %s4167_s8, %s4168_s7  ;;  %p4174_p5 = scmp.lt.s32.totalorder %s4172_s14, %s4168_s7 }
 0x7b6   : > { %2823 = vmatpush.msra.mxu1 %v2764_v25  ;;  %2740 = vmatpush.msra.mxu2 %v2683_v28  ;;  %v2903_v25 = vld [vmem:[#allocation23 + $0x120] sm:$0xff]  ;;  %v2901_v28 = vld [vmem:[#allocation23 + $0x110] sm:$0xff] }
 0x7b7   : > { %v2979_v8 = vld [vmem:[#allocation21 + $0x20] sm:$0xff]  ;;  %p4170_p6 = pnand %p4169_p1, %p4686_p9  ;;  %p4175_p13 = por %p4174_p5, %p4173_p0 }
 0x7b8   : > { %2824 = vmatpush.msra.mxu1 %v2763_v31  ;;  %2741 = vmatpush.msra.mxu2 %v2682_v32  ;;  %v2899_v31 = vld [vmem:[#allocation23 + $0x100] sm:$0xff] }
 0x7b9   : > { %p4171_p8 = pneg %p4170_p6 }
 0x7ba   : > { %2825 = vmatpush.msra.mxu1 %v2762_v34  ;;  %2742 = vmatpush.msra.mxu2 %v2681_v36 }
 0x7bb   : > { %p4176_p2 = pnand %p4175_p13, %p4171_p8 }
 0x7bc   : > { %2826 = vmatpush.msra.mxu1 %v2761_v38  ;;  %2743 = vmatpush.msra.mxu2 %v2680_v41 }
 0x7be   : > { %2827 = vmatpush.msra.mxu1 %v2760_v44  ;;  %2744 = vmatpush.msra.mxu2 %v2679_v47 }
 0x7c0   : > { %2828 = vmatpush.msra.mxu1 %v2759_v48  ;;  %2745 = vmatpush.msra.mxu2 %v2678_v49 }
 0x7c2   : > { %2829 = vmatpush.msra.mxu1 %v2758_v51  ;;  %2746 = vmatpush.msra.mxu2 %v2677_v58  ;;  %v3034_v58 = vld [vmem:[%s5059_s12 + $0x70] sm:$0xff] }
 0x7c4   : > { %2747 = vmatpush.msra.mxu2 %v2676_v62  ;;  %v2838_v62 = vld [vmem:[#allocation21 + $0x10] sm:$0xff] }
 0x810   : > { %v2523_v26 = vpop.f32.mrf.mxu1  ;;  %v2622_v27 = vpop.f32.mrf.mxu0 }
 0x811   : > { %3524 = vmatmul.msk.f32.vlgmr.msrb.gmra.mxu2 %vm2212_vm7, %v2523_v26  ;;  %3532 = vmatmul.msk.f32.vlgmr.msrb.gmra.mxu1 %vm2212_vm7, %v2622_v27  ;;  %v2916_v26 = vld [vmem:[#allocation23 + $0x280] sm:$0xff]  ;;  %v2902_v27 = vld [vmem:[#allocation23 + $0x118] sm:$0xff] }
 0x812   : > { %2955 = vmatpush.msrb.mxu1 %v2914_v60  ;;  %v3033_v60 = vld [vmem:[%s5059_s12 + $0x68] sm:$0xff] }
 0x814   : > { %2956 = vmatpush.msrb.mxu1 %v2913_v0  ;;  %v3032_v0 = vld [vmem:[%s5059_s12 + $0x60] sm:$0xff] }
 0x815   : > { %v2483_v37 = vpop.f32.mrf.mxu2 }
 0x816   : > { %3526 = vmatmul.msk.f32.vlgmr.msra.gmra.mxu3 %vm2212_vm7, %v2483_v37  ;;  %2957 = vmatpush.msrb.mxu1 %v2912_v4 }
 0x817   : > { %2932 = vmatpush.msra.mxu3 %v2931_v54 }
 0x818   : > { %v2526_v42 = vpop.f32.mrf.mxu1  ;;  %v2625_v43 = vpop.f32.mrf.mxu0  ;;  %2958 = vmatpush.msrb.mxu1 %v2911_v7 }
 0x819   : > { %3525 = vmatmul.msk.f32.gmra.mxu2 %vm2212_vm7, %v2526_v42  ;;  %3533 = vmatmul.msk.f32.gmra.mxu1 %vm2212_vm7, %v2625_v43 }
 0x81a   : > { %2933 = vmatpush.msra.mxu3 %v2930_v55  ;;  %2959 = vmatpush.msrb.mxu1 %v2910_v10  ;;  %v2755_v55 = vld [vmem:[#allocation21] sm:$0xff]  ;;  %v3031_v10 = vld [vmem:[%s5059_s12 + $0x58] sm:$0xff] }
 0x81c   : > { %2934 = vmatpush.msra.mxu3 %v2929_v56  ;;  %2960 = vmatpush.msrb.mxu1 %v2909_v12  ;;  %v3035_v56 = vld [vmem:[%s5059_s12 + $0x78] sm:$0xff]  ;;  %v3029_v12 = vld [vmem:[%s5059_s12 + $0x48] sm:$0xff] }
 0x81d   : > { %v2486_v52 = vpop.f32.mrf.mxu2 }
 0x81e   : > { %3527 = vmatmul.msk.f32.gmra.mxu3 %vm2212_vm7, %v2486_v52  ;;  %2961 = vmatpush.msrb.mxu1 %v2908_v15  ;;  %v3026_v15 = vld [vmem:[%s5059_s12 + $0x30] sm:$0xff] }
 0x81f   : > { %2935 = vmatpush.msra.mxu3 %v2928_v59 }
 0x820   : > { %2962 = vmatpush.msrb.mxu1 %v2907_v17  ;;  %v3024_v17 = vld [vmem:[%s5059_s12 + $0x20] sm:$0xff] }
 0x821   : > { %2936 = vmatpush.msra.mxu3 %v2927_v63  ;;  %2748 = vmatmul.f32.vlgmr.msra.gmra.mxu2 %v4905_v1 }
 0x822   : > { %2830 = vmatmul.f32.vlgmr.msra.gmra.mxu1 %v4905_v1 }
 0x823   : > { %2937 = vmatpush.msra.mxu3 %v2926_v3  ;;  %2963 = vmatpush.msrb.mxu1 %v2906_v19  ;;  %v2839_v3 = vld [vmem:[#allocation21 + $0x18] sm:$0xff]  ;;  %v3022_v19 = vld [vmem:[%s5059_s12 + $0x10] sm:$0xff] }
 0x825   : > { %2938 = vmatpush.msra.mxu3 %v2925_v6  ;;  %2964 = vmatpush.msrb.mxu1 %v2905_v21  ;;  %v3020_v21 = vld [vmem:[%s5059_s12] sm:$0xff] }
 0x827   : > { %2939 = vmatpush.msra.mxu3 %v2924_v9  ;;  %2965 = vmatpush.msrb.mxu1 %v2904_v23  ;;  %v2980_v9 = vld [vmem:[#allocation21 + $0x28] sm:$0xff] }
 0x829   : > { %2940 = vmatpush.msra.mxu3 %v2923_v11  ;;  %2751 = vmatmul.f32.gmra.mxu2 %v2457_v13  ;;  %v3030_v11 = vld [vmem:[%s5059_s12 + $0x50] sm:$0xff] }
 0x82a   : > { %2833 = vmatmul.f32.gmra.mxu1 %v2457_v13 }
 0x82b   : > { %2941 = vmatpush.msra.mxu3 %v2922_v14  ;;  %2966 = vmatpush.msrb.mxu1 %v2903_v25  ;;  %v3027_v14 = vld [vmem:[%s5059_s12 + $0x38] sm:$0xff] }
 0x82d   : > { %2942 = vmatpush.msra.mxu3 %v2921_v16  ;;  %2967 = vmatpush.msrb.mxu1 %v2902_v27  ;;  %v3025_v16 = vld [vmem:[%s5059_s12 + $0x28] sm:$0xff] }
 0x82f   : > { %2943 = vmatpush.msra.mxu3 %v2920_v18  ;;  %2968 = vmatpush.msrb.mxu1 %v2901_v28  ;;  %v3023_v18 = vld [vmem:[%s5059_s12 + $0x18] sm:$0xff] }
 0x831   : > { %2944 = vmatpush.msra.mxu3 %v2919_v20  ;;  %2969 = vmatpush.msrb.mxu1 %v2900_v29  ;;  %v3021_v20 = vld [vmem:[%s5059_s12 + $0x8] sm:$0xff] }
 0x833   : > { %2945 = vmatpush.msra.mxu3 %v2918_v22  ;;  %2970 = vmatpush.msrb.mxu1 %v2899_v31 }
 0x834   : > { %2971 = vmatmul.f32.vlgmr.msrb.gmra.mxu1 %v4905_v1  ;;  %v2756_v1 = vld [vmem:[#allocation21 + $0x8] sm:$0xff] }
 0x835   : > { %2946 = vmatpush.msra.mxu3 %v2917_v24 }
 0x837   : > { %2947 = vmatpush.msra.mxu3 %v2916_v26  ;;  %v3761_v26 = vld [vmem:[%s5060_s4] ss:$0 sm:$0xff]  ;;  %s3128_s4 = sshll.u32 %s1258_s26, 4  ;;  %s3129_s4 = int_to_ptr.vmem [resolvable:$true] %s3128_s4 }
 0x83c   : > { %2974 = vmatmul.f32.gmra.mxu1 %v2457_v13  ;;  %v3028_v13 = vld [vmem:[%s5059_s12 + $0x40] sm:$0xff] }
 0x88e   : > { %v2660_v32 = vpop.f32.mrf.mxu1 }
 0x894   : > { %v2561_v30 = vpop.f32.mrf.mxu2 }
 0x896   : > { %v2663_v41 = vpop.f32.mrf.mxu1 }
 0x899   : > { %v2590_v33 = vpop.f32.mrf.mxu3 }
 0x89a   : > { %v2591_v34 = vadd.f32 %v2590_v33, %v2561_v30 }
 0x89c   : > { %v2666_v36 = vadd.f32 %v2660_v32, %v2591_v34  ;;  %v2564_v38 = vpop.f32.mrf.mxu2 }
 0x89e   : > { %v2672_v37 = vadd.f32 %v3760_v35, %v2666_v36 }
 0x89f   : > { %v2831_v47 = vpop.f32.mrf.mxu1 }
 0x8a0   : > { %v2674_v39 = vmax.f32 %v2672_v37, 0.0 }
 0x8a1   : > { %v2593_v40 = vpop.f32.mrf.mxu3 }
 0x8a2   : > { %v2594_v42 = vadd.f32 %v2593_v40, %v2564_v38  ;;  %2725 = vmatmul.f32.vlgmr.msrb.gmra.mxu0 %v2674_v39  ;;  %2807 = vmatmul.f32.vlgmr.msrb.gmra.mxu3 %v2674_v39  ;;  %v3060_v40 = vld [vmem:[%s5061_s10 + $0x8] sm:$0xff] }
 0x8a4   : > { %v2667_v43 = vadd.f32 %v2663_v41, %v2594_v42  ;;  %v2749_v46 = vpop.f32.mrf.mxu2  ;;  %v3061_v41 = vld [vmem:[%s5061_s10 + $0x10] sm:$0xff]  ;;  %v3062_v42 = vld [vmem:[%s5061_s10 + $0x18] sm:$0xff] }
 0x8a6   : > { %v2673_v44 = vadd.f32 %v3760_v35, %v2667_v43  ;;  %v3068_v43 = vpop.permute.xlu1 %3067 }
 0x8a7   : > { %v2834_v52 = vpop.f32.mrf.mxu1 }
 0x8a8   : > { %v2675_v45 = vmax.f32 %v2673_v44, 0.0 }
 0x8aa   : > { %2728 = vmatmul.f32.gmra.mxu0 %v2675_v45  ;;  %2810 = vmatmul.f32.gmra.mxu3 %v2675_v45 }
 0x8ac   : > { %v2752_v50 = vpop.f32.mrf.mxu2 }
 0x8b1   : > { %v2972_v63 = vpop.f32.mrf.mxu1 }
 0x8b2   : > { %2948 = vmatmul.f32.vlgmr.msra.gmra.mxu3 %v2674_v39  ;;  %v3059_v39 = vld [vmem:[%s5061_s10] sm:$0xff] }
 0x8b9   : > { %v2975_v4 = vpop.f32.mrf.mxu1 }
 0x8ba   : > { %2951 = vmatmul.f32.gmra.mxu3 %v2675_v45 }
 0x91f   : > { %v2726_v48 = vpop.f32.mrf.mxu0 }
 0x920   : > { %v2750_v54 = vadd.f32 %v2749_v46, %v2726_v48 }
 0x925   : > { %v2808_v49 = vpop.f32.mrf.mxu3 }
 0x926   : > { %v2832_v61 = vadd.f32 %v2831_v47, %v2808_v49 }
 0x927   : > { %v2729_v51 = vpop.f32.mrf.mxu0 }
 0x928   : > { %v2753_v53 = vadd.f32 %v2752_v50, %v2729_v51 }
 0x92a   : > { %2889 = vmatpush.msrb.mxu2 %v2753_v53 }
 0x92c   : > { %2890 = vmatpush.msrb.mxu2 %v2750_v54 }
 0x92d   : > { %v2811_v57 = vpop.f32.mrf.mxu3  ;;  %3536 = vmatmul.msk.f32.vlgmr.msrb.gmra.mxu2 %vm1386_vm1, %v2755_v55 }
 0x92e   : > { %v2835_v59 = vadd.f32 %v2834_v52, %v2811_v57  ;;  %3036 = vmatpush.msra.mxu2 %v3035_v56 }
 0x930   : > { %2860 = vmatpush.msra.mxu0 %v2835_v59  ;;  %3037 = vmatpush.msra.mxu2 %v3034_v58 }
 0x932   : > { %2861 = vmatpush.msra.mxu0 %v2832_v61  ;;  %3038 = vmatpush.msra.mxu2 %v3033_v60 }
 0x933   : > { %3534 = vmatmul.msk.f32.vlgmr.msra.gmra.mxu0 %vm1386_vm1, %v2838_v62 }
 0x934   : > { %3039 = vmatpush.msra.mxu2 %v3032_v0 }
 0x935   : > { %3537 = vmatmul.msk.f32.gmra.mxu2 %vm1386_vm1, %v2756_v1  ;;  %v2949_v2 = vpop.f32.mrf.mxu3 }
 0x936   : > { %v2973_v7 = vadd.f32 %v2972_v63, %v2949_v2  ;;  %3040 = vmatpush.msra.mxu2 %v3031_v10 }
 0x938   : > { %3041 = vmatpush.msra.mxu2 %v3030_v11 }
 0x93a   : > { %3042 = vmatpush.msra.mxu2 %v3029_v12 }
 0x93b   : > { %3535 = vmatmul.msk.f32.gmra.mxu0 %vm1386_vm1, %v2839_v3 }
 0x93c   : > { %3043 = vmatpush.msra.mxu2 %v3028_v13 }
 0x93d   : > { %v2952_v5 = vpop.f32.mrf.mxu3 }
 0x93e   : > { %v2976_v6 = vadd.f32 %v2975_v4, %v2952_v5  ;;  %3044 = vmatpush.msra.mxu2 %v3027_v14 }
 0x940   : > { %3001 = vmatpush.msrb.mxu0 %v2976_v6  ;;  %3045 = vmatpush.msra.mxu2 %v3026_v15 }
 0x942   : > { %3002 = vmatpush.msrb.mxu0 %v2973_v7  ;;  %3046 = vmatpush.msra.mxu2 %v3025_v16 }
 0x943   : > { %3538 = vmatmul.msk.f32.vlgmr.msrb.gmra.mxu0 %vm1386_vm1, %v2979_v8 }
 0x944   : > { %3047 = vmatpush.msra.mxu2 %v3024_v17 }
 0x946   : > { %3048 = vmatpush.msra.mxu2 %v3023_v18 }
 0x948   : > { %3049 = vmatpush.msra.mxu2 %v3022_v19 }
 0x94a   : > { %3050 = vmatpush.msra.mxu2 %v3021_v20 }
 0x94b   : > { %3539 = vmatmul.msk.f32.gmra.mxu0 %vm1386_vm1, %v2980_v9 }
 0x94c   : > { %3051 = vmatpush.msra.mxu2 %v3020_v21 }
 0x9b0   : > { %v2863_v22 = vpop.f32.mrf.mxu0  ;;  %v2892_v24 = vpop.f32.mrf.mxu2 }
 0x9b1   : > { %v2893_v25 = vadd.f32 %v2892_v24, %v2863_v22 }
 0x9b8   : > { %v2866_v23 = vpop.f32.mrf.mxu0  ;;  %v2895_v30 = vpop.f32.mrf.mxu2 }
 0x9b9   : > { %v2896_v32 = vadd.f32 %v2895_v30, %v2866_v23 }
 0x9c0   : > { %v3004_v27 = vpop.f32.mrf.mxu0 }
 0x9c1   : > { %v3010_v28 = vadd.f32 %v3004_v27, %v2893_v25 }
 0x9c3   : > { %v3016_v29 = vadd.f32 %v3761_v26, %v3010_v28 }
 0x9c5   : > { %v3018_v31 = vmax.f32 %v3016_v29, 0.0 }
 0x9c7   : > { %3052 = vmatmul.f32.vlgmr.msra.gmra.mxu2 %v3018_v31 }
 0x9c8   : > { %v3007_v33 = vpop.f32.mrf.mxu0 }
 0x9c9   : > { %v3011_v34 = vadd.f32 %v3007_v33, %v2896_v32 }
 0x9cb   : > { %v3017_v35 = vadd.f32 %v3761_v26, %v3011_v34 }
 0x9cd   : > { %v3019_v36 = vmax.f32 %v3017_v35, 0.0 }
 0x9cf   : > { %3055 = vmatmul.f32.gmra.mxu2 %v3019_v36 }
 0xa4a   : > { %v3053_v37 = vpop.f32.mrf.mxu2 }
 0xa52   : > { %v3056_v38 = vpop.f32.mrf.mxu2 }
 0xa53   : > { %3096 = vmatpush.msra.mxu0 %v3056_v38 }
 0xa55   : > { %3097 = vmatpush.msra.mxu0 %v3053_v37 }
 0xa56   : > { %3540 = vmatmul.msk.f32.vlgmr.msra.gmra.mxu0 %vm1386_vm1, %v3059_v39 }
 0xa5e   : > { %3541 = vmatmul.msk.f32.gmra.mxu0 %vm1386_vm1, %v3060_v40 }
 0xa66   : > { %3542 = vmatmul.msk.f32.gmra.mxu0 %vm1386_vm1, %v3061_v41 }
 0xa6e   : > { %3543 = vmatmul.msk.f32.gmra.mxu0 %vm1386_vm1, %v3062_v42 }
 0xad3   : > { %v3099_v44 = vpop.f32.mrf.mxu0 }
 0xad4   : > { %v3100_v45 = vadd.f32 %v3099_v44, %v3068_v43 }
 0xad6   : > { %3111 = vst.msk [vmem:[%s1258_s26] sm:$0xff] %vm1788_vm4, %v3100_v45 }
 0xadb   : > { %v3102_v46 = vpop.f32.mrf.mxu0 }
 0xadc   : > { %v3103_v47 = vadd.f32 %v3102_v46, %v3068_v43 }
 0xade   : > { %3112 = vst.msk [vmem:[%s1258_s26 + $0x8] sm:$0xff] %vm1788_vm4, %v3103_v47 }
 0xae3   : > { %v3105_v48 = vpop.f32.mrf.mxu0 }
 0xae4   : > { %v3106_v49 = vadd.f32 %v3105_v48, %v3068_v43 }
 0xae6   : > { %3113 = vst.msk [vmem:[%s1258_s26 + $0x10] sm:$0xff] %vm1788_vm4, %v3106_v49 }
 0xaeb   : > { %v3108_v50 = vpop.f32.mrf.mxu0 }
 0xaec   : > { %v3109_v51 = vadd.f32 %v3108_v50, %v3068_v43 }
 0xaee   : > { %3114 = vst.msk [vmem:[%s1258_s26 + $0x18] sm:$0xff] %vm1788_vm4, %v3109_v51 }
 0xaef   : > { %4179 = shalt.err (!%p4176_p2)
}
 0xaf0   : > { %s4294_s6 = smov 128   ;;  %s4295_s9 = smov 8  }
 0xaf1   : > { %3599 = dma.vmem_to_hbm [thread:$0]  (%p4686_p9), %s3129_s4, 512, %s3131_s5, %s3116_s3, %s4294_s6, %s4294_s6, %s4295_s9  }
 0xaf2 PF: > { %s3145_s13 = sand.u32 1, %s4234_s28   ;;  %p5063_p4 = scmp.ge.s32.totalorder %s4246_s0, 2 }
 0xaf3   : > { %s3146_s26 = scalar_lea.sflag [#allocation5], %s3145_s13 }
 0xaf4   : > { %p3643_p7 = pnand %p5063_p4, %p4694_p12 }
 0xaf6   : > { %p3644_p10 = pneg %p3643_p7 }
 0xaf8   : > { %4229 = dma.done.wait (%p3644_p10), %s3146_s26, 512  }
 0xaf9   : > { %4231 = vsyncadd (%p3644_p10), %s3146_s26, 4294966784  ;;  %p88_p11 = scmp.ge.s32.totalorder %s4662_s18, 4   ;;  %s5064_s28 = smov %s4238_s1 }
 0xafa   : > { %s5065_s1 = smov %s4242_s2  ;;  %s5066_s2 = smov %s4674_s11 }
 0xafb   : > { %s5067_s0 = smov %s4662_s18  ;;  %90 = sbr.rel (!%p88_p11) target bundleno = 77 (0x4d), region = 335 }
 0xb00   :  { %3152 = vsyncpa [#allocation4], 1 }
 0xb01   :  { %3154 = vsyncpa [#allocation4 + $0x1], 1 }
 0xb02   :  { %3155 = vsyncpa [#allocation7], 1 }
 0xb03   :  { %3157 = vsyncpa [#allocation7 + $0x1], 1 }
 0xb04   :  { %3158 = vsyncpa [#allocation10], 1 }
 0xb05   :  { %3159 = vsyncpa [#allocation13], 1 }
 0xb06   :  { %3160 = vsyncpa [#allocation16], 1 }
 0xb07   :  { %3161 = vsyncpa [#allocation19], 1 }
 0xb08   :  { %3162 = vsyncpa [#allocation22], 1 }
 0xb09   :  { %3163 = vsyncpa [#allocation5], 1 }
 0xb0a   :  { %3165 = vsyncpa [#allocation5 + $0x1], 1 }

</bundles_post_ra>
